<compile_context>
chip_gen: v7x
topology: tpu7x:2x2x1
jax: 0.10.0
libtpu: 0.0.40
codegen_flags: <defaults>
</compile_context>

<pallas_src>
import math

import numpy as np
import jax
import jax.numpy as jnp
from jax.experimental import pallas as pl
from jax.experimental.pallas import tpu as pltpu

HIDDEN = 20
NUM_LAYERS = 3
NUM_CLASSES = 2
XF, EF, NF_DAG = 6, 12, 10

LANE = 128                 # per-head padded lane width
PROJ_W = 4 * LANE          # fused q|k|v|skip projection width
CONV_ROWS = 24             # rows per conv block (0:20 weight, 20 bias, rest zero)
BIG = 1e30

# ---- row map of the packed "vecs" slab ([VECS_ROWS, 128]) ----
R_GNX_W, R_GNX_B, R_GNX_MS = 0, 1, 2
R_GNE_W, R_GNE_B, R_GNE_MS = 3, 4, 5
R_CQ_LIN_IN_B = 6
R_CQ_LIN_EDGE_B = 7
R_CQ_LIN_OUT_B = 8
R_DAG_LIN_IN_B = 9
R_DAG_LIN_OUT_B = 10
R_CQ_EB0 = 11              # edge-update biases for layers 0,1 at rows 11,12
R_FIN_B = 13
R_CQ_LIN_IN_W = 16         # 6 rows
R_CQ_LIN_EDGE_W = 24       # 12 rows
R_CQ_LIN_OUT_W = 40        # 20 rows
R_DAG_LIN_IN_W = 64        # 10 rows
R_DAG_LIN_OUT_W = 80       # 20 rows
R_FIN_W_CQ = 104           # 20 rows (cols 0:2)
R_FIN_W_DAG = 128          # 20 rows (cols 0:2)
VECS_ROWS = 152


# ------------------------------ fused kernel -------------------------------

def _make_kernel(n_cq, e_cq, n_dag, n_pick):
    H = HIDDEN
    inv_sqrt_h = 1.0 / math.sqrt(H)

    def kernel(cqx_ref, cqz_ref, dagx_ref, cqs_ref, dags_ref,
               cq_wqkv_ref, cq_aux_ref, dag_wqkv_ref, vecs_ref, o_ref):

        def dot(a, b):
            return jnp.dot(a, b, preferred_element_type=jnp.float32)

        def vrow(r, w):               # single [1, w] vector from the vecs slab
            return vecs_ref[r:r + 1, 0:w]

        def vblk(r, nrows, w):        # small weight matrix from the vecs slab
            return vecs_ref[r:r + nrows, 0:w]

        def graph_norm(x, w, b, ms):  # PyG GraphNorm, single graph
            mean = jnp.mean(x, axis=0, keepdims=True)
            out = x - mean * ms
            var = jnp.mean(out * out, axis=0, keepdims=True)
            return out * jax.lax.rsqrt(var + 1e-5) * w + b

        # =========================== Clique (TransCq) ===========================
        # structure tensors: loaded once, loop-invariant
        S = cqs_ref[...]                                        # [2E+N+P, max(N,E)]
        s_src = S[0:e_cq, 0:n_cq]                               # [E,N] one-hot src
        s_dst = S[e_cq:2 * e_cq, 0:n_cq]                        # [E,N] one-hot dst
        s_dst_t = S[2 * e_cq:2 * e_cq + n_cq, 0:e_cq]           # [N,E]
        pick_cq = S[2 * e_cq + n_cq:2 * e_cq + n_cq + n_pick, 0:n_cq]
        seg_bias = (s_dst - 1.0) * BIG                          # 0 on edge, -1e30 off

        x0 = graph_norm(cqx_ref[...], vrow(R_GNX_W, XF), vrow(R_GNX_B, XF),
                        vrow(R_GNX_MS, XF))
        z0 = graph_norm(cqz_ref[...], vrow(R_GNE_W, EF), vrow(R_GNE_B, EF),
                        vrow(R_GNE_MS, EF))
        # activations kept at lane width 128, lanes >= 20 exactly zero
        x = jnp.maximum(dot(x0, vblk(R_CQ_LIN_IN_W, XF, LANE))
                        + vrow(R_CQ_LIN_IN_B, LANE), 0.0)       # [N,128]
        z = jnp.maximum(dot(z0, vblk(R_CQ_LIN_EDGE_W, EF, LANE))
                        + vrow(R_CQ_LIN_EDGE_B, LANE), 0.0)     # [E,128]

        for l in range(NUM_LAYERS):
            blk = cq_wqkv_ref[l]                                # [24,512]
            aux = cq_aux_ref[l]                                 # [24,512]
            # fused q/k/v/skip projection; each head in its own 128-lane block
            proj = dot(x[:, :H], blk[0:H, :]) + blk[H:H + 1, :]          # [N,512]
            el = dot(z[:, :H], aux[0:H, 0:LANE])                         # [E,128]
            q_dst = dot(s_dst, proj[:, 0:LANE])                          # [E,128]
            kv_src = dot(s_src, proj[:, LANE:3 * LANE])                  # [E,256]
            k_src = kv_src[:, 0:LANE] + el
            v_src = kv_src[:, LANE:2 * LANE] + el
            s_e = jnp.sum(q_dst * k_src, axis=-1, keepdims=True) * inv_sqrt_h  # [E,1]
            # segment softmax over edges sharing the same destination node
            d = s_e + seg_bias                                           # [E,N]
            m_n = jnp.max(d, axis=0, keepdims=True)                      # [1,N]
            m_e = jnp.sum(s_dst * m_n, axis=1, keepdims=True)            # [E,1]
            p_e = jnp.exp(s_e - m_e)                                     # [E,1]
            den_n = jnp.sum(s_dst * p_e, axis=0, keepdims=True)          # [1,N]
            den_e = jnp.sum(s_dst * den_n, axis=1, keepdims=True)        # [E,1]
            alpha = p_e * pl.reciprocal(jnp.maximum(den_e, 1e-6), approx=True)
            agg = dot(s_dst_t, alpha * v_src)                            # [N,128]
            x = jnp.maximum(agg + proj[:, 3 * LANE:4 * LANE], 0.0)
            if l != NUM_LAYERS - 1:
                # edge update relu(Linear([x_src, x_dst, z])): transform then gather
                t = dot(x[:, :H], aux[0:H, LANE:3 * LANE])               # [N,256]
                e_nb = dot(s_src, t[:, 0:LANE]) + dot(s_dst, t[:, LANE:2 * LANE])
                z = jnp.maximum(e_nb + dot(z[:, :H], aux[0:H, 3 * LANE:4 * LANE])
                                + vrow(R_CQ_EB0 + l, LANE), 0.0)

        x_cq = dot(pick_cq, x)                                           # x[pickAble]
        x_cq = dot(x_cq[:, :H], vblk(R_CQ_LIN_OUT_W, H, LANE)) + vrow(R_CQ_LIN_OUT_B, LANE)
        x_cq = jnp.maximum(x_cq, 0.0)                                    # relu in Comb2

        # ============================ DAG (TransLay) =============================
        D = dags_ref[...]                                                # [4N+P, N]
        adj_up = D[0:n_dag, 0:n_dag]                 # adj[i,j] = 1 iff edge j -> i
        adj_down = D[n_dag:2 * n_dag, 0:n_dag]
        pick_dag = D[2 * n_dag:2 * n_dag + n_pick, 0:n_dag]
        mask_up = D[2 * n_dag + n_pick:3 * n_dag + n_pick, 0:1] > 0.5
        mask_down = D[3 * n_dag + n_pick:4 * n_dag + n_pick, 0:1] > 0.5
        bias_up = (adj_up - 1.0) * BIG
        bias_down = (adj_down - 1.0) * BIG
        adjs = (adj_up, adj_down)
        biases = (bias_up, bias_down)
        masks = (mask_up, mask_down)

        xd = dagx_ref[...]
        mean = jnp.mean(xd, axis=0, keepdims=True)
        xc = xd - mean
        var = jnp.mean(xc * xc, axis=0, keepdims=True)
        xd = xc * jax.lax.rsqrt(var + 1e-5)              # InstanceNorm (affine=False)
        xd = jnp.maximum(dot(xd, vblk(R_DAG_LIN_IN_W, NF_DAG, LANE))
                         + vrow(R_DAG_LIN_IN_B, LANE), 0.0)              # [N,128]

        for l in range(NUM_LAYERS * 2):
            blk = dag_wqkv_ref[l]                                        # [24,512]
            proj = dot(xd[:, :H], blk[0:H, :]) + blk[H:H + 1, :]         # [N,512]
            q = proj[:, 0:LANE]
            k = proj[:, LANE:2 * LANE]
            v = proj[:, 2 * LANE:3 * LANE]
            skip = proj[:, 3 * LANE:4 * LANE]
            scores = jax.lax.dot_general(q, k, (((1,), (1,)), ((), ())),
                                         preferred_element_type=jnp.float32) * inv_sqrt_h
            s = scores + biases[l % 2]
            m = jnp.max(s, axis=1, keepdims=True)
            p = jnp.exp(s - m) * adjs[l % 2]        # zero-in-degree rows stay all-zero
            denom = jnp.sum(p, axis=1, keepdims=True)
            alpha = p * pl.reciprocal(jnp.maximum(denom, 1e-6), approx=True)
            x_new = dot(alpha, v) + skip
            # TODO(synk): TransWave is not defined in the reference source; approximated
            # as a TransformerConv whose output replaces only nodeMask-selected nodes.
            xd = jnp.where(masks[l % 2], x_new, xd)

        x_dag = dot(pick_dag, xd)                                        # x[pickAble]
        x_dag = dot(x_dag[:, :H], vblk(R_DAG_LIN_OUT_W, H, LANE)) + vrow(R_DAG_LIN_OUT_B, LANE)
        x_dag = jnp.maximum(x_dag, 0.0)                                  # relu in Comb2

        # =============================== final head ==============================
        # lin_Out(cat([x_cq, x_dag], -1)) as two split matmuls (no in-kernel concat).
        o_ref[...] = (dot(x_cq[:, :H], vblk(R_FIN_W_CQ, H, NUM_CLASSES))
                      + dot(x_dag[:, :H], vblk(R_FIN_W_DAG, H, NUM_CLASSES))
                      + vrow(R_FIN_B, NUM_CLASSES))

    return kernel


# ------------------------------- JAX wrapper --------------------------------

def comb2_forward(slabs, cq_x, cq_z, dag_x, cq_struct, dag_struct):
    n_cq = cq_x.shape[0]
    e_cq = cq_z.shape[0]
    n_dag = dag_x.shape[0]
    n_pick = cq_struct.shape[0] - 2 * e_cq - n_cq

    kernel = _make_kernel(n_cq, e_cq, n_dag, n_pick)
    args = (cq_x, cq_z, dag_x, cq_struct, dag_struct,
            slabs['cq_wqkv'], slabs['cq_aux'], slabs['dag_wqkv'], slabs['vecs'])
    return pl.pallas_call(
        kernel,
        out_shape=jax.ShapeDtypeStruct((n_pick, NUM_CLASSES), jnp.float32),
        in_specs=[pl.BlockSpec(memory_space=pltpu.MemorySpace.VMEM)] * len(args),
        out_specs=pl.BlockSpec(memory_space=pltpu.MemorySpace.VMEM),
    )(*args)


# ------------------------- graph structure (host, once) ----------------------

def build_cq_struct(edge_index, pick, n):
    ei = np.asarray(edge_index)
    pick = np.asarray(pick)
    e, p = ei.shape[1], pick.shape[0]
    width = max(n, e)
    S = np.zeros((2 * e + n + p, width), np.float32)
    S[np.arange(e), ei[0]] = 1.0                              # s_src   [E,N]
    S[e + np.arange(e), ei[1]] = 1.0                          # s_dst   [E,N]
    S[2 * e + ei[1], np.arange(e)] = 1.0                      # s_dst^T [N,E]
    S[2 * e + n + np.arange(p), pick] = 1.0                   # pick    [P,N]
    return jnp.asarray(S)


def build_dag_struct(ei_up, ei_down, mask_up, mask_down, pick, n):
    ei_up, ei_down = np.asarray(ei_up), np.asarray(ei_down)
    pick = np.asarray(pick)
    p = pick.shape[0]
    D = np.zeros((4 * n + p, n), np.float32)
    D[ei_up[1], ei_up[0]] = 1.0                               # adj_up[i,j]=1 iff j->i
    D[n + ei_down[1], ei_down[0]] = 1.0                       # adj_down
    D[2 * n + np.arange(p), pick] = 1.0                       # pick    [P,N]
    D[2 * n + p + np.arange(n), 0] = np.asarray(mask_up, np.float32)
    D[3 * n + p + np.arange(n), 0] = np.asarray(mask_down, np.float32)
    return jnp.asarray(D)


# -------------------------------- parameters --------------------------------

def _init_linear(key, fan_in, fan_out):
    kw, kb = jax.random.split(key)
    s = 1.0 / math.sqrt(fan_in)
    w = jax.random.uniform(kw, (fan_in, fan_out), jnp.float32, -s, s)
    b = jax.random.uniform(kb, (1, fan_out), jnp.float32, -s, s)
    return w, b


def init_params(key):
    keys = iter(jax.random.split(key, 64))

    def lin(fi, fo):
        return _init_linear(next(keys), fi, fo)

    def gnorm(f):
        return {'weight': jnp.ones((1, f), jnp.float32),
                'bias': jnp.zeros((1, f), jnp.float32),
                'mean_scale': jnp.ones((1, f), jnp.float32)}

    def tconv_fused():
        wq, bq = lin(HIDDEN, HIDDEN)
        wk, bk = lin(HIDDEN, HIDDEN)
        wv, bv = lin(HIDDEN, HIDDEN)
        ws, bs = lin(HIDDEN, HIDDEN)
        return (jnp.concatenate([wq, wk, wv, ws], axis=1),    # [H, 4H]
                jnp.concatenate([bq, bk, bv, bs], axis=1))    # [1, 4H]

    cq = {'n': gnorm(XF), 'n2': gnorm(EF)}
    cq['lin_in_w'], cq['lin_in_b'] = lin(XF, HIDDEN)
    cq['lin_edge_w'], cq['lin_edge_b'] = lin(EF, HIDDEN)
    cq['lin_out_w'], cq['lin_out_b'] = lin(HIDDEN, HIDDEN)    # out = hidden_channels
    cq['wqkv'], cq['bqkv'], cq['we'] = [], [], []
    for _ in range(NUM_LAYERS):
        w, b = tconv_fused()
        we, _ = lin(HIDDEN, HIDDEN)                           # conv lin_edge: no bias
        cq['wqkv'].append(w); cq['bqkv'].append(b); cq['we'].append(we)
    cq['ew'], cq['eb'] = [], []
    for _ in range(NUM_LAYERS - 1):                           # last edge-update unused
        w, b = lin(3 * HIDDEN, HIDDEN)
        cq['ew'].append(w); cq['eb'].append(b)

    dag = {}
    dag['lin_in_w'], dag['lin_in_b'] = lin(NF_DAG, HIDDEN)
    dag['lin_out_w'], dag['lin_out_b'] = lin(HIDDEN, HIDDEN)  # num_classes = hidden
    dag['wqkv'], dag['bqkv'] = [], []
    for _ in range(NUM_LAYERS * 2):
        w, b = tconv_fused()
        dag['wqkv'].append(w); dag['bqkv'].append(b)

    fin_w, fin_b = lin(2 * HIDDEN, NUM_CLASSES)
    return {'cq': cq, 'dag': dag, 'fin_w': fin_w, 'fin_b': fin_b}


def pack_params(p):
    """One-time host-side packing of all weights into a handful of VMEM slabs."""
    cq, dag = p['cq'], p['dag']

    def conv_block(w, b):                      # [H,4H]/[1,4H] -> [24,512], bias at row 20
        blk = jnp.zeros((CONV_ROWS, PROJ_W), jnp.float32)
        for h in range(4):
            blk = blk.at[0:HIDDEN, h * LANE:h * LANE + HIDDEN].set(
                w[:, h * HIDDEN:(h + 1) * HIDDEN])
            blk = blk.at[HIDDEN, h * LANE:h * LANE + HIDDEN].set(
                b[0, h * HIDDEN:(h + 1) * HIDDEN])
        return blk

    cq_wqkv = jnp.stack([conv_block(cq['wqkv'][l], cq['bqkv'][l])
                         for l in range(NUM_LAYERS)])                    # [3,24,512]
    dag_wqkv = jnp.stack([conv_block(dag['wqkv'][l], dag['bqkv'][l])
                          for l in range(NUM_LAYERS * 2)])               # [6,24,512]

    aux_blocks = []
    for l in range(NUM_LAYERS):                # [we | ew_src | ew_dst | ew_z]
        blk = jnp.zeros((CONV_ROWS, PROJ_W), jnp.float32)
        blk = blk.at[0:HIDDEN, 0:HIDDEN].set(cq['we'][l])
        if l < NUM_LAYERS - 1:
            ew = cq['ew'][l]                   # [3H, H]: rows for x_src | x_dst | z
            blk = blk.at[0:HIDDEN, LANE:LANE + HIDDEN].set(ew[0:HIDDEN])
            blk = blk.at[0:HIDDEN, 2 * LANE:2 * LANE + HIDDEN].set(ew[HIDDEN:2 * HIDDEN])
            blk = blk.at[0:HIDDEN, 3 * LANE:3 * LANE + HIDDEN].set(ew[2 * HIDDEN:3 * HIDDEN])
        aux_blocks.append(blk)
    cq_aux = jnp.stack(aux_blocks)                                       # [3,24,512]

    V = jnp.zeros((VECS_ROWS, LANE), jnp.float32)

    def put(buf, r, a):
        a = jnp.asarray(a, jnp.float32)
        if a.ndim == 1:
            a = a[None, :]
        return buf.at[r:r + a.shape[0], 0:a.shape[1]].set(a)

    V = put(V, R_GNX_W, cq['n']['weight'])
    V = put(V, R_GNX_B, cq['n']['bias'])
    V = put(V, R_GNX_MS, cq['n']['mean_scale'])
    V = put(V, R_GNE_W, cq['n2']['weight'])
    V = put(V, R_GNE_B, cq['n2']['bias'])
    V = put(V, R_GNE_MS, cq['n2']['mean_scale'])
    V = put(V, R_CQ_LIN_IN_B, cq['lin_in_b'])
    V = put(V, R_CQ_LIN_EDGE_B, cq['lin_edge_b'])
    V = put(V, R_CQ_LIN_OUT_B, cq['lin_out_b'])
    V = put(V, R_DAG_LIN_IN_B, dag['lin_in_b'])
    V = put(V, R_DAG_LIN_OUT_B, dag['lin_out_b'])
    for l in range(NUM_LAYERS - 1):
        V = put(V, R_CQ_EB0 + l, cq['eb'][l])
    V = put(V, R_FIN_B, p['fin_b'])
    V = put(V, R_CQ_LIN_IN_W, cq['lin_in_w'])
    V = put(V, R_CQ_LIN_EDGE_W, cq['lin_edge_w'])
    V = put(V, R_CQ_LIN_OUT_W, cq['lin_out_w'])
    V = put(V, R_DAG_LIN_IN_W, dag['lin_in_w'])
    V = put(V, R_DAG_LIN_OUT_W, dag['lin_out_w'])
    V = put(V, R_FIN_W_CQ, p['fin_w'][0:HIDDEN])       # split of the [2H,C] head
    V = put(V, R_FIN_W_DAG, p['fin_w'][HIDDEN:2 * HIDDEN])

    return {'cq_wqkv': cq_wqkv, 'cq_aux': cq_aux, 'dag_wqkv': dag_wqkv, 'vecs': V}


# ----------------------------------- main ------------------------------------

if __name__ == "__main__":
    root = jax.random.PRNGKey(0)
    kp, kx1, kx2, ke = jax.random.split(root, 4)
    slabs = pack_params(init_params(kp))

    # ---- Clique graph: 12 nodes, bidirectional ring (24 directed edges) ----
    n_cq = 12
    ring = np.arange(n_cq)
    src = np.concatenate([ring, (ring + 1) % n_cq]).astype(np.int32)
    dst = np.concatenate([(ring + 1) % n_cq, ring]).astype(np.int32)
    cq_edge_index = np.stack([src, dst])
    cq_x = jax.random.normal(kx1, (n_cq, XF), jnp.float32)
    cq_z = jax.random.normal(ke, (cq_edge_index.shape[1], EF), jnp.float32)
    cq_pick = np.array([0, 2, 4, 6], np.int32)                # pickAble -> 4 nodes
    cq_struct = build_cq_struct(cq_edge_index, cq_pick, n_cq)  # built once (host)

    # ---- DAG graph: 12 nodes, chain up / chain down ----
    n_dag = 12
    up_src = np.arange(n_dag - 1, dtype=np.int32)
    up_dst = up_src + 1
    ei_up = np.stack([up_src, up_dst])
    ei_down = np.stack([up_dst, up_src])
    mask_up = np.arange(n_dag) > 0                             # nodes updated on up pass
    mask_down = np.arange(n_dag) < n_dag - 1
    dag_x = jax.random.normal(kx2, (n_dag, NF_DAG), jnp.float32)
    dag_pick = np.array([1, 3, 5, 7], np.int32)                # pickAble -> 4 nodes
    dag_struct = build_dag_struct(ei_up, ei_down, mask_up, mask_down, dag_pick, n_dag)

    fwd = jax.jit(comb2_forward)
    out = jax.block_until_ready(fwd(slabs, cq_x, cq_z, dag_x, cq_struct, dag_struct))
    assert out.shape == (4, NUM_CLASSES)
    assert bool(jnp.all(jnp.isfinite(out)))
    print("KERNEL_OK")
</pallas_src>

<mosaic_0001>
module attributes {stable_mosaic.version = 11 : i64} {
  func.func @kernel(%arg0: memref<12x6xf32, #tpu.memory_space<vmem>>, %arg1: memref<24x12xf32, #tpu.memory_space<vmem>>, %arg2: memref<12x10xf32, #tpu.memory_space<vmem>>, %arg3: memref<64x24xf32, #tpu.memory_space<vmem>>, %arg4: memref<52x12xf32, #tpu.memory_space<vmem>>, %arg5: memref<3x24x512xf32, #tpu.memory_space<vmem>>, %arg6: memref<3x24x512xf32, #tpu.memory_space<vmem>>, %arg7: memref<6x24x512xf32, #tpu.memory_space<vmem>>, %arg8: memref<152x128xf32, #tpu.memory_space<vmem>>, %arg9: memref<4x2xf32, #tpu.memory_space<vmem>>) attributes {dimension_semantics = [], scalar_prefetch = 0 : i64, scratch_operands = 0 : i64, tpu.core_type = #tpu.core_type<tc>} {
    %c0 = arith.constant 0 : index
    %c0_0 = arith.constant 0 : index
    %0 = vector.load %arg3[%c0, %c0_0] : memref<64x24xf32, #tpu.memory_space<vmem>>, vector<64x24xf32>
    %1 = vector.extract_strided_slice %0 {offsets = [0, 0], sizes = [24, 12], strides = [1, 1]} : vector<64x24xf32> to vector<24x12xf32>
    %2 = vector.extract_strided_slice %0 {offsets = [24, 0], sizes = [24, 12], strides = [1, 1]} : vector<64x24xf32> to vector<24x12xf32>
    %3 = vector.extract_strided_slice %0 {offsets = [48, 0], sizes = [12, 24], strides = [1, 1]} : vector<64x24xf32> to vector<12x24xf32>
    %4 = vector.extract_strided_slice %0 {offsets = [60, 0], sizes = [4, 12], strides = [1, 1]} : vector<64x24xf32> to vector<4x12xf32>
    %cst = arith.constant 1.000000e+00 : f32
    %5 = vector.broadcast %cst : f32 to vector<24x12xf32>
    %6 = arith.subf %2, %5 : vector<24x12xf32>
    %cst_1 = arith.constant 1.000000e+30 : f32
    %7 = vector.broadcast %cst_1 : f32 to vector<24x12xf32>
    %8 = arith.mulf %6, %7 : vector<24x12xf32>
    %c0_2 = arith.constant 0 : index
    %c0_3 = arith.constant 0 : index
    %9 = vector.load %arg0[%c0_2, %c0_3] : memref<12x6xf32, #tpu.memory_space<vmem>>, vector<12x6xf32>
    %c0_4 = arith.constant 0 : index
    %c0_5 = arith.constant 0 : index
    %10 = vector.load %arg8[%c0_4, %c0_5] : memref<152x128xf32, #tpu.memory_space<vmem>>, vector<1x6xf32>
    %c1 = arith.constant 1 : index
    %c0_6 = arith.constant 0 : index
    %11 = vector.load %arg8[%c1, %c0_6] : memref<152x128xf32, #tpu.memory_space<vmem>>, vector<1x6xf32>
    %c2 = arith.constant 2 : index
    %c0_7 = arith.constant 0 : index
    %12 = vector.load %arg8[%c2, %c0_7] : memref<152x128xf32, #tpu.memory_space<vmem>>, vector<1x6xf32>
    %cst_8 = arith.constant dense<0.000000e+00> : vector<6xf32>
    %13 = vector.multi_reduction <add>, %9, %cst_8 [0] : vector<12x6xf32> to vector<6xf32>
    %14 = vector.shape_cast %13 : vector<6xf32> to vector<1x6xf32>
    %cst_9 = arith.constant 1.200000e+01 : f32
    %15 = vector.broadcast %cst_9 : f32 to vector<1x6xf32>
    %16 = arith.divf %14, %15 : vector<1x6xf32>
    %17 = arith.mulf %16, %12 : vector<1x6xf32>
    %18 = vector.broadcast %17 : vector<1x6xf32> to vector<12x6xf32>
    %19 = arith.subf %9, %18 : vector<12x6xf32>
    %20 = arith.mulf %19, %19 : vector<12x6xf32>
    %cst_10 = arith.constant dense<0.000000e+00> : vector<6xf32>
    %21 = vector.multi_reduction <add>, %20, %cst_10 [0] : vector<12x6xf32> to vector<6xf32>
    %22 = vector.shape_cast %21 : vector<6xf32> to vector<1x6xf32>
    %cst_11 = arith.constant 1.200000e+01 : f32
    %23 = vector.broadcast %cst_11 : f32 to vector<1x6xf32>
    %24 = arith.divf %22, %23 : vector<1x6xf32>
    %cst_12 = arith.constant 9.99999974E-6 : f32
    %25 = vector.broadcast %cst_12 : f32 to vector<1x6xf32>
    %26 = arith.addf %24, %25 : vector<1x6xf32>
    %27 = math.rsqrt %26 : vector<1x6xf32>
    %28 = vector.broadcast %27 : vector<1x6xf32> to vector<12x6xf32>
    %29 = arith.mulf %19, %28 : vector<12x6xf32>
    %30 = vector.broadcast %10 : vector<1x6xf32> to vector<12x6xf32>
    %31 = arith.mulf %29, %30 : vector<12x6xf32>
    %32 = vector.broadcast %11 : vector<1x6xf32> to vector<12x6xf32>
    %33 = arith.addf %31, %32 : vector<12x6xf32>
    %c0_13 = arith.constant 0 : index
    %c0_14 = arith.constant 0 : index
    %34 = vector.load %arg1[%c0_13, %c0_14] : memref<24x12xf32, #tpu.memory_space<vmem>>, vector<24x12xf32>
    %c3 = arith.constant 3 : index
    %c0_15 = arith.constant 0 : index
    %35 = vector.load %arg8[%c3, %c0_15] : memref<152x128xf32, #tpu.memory_space<vmem>>, vector<1x12xf32>
    %c4 = arith.constant 4 : index
    %c0_16 = arith.constant 0 : index
    %36 = vector.load %arg8[%c4, %c0_16] : memref<152x128xf32, #tpu.memory_space<vmem>>, vector<1x12xf32>
    %c5 = arith.constant 5 : index
    %c0_17 = arith.constant 0 : index
    %37 = vector.load %arg8[%c5, %c0_17] : memref<152x128xf32, #tpu.memory_space<vmem>>, vector<1x12xf32>
    %cst_18 = arith.constant dense<0.000000e+00> : vector<12xf32>
    %38 = vector.multi_reduction <add>, %34, %cst_18 [0] : vector<24x12xf32> to vector<12xf32>
    %39 = vector.shape_cast %38 : vector<12xf32> to vector<1x12xf32>
    %cst_19 = arith.constant 2.400000e+01 : f32
    %40 = vector.broadcast %cst_19 : f32 to vector<1x12xf32>
    %41 = arith.divf %39, %40 : vector<1x12xf32>
    %42 = arith.mulf %41, %37 : vector<1x12xf32>
    %43 = vector.broadcast %42 : vector<1x12xf32> to vector<24x12xf32>
    %44 = arith.subf %34, %43 : vector<24x12xf32>
    %45 = arith.mulf %44, %44 : vector<24x12xf32>
    %cst_20 = arith.constant dense<0.000000e+00> : vector<12xf32>
    %46 = vector.multi_reduction <add>, %45, %cst_20 [0] : vector<24x12xf32> to vector<12xf32>
    %47 = vector.shape_cast %46 : vector<12xf32> to vector<1x12xf32>
    %cst_21 = arith.constant 2.400000e+01 : f32
    %48 = vector.broadcast %cst_21 : f32 to vector<1x12xf32>
    %49 = arith.divf %47, %48 : vector<1x12xf32>
    %cst_22 = arith.constant 9.99999974E-6 : f32
    %50 = vector.broadcast %cst_22 : f32 to vector<1x12xf32>
    %51 = arith.addf %49, %50 : vector<1x12xf32>
    %52 = math.rsqrt %51 : vector<1x12xf32>
    %53 = vector.broadcast %52 : vector<1x12xf32> to vector<24x12xf32>
    %54 = arith.mulf %44, %53 : vector<24x12xf32>
    %55 = vector.broadcast %35 : vector<1x12xf32> to vector<24x12xf32>
    %56 = arith.mulf %54, %55 : vector<24x12xf32>
    %57 = vector.broadcast %36 : vector<1x12xf32> to vector<24x12xf32>
    %58 = arith.addf %56, %57 : vector<24x12xf32>
    %c16 = arith.constant 16 : index
    %c0_23 = arith.constant 0 : index
    %59 = vector.load %arg8[%c16, %c0_23] : memref<152x128xf32, #tpu.memory_space<vmem>>, vector<6x128xf32>
    %cst_24 = arith.constant dense<0.000000e+00> : vector<12x128xf32>
    %60 = tpu.matmul %33, %59, %cst_24 {dimension_numbers = #tpu.dot_dimension_numbers<[1], [0], [0], [1], [0, 0, 1, 1], [], []>} : vector<12x6xf32>, vector<6x128xf32>, vector<12x128xf32> -> vector<12x128xf32>
    %c6 = arith.constant 6 : index
    %c0_25 = arith.constant 0 : index
    %61 = vector.load %arg8[%c6, %c0_25] : memref<152x128xf32, #tpu.memory_space<vmem>>, vector<1x128xf32>
    %62 = vector.broadcast %61 : vector<1x128xf32> to vector<12x128xf32>
    %63 = arith.addf %60, %62 : vector<12x128xf32>
    %cst_26 = arith.constant 0.000000e+00 : f32
    %64 = vector.broadcast %cst_26 : f32 to vector<12x128xf32>
    %65 = arith.maximumf %63, %64 : vector<12x128xf32>
    %c24 = arith.constant 24 : index
    %c0_27 = arith.constant 0 : index
    %66 = vector.load %arg8[%c24, %c0_27] : memref<152x128xf32, #tpu.memory_space<vmem>>, vector<12x128xf32>
    %cst_28 = arith.constant dense<0.000000e+00> : vector<24x128xf32>
    %67 = tpu.matmul %58, %66, %cst_28 {dimension_numbers = #tpu.dot_dimension_numbers<[1], [0], [0], [1], [0, 0, 1, 1], [], []>} : vector<24x12xf32>, vector<12x128xf32>, vector<24x128xf32> -> vector<24x128xf32>
    %c7 = arith.constant 7 : index
    %c0_29 = arith.constant 0 : index
    %68 = vector.load %arg8[%c7, %c0_29] : memref<152x128xf32, #tpu.memory_space<vmem>>, vector<1x128xf32>
    %69 = vector.broadcast %68 : vector<1x128xf32> to vector<24x128xf32>
    %70 = arith.addf %67, %69 : vector<24x128xf32>
    %cst_30 = arith.constant 0.000000e+00 : f32
    %71 = vector.broadcast %cst_30 : f32 to vector<24x128xf32>
    %72 = arith.maximumf %70, %71 : vector<24x128xf32>
    %c0_31 = arith.constant 0 : index
    %c0_32 = arith.constant 0 : index
    %c0_33 = arith.constant 0 : index
    %73 = vector.load %arg5[%c0_31, %c0_32, %c0_33] : memref<3x24x512xf32, #tpu.memory_space<vmem>>, vector<1x24x512xf32>
    %74 = vector.shape_cast %73 : vector<1x24x512xf32> to vector<24x512xf32>
    %c0_34 = arith.constant 0 : index
    %c0_35 = arith.constant 0 : index
    %c0_36 = arith.constant 0 : index
    %75 = vector.load %arg6[%c0_34, %c0_35, %c0_36] : memref<3x24x512xf32, #tpu.memory_space<vmem>>, vector<1x24x512xf32>
    %76 = vector.shape_cast %75 : vector<1x24x512xf32> to vector<24x512xf32>
    %77 = vector.extract_strided_slice %65 {offsets = [0, 0], sizes = [12, 20], strides = [1, 1]} : vector<12x128xf32> to vector<12x20xf32>
    %78 = vector.extract_strided_slice %74 {offsets = [0, 0], sizes = [20, 512], strides = [1, 1]} : vector<24x512xf32> to vector<20x512xf32>
    %cst_37 = arith.constant dense<0.000000e+00> : vector<12x512xf32>
    %79 = tpu.matmul %77, %78, %cst_37 {dimension_numbers = #tpu.dot_dimension_numbers<[1], [0], [0], [1], [0, 0, 1, 1], [], []>} : vector<12x20xf32>, vector<20x512xf32>, vector<12x512xf32> -> vector<12x512xf32>
    %80 = vector.extract_strided_slice %74 {offsets = [20, 0], sizes = [1, 512], strides = [1, 1]} : vector<24x512xf32> to vector<1x512xf32>
    %81 = vector.broadcast %80 : vector<1x512xf32> to vector<12x512xf32>
    %82 = arith.addf %79, %81 : vector<12x512xf32>
    %83 = vector.extract_strided_slice %72 {offsets = [0, 0], sizes = [24, 20], strides = [1, 1]} : vector<24x128xf32> to vector<24x20xf32>
    %84 = vector.extract_strided_slice %76 {offsets = [0, 0], sizes = [20, 128], strides = [1, 1]} : vector<24x512xf32> to vector<20x128xf32>
    %cst_38 = arith.constant dense<0.000000e+00> : vector<24x128xf32>
    %85 = tpu.matmul %83, %84, %cst_38 {dimension_numbers = #tpu.dot_dimension_numbers<[1], [0], [0], [1], [0, 0, 1, 1], [], []>} : vector<24x20xf32>, vector<20x128xf32>, vector<24x128xf32> -> vector<24x128xf32>
    %86 = vector.extract_strided_slice %82 {offsets = [0, 0], sizes = [12, 128], strides = [1, 1]} : vector<12x512xf32> to vector<12x128xf32>
    %cst_39 = arith.constant dense<0.000000e+00> : vector<24x128xf32>
    %87 = tpu.matmul %2, %86, %cst_39 {dimension_numbers = #tpu.dot_dimension_numbers<[1], [0], [0], [1], [0, 0, 1, 1], [], []>} : vector<24x12xf32>, vector<12x128xf32>, vector<24x128xf32> -> vector<24x128xf32>
    %88 = vector.extract_strided_slice %82 {offsets = [0, 128], sizes = [12, 256], strides = [1, 1]} : vector<12x512xf32> to vector<12x256xf32>
    %cst_40 = arith.constant dense<0.000000e+00> : vector<24x256xf32>
    %89 = tpu.matmul %1, %88, %cst_40 {dimension_numbers = #tpu.dot_dimension_numbers<[1], [0], [0], [1], [0, 0, 1, 1], [], []>} : vector<24x12xf32>, vector<12x256xf32>, vector<24x256xf32> -> vector<24x256xf32>
    %90 = vector.extract_strided_slice %89 {offsets = [0, 0], sizes = [24, 128], strides = [1, 1]} : vector<24x256xf32> to vector<24x128xf32>
    %91 = arith.addf %90, %85 : vector<24x128xf32>
    %92 = vector.extract_strided_slice %89 {offsets = [0, 128], sizes = [24, 128], strides = [1, 1]} : vector<24x256xf32> to vector<24x128xf32>
    %93 = arith.addf %92, %85 : vector<24x128xf32>
    %94 = arith.mulf %87, %91 : vector<24x128xf32>
    %cst_41 = arith.constant dense<0.000000e+00> : vector<24xf32>
    %95 = vector.multi_reduction <add>, %94, %cst_41 [1] : vector<24x128xf32> to vector<24xf32>
    %96 = vector.shape_cast %95 : vector<24xf32> to vector<24x1xf32>
    %cst_42 = arith.constant 0.223606795 : f32
    %97 = vector.broadcast %cst_42 : f32 to vector<24x1xf32>
    %98 = arith.mulf %96, %97 : vector<24x1xf32>
    %99 = vector.broadcast %98 : vector<24x1xf32> to vector<24x12xf32>
    %100 = arith.addf %99, %8 : vector<24x12xf32>
    %cst_43 = arith.constant dense<0xFF800000> : vector<12xf32>
    %101 = vector.multi_reduction <maximumf>, %100, %cst_43 [0] : vector<24x12xf32> to vector<12xf32>
    %102 = vector.shape_cast %101 : vector<12xf32> to vector<1x12xf32>
    %103 = vector.broadcast %102 : vector<1x12xf32> to vector<24x12xf32>
    %104 = arith.mulf %2, %103 : vector<24x12xf32>
    %cst_44 = arith.constant dense<0.000000e+00> : vector<24xf32>
    %105 = vector.multi_reduction <add>, %104, %cst_44 [1] : vector<24x12xf32> to vector<24xf32>
    %106 = vector.shape_cast %105 : vector<24xf32> to vector<24x1xf32>
    %107 = arith.subf %98, %106 : vector<24x1xf32>
    %108 = math.exp %107 : vector<24x1xf32>
    %109 = vector.broadcast %108 : vector<24x1xf32> to vector<24x12xf32>
    %110 = arith.mulf %2, %109 : vector<24x12xf32>
    %cst_45 = arith.constant dense<0.000000e+00> : vector<12xf32>
    %111 = vector.multi_reduction <add>, %110, %cst_45 [0] : vector<24x12xf32> to vector<12xf32>
    %112 = vector.shape_cast %111 : vector<12xf32> to vector<1x12xf32>
    %113 = vector.broadcast %112 : vector<1x12xf32> to vector<24x12xf32>
    %114 = arith.mulf %2, %113 : vector<24x12xf32>
    %cst_46 = arith.constant dense<0.000000e+00> : vector<24xf32>
    %115 = vector.multi_reduction <add>, %114, %cst_46 [1] : vector<24x12xf32> to vector<24xf32>
    %116 = vector.shape_cast %115 : vector<24xf32> to vector<24x1xf32>
    %cst_47 = arith.constant 9.99999997E-7 : f32
    %117 = vector.broadcast %cst_47 : f32 to vector<24x1xf32>
    %118 = arith.maximumf %116, %117 : vector<24x1xf32>
    %119 = tpu.reciprocal %118 {approx = true} : vector<24x1xf32> -> vector<24x1xf32>
    %120 = arith.mulf %108, %119 : vector<24x1xf32>
    %121 = vector.broadcast %120 : vector<24x1xf32> to vector<24x128xf32>
    %122 = arith.mulf %121, %93 : vector<24x128xf32>
    %cst_48 = arith.constant dense<0.000000e+00> : vector<12x128xf32>
    %123 = tpu.matmul %3, %122, %cst_48 {dimension_numbers = #tpu.dot_dimension_numbers<[1], [0], [0], [1], [0, 0, 1, 1], [], []>} : vector<12x24xf32>, vector<24x128xf32>, vector<12x128xf32> -> vector<12x128xf32>
    %124 = vector.extract_strided_slice %82 {offsets = [0, 384], sizes = [12, 128], strides = [1, 1]} : vector<12x512xf32> to vector<12x128xf32>
    %125 = arith.addf %123, %124 : vector<12x128xf32>
    %cst_49 = arith.constant 0.000000e+00 : f32
    %126 = vector.broadcast %cst_49 : f32 to vector<12x128xf32>
    %127 = arith.maximumf %125, %126 : vector<12x128xf32>
    %128 = vector.extract_strided_slice %127 {offsets = [0, 0], sizes = [12, 20], strides = [1, 1]} : vector<12x128xf32> to vector<12x20xf32>
    %129 = vector.extract_strided_slice %76 {offsets = [0, 128], sizes = [20, 256], strides = [1, 1]} : vector<24x512xf32> to vector<20x256xf32>
    %cst_50 = arith.constant dense<0.000000e+00> : vector<12x256xf32>
    %130 = tpu.matmul %128, %129, %cst_50 {dimension_numbers = #tpu.dot_dimension_numbers<[1], [0], [0], [1], [0, 0, 1, 1], [], []>} : vector<12x20xf32>, vector<20x256xf32>, vector<12x256xf32> -> vector<12x256xf32>
    %131 = vector.extract_strided_slice %130 {offsets = [0, 0], sizes = [12, 128], strides = [1, 1]} : vector<12x256xf32> to vector<12x128xf32>
    %cst_51 = arith.constant dense<0.000000e+00> : vector<24x128xf32>
    %132 = tpu.matmul %1, %131, %cst_51 {dimension_numbers = #tpu.dot_dimension_numbers<[1], [0], [0], [1], [0, 0, 1, 1], [], []>} : vector<24x12xf32>, vector<12x128xf32>, vector<24x128xf32> -> vector<24x128xf32>
    %133 = vector.extract_strided_slice %130 {offsets = [0, 128], sizes = [12, 128], strides = [1, 1]} : vector<12x256xf32> to vector<12x128xf32>
    %cst_52 = arith.constant dense<0.000000e+00> : vector<24x128xf32>
    %134 = tpu.matmul %2, %133, %cst_52 {dimension_numbers = #tpu.dot_dimension_numbers<[1], [0], [0], [1], [0, 0, 1, 1], [], []>} : vector<24x12xf32>, vector<12x128xf32>, vector<24x128xf32> -> vector<24x128xf32>
    %135 = arith.addf %132, %134 : vector<24x128xf32>
    %136 = vector.extract_strided_slice %72 {offsets = [0, 0], sizes = [24, 20], strides = [1, 1]} : vector<24x128xf32> to vector<24x20xf32>
    %137 = vector.extract_strided_slice %76 {offsets = [0, 384], sizes = [20, 128], strides = [1, 1]} : vector<24x512xf32> to vector<20x128xf32>
    %cst_53 = arith.constant dense<0.000000e+00> : vector<24x128xf32>
    %138 = tpu.matmul %136, %137, %cst_53 {dimension_numbers = #tpu.dot_dimension_numbers<[1], [0], [0], [1], [0, 0, 1, 1], [], []>} : vector<24x20xf32>, vector<20x128xf32>, vector<24x128xf32> -> vector<24x128xf32>
    %139 = arith.addf %135, %138 : vector<24x128xf32>
    %c11 = arith.constant 11 : index
    %c0_54 = arith.constant 0 : index
    %140 = vector.load %arg8[%c11, %c0_54] : memref<152x128xf32, #tpu.memory_space<vmem>>, vector<1x128xf32>
    %141 = vector.broadcast %140 : vector<1x128xf32> to vector<24x128xf32>
    %142 = arith.addf %139, %141 : vector<24x128xf32>
    %cst_55 = arith.constant 0.000000e+00 : f32
    %143 = vector.broadcast %cst_55 : f32 to vector<24x128xf32>
    %144 = arith.maximumf %142, %143 : vector<24x128xf32>
    %c1_56 = arith.constant 1 : index
    %c0_57 = arith.constant 0 : index
    %c0_58 = arith.constant 0 : index
    %145 = vector.load %arg5[%c1_56, %c0_57, %c0_58] : memref<3x24x512xf32, #tpu.memory_space<vmem>>, vector<1x24x512xf32>
    %146 = vector.shape_cast %145 : vector<1x24x512xf32> to vector<24x512xf32>
    %c1_59 = arith.constant 1 : index
    %c0_60 = arith.constant 0 : index
    %c0_61 = arith.constant 0 : index
    %147 = vector.load %arg6[%c1_59, %c0_60, %c0_61] : memref<3x24x512xf32, #tpu.memory_space<vmem>>, vector<1x24x512xf32>
    %148 = vector.shape_cast %147 : vector<1x24x512xf32> to vector<24x512xf32>
    %149 = vector.extract_strided_slice %127 {offsets = [0, 0], sizes = [12, 20], strides = [1, 1]} : vector<12x128xf32> to vector<12x20xf32>
    %150 = vector.extract_strided_slice %146 {offsets = [0, 0], sizes = [20, 512], strides = [1, 1]} : vector<24x512xf32> to vector<20x512xf32>
    %cst_62 = arith.constant dense<0.000000e+00> : vector<12x512xf32>
    %151 = tpu.matmul %149, %150, %cst_62 {dimension_numbers = #tpu.dot_dimension_numbers<[1], [0], [0], [1], [0, 0, 1, 1], [], []>} : vector<12x20xf32>, vector<20x512xf32>, vector<12x512xf32> -> vector<12x512xf32>
    %152 = vector.extract_strided_slice %146 {offsets = [20, 0], sizes = [1, 512], strides = [1, 1]} : vector<24x512xf32> to vector<1x512xf32>
    %153 = vector.broadcast %152 : vector<1x512xf32> to vector<12x512xf32>
    %154 = arith.addf %151, %153 : vector<12x512xf32>
    %155 = vector.extract_strided_slice %144 {offsets = [0, 0], sizes = [24, 20], strides = [1, 1]} : vector<24x128xf32> to vector<24x20xf32>
    %156 = vector.extract_strided_slice %148 {offsets = [0, 0], sizes = [20, 128], strides = [1, 1]} : vector<24x512xf32> to vector<20x128xf32>
    %cst_63 = arith.constant dense<0.000000e+00> : vector<24x128xf32>
    %157 = tpu.matmul %155, %156, %cst_63 {dimension_numbers = #tpu.dot_dimension_numbers<[1], [0], [0], [1], [0, 0, 1, 1], [], []>} : vector<24x20xf32>, vector<20x128xf32>, vector<24x128xf32> -> vector<24x128xf32>
    %158 = vector.extract_strided_slice %154 {offsets = [0, 0], sizes = [12, 128], strides = [1, 1]} : vector<12x512xf32> to vector<12x128xf32>
    %cst_64 = arith.constant dense<0.000000e+00> : vector<24x128xf32>
    %159 = tpu.matmul %2, %158, %cst_64 {dimension_numbers = #tpu.dot_dimension_numbers<[1], [0], [0], [1], [0, 0, 1, 1], [], []>} : vector<24x12xf32>, vector<12x128xf32>, vector<24x128xf32> -> vector<24x128xf32>
    %160 = vector.extract_strided_slice %154 {offsets = [0, 128], sizes = [12, 256], strides = [1, 1]} : vector<12x512xf32> to vector<12x256xf32>
    %cst_65 = arith.constant dense<0.000000e+00> : vector<24x256xf32>
    %161 = tpu.matmul %1, %160, %cst_65 {dimension_numbers = #tpu.dot_dimension_numbers<[1], [0], [0], [1], [0, 0, 1, 1], [], []>} : vector<24x12xf32>, vector<12x256xf32>, vector<24x256xf32> -> vector<24x256xf32>
    %162 = vector.extract_strided_slice %161 {offsets = [0, 0], sizes = [24, 128], strides = [1, 1]} : vector<24x256xf32> to vector<24x128xf32>
    %163 = arith.addf %162, %157 : vector<24x128xf32>
    %164 = vector.extract_strided_slice %161 {offsets = [0, 128], sizes = [24, 128], strides = [1, 1]} : vector<24x256xf32> to vector<24x128xf32>
    %165 = arith.addf %164, %157 : vector<24x128xf32>
    %166 = arith.mulf %159, %163 : vector<24x128xf32>
    %cst_66 = arith.constant dense<0.000000e+00> : vector<24xf32>
    %167 = vector.multi_reduction <add>, %166, %cst_66 [1] : vector<24x128xf32> to vector<24xf32>
    %168 = vector.shape_cast %167 : vector<24xf32> to vector<24x1xf32>
    %cst_67 = arith.constant 0.223606795 : f32
    %169 = vector.broadcast %cst_67 : f32 to vector<24x1xf32>
    %170 = arith.mulf %168, %169 : vector<24x1xf32>
    %171 = vector.broadcast %170 : vector<24x1xf32> to vector<24x12xf32>
    %172 = arith.addf %171, %8 : vector<24x12xf32>
    %cst_68 = arith.constant dense<0xFF800000> : vector<12xf32>
    %173 = vector.multi_reduction <maximumf>, %172, %cst_68 [0] : vector<24x12xf32> to vector<12xf32>
    %174 = vector.shape_cast %173 : vector<12xf32> to vector<1x12xf32>
    %175 = vector.broadcast %174 : vector<1x12xf32> to vector<24x12xf32>
    %176 = arith.mulf %2, %175 : vector<24x12xf32>
    %cst_69 = arith.constant dense<0.000000e+00> : vector<24xf32>
    %177 = vector.multi_reduction <add>, %176, %cst_69 [1] : vector<24x12xf32> to vector<24xf32>
    %178 = vector.shape_cast %177 : vector<24xf32> to vector<24x1xf32>
    %179 = arith.subf %170, %178 : vector<24x1xf32>
    %180 = math.exp %179 : vector<24x1xf32>
    %181 = vector.broadcast %180 : vector<24x1xf32> to vector<24x12xf32>
    %182 = arith.mulf %2, %181 : vector<24x12xf32>
    %cst_70 = arith.constant dense<0.000000e+00> : vector<12xf32>
    %183 = vector.multi_reduction <add>, %182, %cst_70 [0] : vector<24x12xf32> to vector<12xf32>
    %184 = vector.shape_cast %183 : vector<12xf32> to vector<1x12xf32>
    %185 = vector.broadcast %184 : vector<1x12xf32> to vector<24x12xf32>
    %186 = arith.mulf %2, %185 : vector<24x12xf32>
    %cst_71 = arith.constant dense<0.000000e+00> : vector<24xf32>
    %187 = vector.multi_reduction <add>, %186, %cst_71 [1] : vector<24x12xf32> to vector<24xf32>
    %188 = vector.shape_cast %187 : vector<24xf32> to vector<24x1xf32>
    %cst_72 = arith.constant 9.99999997E-7 : f32
    %189 = vector.broadcast %cst_72 : f32 to vector<24x1xf32>
    %190 = arith.maximumf %188, %189 : vector<24x1xf32>
    %191 = tpu.reciprocal %190 {approx = true} : vector<24x1xf32> -> vector<24x1xf32>
    %192 = arith.mulf %180, %191 : vector<24x1xf32>
    %193 = vector.broadcast %192 : vector<24x1xf32> to vector<24x128xf32>
    %194 = arith.mulf %193, %165 : vector<24x128xf32>
    %cst_73 = arith.constant dense<0.000000e+00> : vector<12x128xf32>
    %195 = tpu.matmul %3, %194, %cst_73 {dimension_numbers = #tpu.dot_dimension_numbers<[1], [0], [0], [1], [0, 0, 1, 1], [], []>} : vector<12x24xf32>, vector<24x128xf32>, vector<12x128xf32> -> vector<12x128xf32>
    %196 = vector.extract_strided_slice %154 {offsets = [0, 384], sizes = [12, 128], strides = [1, 1]} : vector<12x512xf32> to vector<12x128xf32>
    %197 = arith.addf %195, %196 : vector<12x128xf32>
    %cst_74 = arith.constant 0.000000e+00 : f32
    %198 = vector.broadcast %cst_74 : f32 to vector<12x128xf32>
    %199 = arith.maximumf %197, %198 : vector<12x128xf32>
    %200 = vector.extract_strided_slice %199 {offsets = [0, 0], sizes = [12, 20], strides = [1, 1]} : vector<12x128xf32> to vector<12x20xf32>
    %201 = vector.extract_strided_slice %148 {offsets = [0, 128], sizes = [20, 256], strides = [1, 1]} : vector<24x512xf32> to vector<20x256xf32>
    %cst_75 = arith.constant dense<0.000000e+00> : vector<12x256xf32>
    %202 = tpu.matmul %200, %201, %cst_75 {dimension_numbers = #tpu.dot_dimension_numbers<[1], [0], [0], [1], [0, 0, 1, 1], [], []>} : vector<12x20xf32>, vector<20x256xf32>, vector<12x256xf32> -> vector<12x256xf32>
    %203 = vector.extract_strided_slice %202 {offsets = [0, 0], sizes = [12, 128], strides = [1, 1]} : vector<12x256xf32> to vector<12x128xf32>
    %cst_76 = arith.constant dense<0.000000e+00> : vector<24x128xf32>
    %204 = tpu.matmul %1, %203, %cst_76 {dimension_numbers = #tpu.dot_dimension_numbers<[1], [0], [0], [1], [0, 0, 1, 1], [], []>} : vector<24x12xf32>, vector<12x128xf32>, vector<24x128xf32> -> vector<24x128xf32>
    %205 = vector.extract_strided_slice %202 {offsets = [0, 128], sizes = [12, 128], strides = [1, 1]} : vector<12x256xf32> to vector<12x128xf32>
    %cst_77 = arith.constant dense<0.000000e+00> : vector<24x128xf32>
    %206 = tpu.matmul %2, %205, %cst_77 {dimension_numbers = #tpu.dot_dimension_numbers<[1], [0], [0], [1], [0, 0, 1, 1], [], []>} : vector<24x12xf32>, vector<12x128xf32>, vector<24x128xf32> -> vector<24x128xf32>
    %207 = arith.addf %204, %206 : vector<24x128xf32>
    %208 = vector.extract_strided_slice %144 {offsets = [0, 0], sizes = [24, 20], strides = [1, 1]} : vector<24x128xf32> to vector<24x20xf32>
    %209 = vector.extract_strided_slice %148 {offsets = [0, 384], sizes = [20, 128], strides = [1, 1]} : vector<24x512xf32> to vector<20x128xf32>
    %cst_78 = arith.constant dense<0.000000e+00> : vector<24x128xf32>
    %210 = tpu.matmul %208, %209, %cst_78 {dimension_numbers = #tpu.dot_dimension_numbers<[1], [0], [0], [1], [0, 0, 1, 1], [], []>} : vector<24x20xf32>, vector<20x128xf32>, vector<24x128xf32> -> vector<24x128xf32>
    %211 = arith.addf %207, %210 : vector<24x128xf32>
    %c12 = arith.constant 12 : index
    %c0_79 = arith.constant 0 : index
    %212 = vector.load %arg8[%c12, %c0_79] : memref<152x128xf32, #tpu.memory_space<vmem>>, vector<1x128xf32>
    %213 = vector.broadcast %212 : vector<1x128xf32> to vector<24x128xf32>
    %214 = arith.addf %211, %213 : vector<24x128xf32>
    %cst_80 = arith.constant 0.000000e+00 : f32
    %215 = vector.broadcast %cst_80 : f32 to vector<24x128xf32>
    %216 = arith.maximumf %214, %215 : vector<24x128xf32>
    %c2_81 = arith.constant 2 : index
    %c0_82 = arith.constant 0 : index
    %c0_83 = arith.constant 0 : index
    %217 = vector.load %arg5[%c2_81, %c0_82, %c0_83] : memref<3x24x512xf32, #tpu.memory_space<vmem>>, vector<1x24x512xf32>
    %218 = vector.shape_cast %217 : vector<1x24x512xf32> to vector<24x512xf32>
    %c2_84 = arith.constant 2 : index
    %c0_85 = arith.constant 0 : index
    %c0_86 = arith.constant 0 : index
    %219 = vector.load %arg6[%c2_84, %c0_85, %c0_86] : memref<3x24x512xf32, #tpu.memory_space<vmem>>, vector<1x24x512xf32>
    %220 = vector.shape_cast %219 : vector<1x24x512xf32> to vector<24x512xf32>
    %221 = vector.extract_strided_slice %199 {offsets = [0, 0], sizes = [12, 20], strides = [1, 1]} : vector<12x128xf32> to vector<12x20xf32>
    %222 = vector.extract_strided_slice %218 {offsets = [0, 0], sizes = [20, 512], strides = [1, 1]} : vector<24x512xf32> to vector<20x512xf32>
    %cst_87 = arith.constant dense<0.000000e+00> : vector<12x512xf32>
    %223 = tpu.matmul %221, %222, %cst_87 {dimension_numbers = #tpu.dot_dimension_numbers<[1], [0], [0], [1], [0, 0, 1, 1], [], []>} : vector<12x20xf32>, vector<20x512xf32>, vector<12x512xf32> -> vector<12x512xf32>
    %224 = vector.extract_strided_slice %218 {offsets = [20, 0], sizes = [1, 512], strides = [1, 1]} : vector<24x512xf32> to vector<1x512xf32>
    %225 = vector.broadcast %224 : vector<1x512xf32> to vector<12x512xf32>
    %226 = arith.addf %223, %225 : vector<12x512xf32>
    %227 = vector.extract_strided_slice %216 {offsets = [0, 0], sizes = [24, 20], strides = [1, 1]} : vector<24x128xf32> to vector<24x20xf32>
    %228 = vector.extract_strided_slice %220 {offsets = [0, 0], sizes = [20, 128], strides = [1, 1]} : vector<24x512xf32> to vector<20x128xf32>
    %cst_88 = arith.constant dense<0.000000e+00> : vector<24x128xf32>
    %229 = tpu.matmul %227, %228, %cst_88 {dimension_numbers = #tpu.dot_dimension_numbers<[1], [0], [0], [1], [0, 0, 1, 1], [], []>} : vector<24x20xf32>, vector<20x128xf32>, vector<24x128xf32> -> vector<24x128xf32>
    %230 = vector.extract_strided_slice %226 {offsets = [0, 0], sizes = [12, 128], strides = [1, 1]} : vector<12x512xf32> to vector<12x128xf32>
    %cst_89 = arith.constant dense<0.000000e+00> : vector<24x128xf32>
    %231 = tpu.matmul %2, %230, %cst_89 {dimension_numbers = #tpu.dot_dimension_numbers<[1], [0], [0], [1], [0, 0, 1, 1], [], []>} : vector<24x12xf32>, vector<12x128xf32>, vector<24x128xf32> -> vector<24x128xf32>
    %232 = vector.extract_strided_slice %226 {offsets = [0, 128], sizes = [12, 256], strides = [1, 1]} : vector<12x512xf32> to vector<12x256xf32>
    %cst_90 = arith.constant dense<0.000000e+00> : vector<24x256xf32>
    %233 = tpu.matmul %1, %232, %cst_90 {dimension_numbers = #tpu.dot_dimension_numbers<[1], [0], [0], [1], [0, 0, 1, 1], [], []>} : vector<24x12xf32>, vector<12x256xf32>, vector<24x256xf32> -> vector<24x256xf32>
    %234 = vector.extract_strided_slice %233 {offsets = [0, 0], sizes = [24, 128], strides = [1, 1]} : vector<24x256xf32> to vector<24x128xf32>
    %235 = arith.addf %234, %229 : vector<24x128xf32>
    %236 = vector.extract_strided_slice %233 {offsets = [0, 128], sizes = [24, 128], strides = [1, 1]} : vector<24x256xf32> to vector<24x128xf32>
    %237 = arith.addf %236, %229 : vector<24x128xf32>
    %238 = arith.mulf %231, %235 : vector<24x128xf32>
    %cst_91 = arith.constant dense<0.000000e+00> : vector<24xf32>
    %239 = vector.multi_reduction <add>, %238, %cst_91 [1] : vector<24x128xf32> to vector<24xf32>
    %240 = vector.shape_cast %239 : vector<24xf32> to vector<24x1xf32>
    %cst_92 = arith.constant 0.223606795 : f32
    %241 = vector.broadcast %cst_92 : f32 to vector<24x1xf32>
    %242 = arith.mulf %240, %241 : vector<24x1xf32>
    %243 = vector.broadcast %242 : vector<24x1xf32> to vector<24x12xf32>
    %244 = arith.addf %243, %8 : vector<24x12xf32>
    %cst_93 = arith.constant dense<0xFF800000> : vector<12xf32>
    %245 = vector.multi_reduction <maximumf>, %244, %cst_93 [0] : vector<24x12xf32> to vector<12xf32>
    %246 = vector.shape_cast %245 : vector<12xf32> to vector<1x12xf32>
    %247 = vector.broadcast %246 : vector<1x12xf32> to vector<24x12xf32>
    %248 = arith.mulf %2, %247 : vector<24x12xf32>
    %cst_94 = arith.constant dense<0.000000e+00> : vector<24xf32>
    %249 = vector.multi_reduction <add>, %248, %cst_94 [1] : vector<24x12xf32> to vector<24xf32>
    %250 = vector.shape_cast %249 : vector<24xf32> to vector<24x1xf32>
    %251 = arith.subf %242, %250 : vector<24x1xf32>
    %252 = math.exp %251 : vector<24x1xf32>
    %253 = vector.broadcast %252 : vector<24x1xf32> to vector<24x12xf32>
    %254 = arith.mulf %2, %253 : vector<24x12xf32>
    %cst_95 = arith.constant dense<0.000000e+00> : vector<12xf32>
    %255 = vector.multi_reduction <add>, %254, %cst_95 [0] : vector<24x12xf32> to vector<12xf32>
    %256 = vector.shape_cast %255 : vector<12xf32> to vector<1x12xf32>
    %257 = vector.broadcast %256 : vector<1x12xf32> to vector<24x12xf32>
    %258 = arith.mulf %2, %257 : vector<24x12xf32>
    %cst_96 = arith.constant dense<0.000000e+00> : vector<24xf32>
    %259 = vector.multi_reduction <add>, %258, %cst_96 [1] : vector<24x12xf32> to vector<24xf32>
    %260 = vector.shape_cast %259 : vector<24xf32> to vector<24x1xf32>
    %cst_97 = arith.constant 9.99999997E-7 : f32
    %261 = vector.broadcast %cst_97 : f32 to vector<24x1xf32>
    %262 = arith.maximumf %260, %261 : vector<24x1xf32>
    %263 = tpu.reciprocal %262 {approx = true} : vector<24x1xf32> -> vector<24x1xf32>
    %264 = arith.mulf %252, %263 : vector<24x1xf32>
    %265 = vector.broadcast %264 : vector<24x1xf32> to vector<24x128xf32>
    %266 = arith.mulf %265, %237 : vector<24x128xf32>
    %cst_98 = arith.constant dense<0.000000e+00> : vector<12x128xf32>
    %267 = tpu.matmul %3, %266, %cst_98 {dimension_numbers = #tpu.dot_dimension_numbers<[1], [0], [0], [1], [0, 0, 1, 1], [], []>} : vector<12x24xf32>, vector<24x128xf32>, vector<12x128xf32> -> vector<12x128xf32>
    %268 = vector.extract_strided_slice %226 {offsets = [0, 384], sizes = [12, 128], strides = [1, 1]} : vector<12x512xf32> to vector<12x128xf32>
    %269 = arith.addf %267, %268 : vector<12x128xf32>
    %cst_99 = arith.constant 0.000000e+00 : f32
    %270 = vector.broadcast %cst_99 : f32 to vector<12x128xf32>
    %271 = arith.maximumf %269, %270 : vector<12x128xf32>
    %cst_100 = arith.constant dense<0.000000e+00> : vector<4x128xf32>
    %272 = tpu.matmul %4, %271, %cst_100 {dimension_numbers = #tpu.dot_dimension_numbers<[1], [0], [0], [1], [0, 0, 1, 1], [], []>} : vector<4x12xf32>, vector<12x128xf32>, vector<4x128xf32> -> vector<4x128xf32>
    %273 = vector.extract_strided_slice %272 {offsets = [0, 0], sizes = [4, 20], strides = [1, 1]} : vector<4x128xf32> to vector<4x20xf32>
    %c40 = arith.constant 40 : index
    %c0_101 = arith.constant 0 : index
    %274 = vector.load %arg8[%c40, %c0_101] : memref<152x128xf32, #tpu.memory_space<vmem>>, vector<20x128xf32>
    %cst_102 = arith.constant dense<0.000000e+00> : vector<4x128xf32>
    %275 = tpu.matmul %273, %274, %cst_102 {dimension_numbers = #tpu.dot_dimension_numbers<[1], [0], [0], [1], [0, 0, 1, 1], [], []>} : vector<4x20xf32>, vector<20x128xf32>, vector<4x128xf32> -> vector<4x128xf32>
    %c8 = arith.constant 8 : index
    %c0_103 = arith.constant 0 : index
    %276 = vector.load %arg8[%c8, %c0_103] : memref<152x128xf32, #tpu.memory_space<vmem>>, vector<1x128xf32>
    %277 = vector.broadcast %276 : vector<1x128xf32> to vector<4x128xf32>
    %278 = arith.addf %275, %277 : vector<4x128xf32>
    %cst_104 = arith.constant 0.000000e+00 : f32
    %279 = vector.broadcast %cst_104 : f32 to vector<4x128xf32>
    %280 = arith.maximumf %278, %279 : vector<4x128xf32>
    %c0_105 = arith.constant 0 : index
    %c0_106 = arith.constant 0 : index
    %281 = vector.load %arg4[%c0_105, %c0_106] : memref<52x12xf32, #tpu.memory_space<vmem>>, vector<52x12xf32>
    %282 = vector.extract_strided_slice %281 {offsets = [0, 0], sizes = [12, 12], strides = [1, 1]} : vector<52x12xf32> to vector<12x12xf32>
    %283 = vector.extract_strided_slice %281 {offsets = [12, 0], sizes = [12, 12], strides = [1, 1]} : vector<52x12xf32> to vector<12x12xf32>
    %284 = vector.extract_strided_slice %281 {offsets = [24, 0], sizes = [4, 12], strides = [1, 1]} : vector<52x12xf32> to vector<4x12xf32>
    %285 = vector.extract_strided_slice %281 {offsets = [28, 0], sizes = [12, 1], strides = [1, 1]} : vector<52x12xf32> to vector<12x1xf32>
    %cst_107 = arith.constant 5.000000e-01 : f32
    %286 = vector.broadcast %cst_107 : f32 to vector<12x1xf32>
    %287 = arith.cmpf ogt, %285, %286 : vector<12x1xf32>
    %288 = vector.extract_strided_slice %281 {offsets = [40, 0], sizes = [12, 1], strides = [1, 1]} : vector<52x12xf32> to vector<12x1xf32>
    %cst_108 = arith.constant 5.000000e-01 : f32
    %289 = vector.broadcast %cst_108 : f32 to vector<12x1xf32>
    %290 = arith.cmpf ogt, %288, %289 : vector<12x1xf32>
    %cst_109 = arith.constant 1.000000e+00 : f32
    %291 = vector.broadcast %cst_109 : f32 to vector<12x12xf32>
    %292 = arith.subf %282, %291 : vector<12x12xf32>
    %cst_110 = arith.constant 1.000000e+30 : f32
    %293 = vector.broadcast %cst_110 : f32 to vector<12x12xf32>
    %294 = arith.mulf %292, %293 : vector<12x12xf32>
    %cst_111 = arith.constant 1.000000e+00 : f32
    %295 = vector.broadcast %cst_111 : f32 to vector<12x12xf32>
    %296 = arith.subf %283, %295 : vector<12x12xf32>
    %cst_112 = arith.constant 1.000000e+30 : f32
    %297 = vector.broadcast %cst_112 : f32 to vector<12x12xf32>
    %298 = arith.mulf %296, %297 : vector<12x12xf32>
    %c0_113 = arith.constant 0 : index
    %c0_114 = arith.constant 0 : index
    %299 = vector.load %arg2[%c0_113, %c0_114] : memref<12x10xf32, #tpu.memory_space<vmem>>, vector<12x10xf32>
    %cst_115 = arith.constant dense<0.000000e+00> : vector<10xf32>
    %300 = vector.multi_reduction <add>, %299, %cst_115 [0] : vector<12x10xf32> to vector<10xf32>
    %301 = vector.shape_cast %300 : vector<10xf32> to vector<1x10xf32>
    %cst_116 = arith.constant 1.200000e+01 : f32
    %302 = vector.broadcast %cst_116 : f32 to vector<1x10xf32>
    %303 = arith.divf %301, %302 : vector<1x10xf32>
    %304 = vector.broadcast %303 : vector<1x10xf32> to vector<12x10xf32>
    %305 = arith.subf %299, %304 : vector<12x10xf32>
    %306 = arith.mulf %305, %305 : vector<12x10xf32>
    %cst_117 = arith.constant dense<0.000000e+00> : vector<10xf32>
    %307 = vector.multi_reduction <add>, %306, %cst_117 [0] : vector<12x10xf32> to vector<10xf32>
    %308 = vector.shape_cast %307 : vector<10xf32> to vector<1x10xf32>
    %cst_118 = arith.constant 1.200000e+01 : f32
    %309 = vector.broadcast %cst_118 : f32 to vector<1x10xf32>
    %310 = arith.divf %308, %309 : vector<1x10xf32>
    %cst_119 = arith.constant 9.99999974E-6 : f32
    %311 = vector.broadcast %cst_119 : f32 to vector<1x10xf32>
    %312 = arith.addf %310, %311 : vector<1x10xf32>
    %313 = math.rsqrt %312 : vector<1x10xf32>
    %314 = vector.broadcast %313 : vector<1x10xf32> to vector<12x10xf32>
    %315 = arith.mulf %305, %314 : vector<12x10xf32>
    %c64 = arith.constant 64 : index
    %c0_120 = arith.constant 0 : index
    %316 = vector.load %arg8[%c64, %c0_120] : memref<152x128xf32, #tpu.memory_space<vmem>>, vector<10x128xf32>
    %cst_121 = arith.constant dense<0.000000e+00> : vector<12x128xf32>
    %317 = tpu.matmul %315, %316, %cst_121 {dimension_numbers = #tpu.dot_dimension_numbers<[1], [0], [0], [1], [0, 0, 1, 1], [], []>} : vector<12x10xf32>, vector<10x128xf32>, vector<12x128xf32> -> vector<12x128xf32>
    %c9 = arith.constant 9 : index
    %c0_122 = arith.constant 0 : index
    %318 = vector.load %arg8[%c9, %c0_122] : memref<152x128xf32, #tpu.memory_space<vmem>>, vector<1x128xf32>
    %319 = vector.broadcast %318 : vector<1x128xf32> to vector<12x128xf32>
    %320 = arith.addf %317, %319 : vector<12x128xf32>
    %cst_123 = arith.constant 0.000000e+00 : f32
    %321 = vector.broadcast %cst_123 : f32 to vector<12x128xf32>
    %322 = arith.maximumf %320, %321 : vector<12x128xf32>
    %c0_124 = arith.constant 0 : index
    %c0_125 = arith.constant 0 : index
    %c0_126 = arith.constant 0 : index
    %323 = vector.load %arg7[%c0_124, %c0_125, %c0_126] : memref<6x24x512xf32, #tpu.memory_space<vmem>>, vector<1x24x512xf32>
    %324 = vector.shape_cast %323 : vector<1x24x512xf32> to vector<24x512xf32>
    %325 = vector.extract_strided_slice %322 {offsets = [0, 0], sizes = [12, 20], strides = [1, 1]} : vector<12x128xf32> to vector<12x20xf32>
    %326 = vector.extract_strided_slice %324 {offsets = [0, 0], sizes = [20, 512], strides = [1, 1]} : vector<24x512xf32> to vector<20x512xf32>
    %cst_127 = arith.constant dense<0.000000e+00> : vector<12x512xf32>
    %327 = tpu.matmul %325, %326, %cst_127 {dimension_numbers = #tpu.dot_dimension_numbers<[1], [0], [0], [1], [0, 0, 1, 1], [], []>} : vector<12x20xf32>, vector<20x512xf32>, vector<12x512xf32> -> vector<12x512xf32>
    %328 = vector.extract_strided_slice %324 {offsets = [20, 0], sizes = [1, 512], strides = [1, 1]} : vector<24x512xf32> to vector<1x512xf32>
    %329 = vector.broadcast %328 : vector<1x512xf32> to vector<12x512xf32>
    %330 = arith.addf %327, %329 : vector<12x512xf32>
    %331 = vector.extract_strided_slice %330 {offsets = [0, 0], sizes = [12, 128], strides = [1, 1]} : vector<12x512xf32> to vector<12x128xf32>
    %332 = vector.extract_strided_slice %330 {offsets = [0, 128], sizes = [12, 128], strides = [1, 1]} : vector<12x512xf32> to vector<12x128xf32>
    %333 = vector.extract_strided_slice %330 {offsets = [0, 256], sizes = [12, 128], strides = [1, 1]} : vector<12x512xf32> to vector<12x128xf32>
    %334 = vector.extract_strided_slice %330 {offsets = [0, 384], sizes = [12, 128], strides = [1, 1]} : vector<12x512xf32> to vector<12x128xf32>
    %cst_128 = arith.constant dense<0.000000e+00> : vector<12x12xf32>
    %335 = tpu.matmul %331, %332, %cst_128 {dimension_numbers = #tpu.dot_dimension_numbers<[1], [1], [0], [0], [0, 0, 1, 0], [], []>} : vector<12x128xf32>, vector<12x128xf32>, vector<12x12xf32> -> vector<12x12xf32>
    %cst_129 = arith.constant 0.223606795 : f32
    %336 = vector.broadcast %cst_129 : f32 to vector<12x12xf32>
    %337 = arith.mulf %335, %336 : vector<12x12xf32>
    %338 = arith.addf %337, %294 : vector<12x12xf32>
    %cst_130 = arith.constant dense<0xFF800000> : vector<12xf32>
    %339 = vector.multi_reduction <maximumf>, %338, %cst_130 [1] : vector<12x12xf32> to vector<12xf32>
    %340 = vector.shape_cast %339 : vector<12xf32> to vector<12x1xf32>
    %341 = vector.broadcast %340 : vector<12x1xf32> to vector<12x12xf32>
    %342 = arith.subf %338, %341 : vector<12x12xf32>
    %343 = math.exp %342 : vector<12x12xf32>
    %344 = arith.mulf %343, %282 : vector<12x12xf32>
    %cst_131 = arith.constant dense<0.000000e+00> : vector<12xf32>
    %345 = vector.multi_reduction <add>, %344, %cst_131 [1] : vector<12x12xf32> to vector<12xf32>
    %346 = vector.shape_cast %345 : vector<12xf32> to vector<12x1xf32>
    %cst_132 = arith.constant 9.99999997E-7 : f32
    %347 = vector.broadcast %cst_132 : f32 to vector<12x1xf32>
    %348 = arith.maximumf %346, %347 : vector<12x1xf32>
    %349 = tpu.reciprocal %348 {approx = true} : vector<12x1xf32> -> vector<12x1xf32>
    %350 = vector.broadcast %349 : vector<12x1xf32> to vector<12x12xf32>
    %351 = arith.mulf %344, %350 : vector<12x12xf32>
    %cst_133 = arith.constant dense<0.000000e+00> : vector<12x128xf32>
    %352 = tpu.matmul %351, %333, %cst_133 {dimension_numbers = #tpu.dot_dimension_numbers<[1], [0], [0], [1], [0, 0, 1, 1], [], []>} : vector<12x12xf32>, vector<12x128xf32>, vector<12x128xf32> -> vector<12x128xf32>
    %353 = arith.addf %352, %334 : vector<12x128xf32>
    %354 = vector.shape_cast %287 : vector<12x1xi1> to vector<12x1xi1>
    %355 = vector.broadcast %354 : vector<12x1xi1> to vector<12x128xi1>
    %356 = arith.select %355, %353, %322 : vector<12x128xi1>, vector<12x128xf32>
    %c1_134 = arith.constant 1 : index
    %c0_135 = arith.constant 0 : index
    %c0_136 = arith.constant 0 : index
    %357 = vector.load %arg7[%c1_134, %c0_135, %c0_136] : memref<6x24x512xf32, #tpu.memory_space<vmem>>, vector<1x24x512xf32>
    %358 = vector.shape_cast %357 : vector<1x24x512xf32> to vector<24x512xf32>
    %359 = vector.extract_strided_slice %356 {offsets = [0, 0], sizes = [12, 20], strides = [1, 1]} : vector<12x128xf32> to vector<12x20xf32>
    %360 = vector.extract_strided_slice %358 {offsets = [0, 0], sizes = [20, 512], strides = [1, 1]} : vector<24x512xf32> to vector<20x512xf32>
    %cst_137 = arith.constant dense<0.000000e+00> : vector<12x512xf32>
    %361 = tpu.matmul %359, %360, %cst_137 {dimension_numbers = #tpu.dot_dimension_numbers<[1], [0], [0], [1], [0, 0, 1, 1], [], []>} : vector<12x20xf32>, vector<20x512xf32>, vector<12x512xf32> -> vector<12x512xf32>
    %362 = vector.extract_strided_slice %358 {offsets = [20, 0], sizes = [1, 512], strides = [1, 1]} : vector<24x512xf32> to vector<1x512xf32>
    %363 = vector.broadcast %362 : vector<1x512xf32> to vector<12x512xf32>
    %364 = arith.addf %361, %363 : vector<12x512xf32>
    %365 = vector.extract_strided_slice %364 {offsets = [0, 0], sizes = [12, 128], strides = [1, 1]} : vector<12x512xf32> to vector<12x128xf32>
    %366 = vector.extract_strided_slice %364 {offsets = [0, 128], sizes = [12, 128], strides = [1, 1]} : vector<12x512xf32> to vector<12x128xf32>
    %367 = vector.extract_strided_slice %364 {offsets = [0, 256], sizes = [12, 128], strides = [1, 1]} : vector<12x512xf32> to vector<12x128xf32>
    %368 = vector.extract_strided_slice %364 {offsets = [0, 384], sizes = [12, 128], strides = [1, 1]} : vector<12x512xf32> to vector<12x128xf32>
    %cst_138 = arith.constant dense<0.000000e+00> : vector<12x12xf32>
    %369 = tpu.matmul %365, %366, %cst_138 {dimension_numbers = #tpu.dot_dimension_numbers<[1], [1], [0], [0], [0, 0, 1, 0], [], []>} : vector<12x128xf32>, vector<12x128xf32>, vector<12x12xf32> -> vector<12x12xf32>
    %cst_139 = arith.constant 0.223606795 : f32
    %370 = vector.broadcast %cst_139 : f32 to vector<12x12xf32>
    %371 = arith.mulf %369, %370 : vector<12x12xf32>
    %372 = arith.addf %371, %298 : vector<12x12xf32>
    %cst_140 = arith.constant dense<0xFF800000> : vector<12xf32>
    %373 = vector.multi_reduction <maximumf>, %372, %cst_140 [1] : vector<12x12xf32> to vector<12xf32>
    %374 = vector.shape_cast %373 : vector<12xf32> to vector<12x1xf32>
    %375 = vector.broadcast %374 : vector<12x1xf32> to vector<12x12xf32>
    %376 = arith.subf %372, %375 : vector<12x12xf32>
    %377 = math.exp %376 : vector<12x12xf32>
    %378 = arith.mulf %377, %283 : vector<12x12xf32>
    %cst_141 = arith.constant dense<0.000000e+00> : vector<12xf32>
    %379 = vector.multi_reduction <add>, %378, %cst_141 [1] : vector<12x12xf32> to vector<12xf32>
    %380 = vector.shape_cast %379 : vector<12xf32> to vector<12x1xf32>
    %cst_142 = arith.constant 9.99999997E-7 : f32
    %381 = vector.broadcast %cst_142 : f32 to vector<12x1xf32>
    %382 = arith.maximumf %380, %381 : vector<12x1xf32>
    %383 = tpu.reciprocal %382 {approx = true} : vector<12x1xf32> -> vector<12x1xf32>
    %384 = vector.broadcast %383 : vector<12x1xf32> to vector<12x12xf32>
    %385 = arith.mulf %378, %384 : vector<12x12xf32>
    %cst_143 = arith.constant dense<0.000000e+00> : vector<12x128xf32>
    %386 = tpu.matmul %385, %367, %cst_143 {dimension_numbers = #tpu.dot_dimension_numbers<[1], [0], [0], [1], [0, 0, 1, 1], [], []>} : vector<12x12xf32>, vector<12x128xf32>, vector<12x128xf32> -> vector<12x128xf32>
    %387 = arith.addf %386, %368 : vector<12x128xf32>
    %388 = vector.shape_cast %290 : vector<12x1xi1> to vector<12x1xi1>
    %389 = vector.broadcast %388 : vector<12x1xi1> to vector<12x128xi1>
    %390 = arith.select %389, %387, %356 : vector<12x128xi1>, vector<12x128xf32>
    %c2_144 = arith.constant 2 : index
    %c0_145 = arith.constant 0 : index
    %c0_146 = arith.constant 0 : index
    %391 = vector.load %arg7[%c2_144, %c0_145, %c0_146] : memref<6x24x512xf32, #tpu.memory_space<vmem>>, vector<1x24x512xf32>
    %392 = vector.shape_cast %391 : vector<1x24x512xf32> to vector<24x512xf32>
    %393 = vector.extract_strided_slice %390 {offsets = [0, 0], sizes = [12, 20], strides = [1, 1]} : vector<12x128xf32> to vector<12x20xf32>
    %394 = vector.extract_strided_slice %392 {offsets = [0, 0], sizes = [20, 512], strides = [1, 1]} : vector<24x512xf32> to vector<20x512xf32>
    %cst_147 = arith.constant dense<0.000000e+00> : vector<12x512xf32>
    %395 = tpu.matmul %393, %394, %cst_147 {dimension_numbers = #tpu.dot_dimension_numbers<[1], [0], [0], [1], [0, 0, 1, 1], [], []>} : vector<12x20xf32>, vector<20x512xf32>, vector<12x512xf32> -> vector<12x512xf32>
    %396 = vector.extract_strided_slice %392 {offsets = [20, 0], sizes = [1, 512], strides = [1, 1]} : vector<24x512xf32> to vector<1x512xf32>
    %397 = vector.broadcast %396 : vector<1x512xf32> to vector<12x512xf32>
    %398 = arith.addf %395, %397 : vector<12x512xf32>
    %399 = vector.extract_strided_slice %398 {offsets = [0, 0], sizes = [12, 128], strides = [1, 1]} : vector<12x512xf32> to vector<12x128xf32>
    %400 = vector.extract_strided_slice %398 {offsets = [0, 128], sizes = [12, 128], strides = [1, 1]} : vector<12x512xf32> to vector<12x128xf32>
    %401 = vector.extract_strided_slice %398 {offsets = [0, 256], sizes = [12, 128], strides = [1, 1]} : vector<12x512xf32> to vector<12x128xf32>
    %402 = vector.extract_strided_slice %398 {offsets = [0, 384], sizes = [12, 128], strides = [1, 1]} : vector<12x512xf32> to vector<12x128xf32>
    %cst_148 = arith.constant dense<0.000000e+00> : vector<12x12xf32>
    %403 = tpu.matmul %399, %400, %cst_148 {dimension_numbers = #tpu.dot_dimension_numbers<[1], [1], [0], [0], [0, 0, 1, 0], [], []>} : vector<12x128xf32>, vector<12x128xf32>, vector<12x12xf32> -> vector<12x12xf32>
    %cst_149 = arith.constant 0.223606795 : f32
    %404 = vector.broadcast %cst_149 : f32 to vector<12x12xf32>
    %405 = arith.mulf %403, %404 : vector<12x12xf32>
    %406 = arith.addf %405, %294 : vector<12x12xf32>
    %cst_150 = arith.constant dense<0xFF800000> : vector<12xf32>
    %407 = vector.multi_reduction <maximumf>, %406, %cst_150 [1] : vector<12x12xf32> to vector<12xf32>
    %408 = vector.shape_cast %407 : vector<12xf32> to vector<12x1xf32>
    %409 = vector.broadcast %408 : vector<12x1xf32> to vector<12x12xf32>
    %410 = arith.subf %406, %409 : vector<12x12xf32>
    %411 = math.exp %410 : vector<12x12xf32>
    %412 = arith.mulf %411, %282 : vector<12x12xf32>
    %cst_151 = arith.constant dense<0.000000e+00> : vector<12xf32>
    %413 = vector.multi_reduction <add>, %412, %cst_151 [1] : vector<12x12xf32> to vector<12xf32>
    %414 = vector.shape_cast %413 : vector<12xf32> to vector<12x1xf32>
    %cst_152 = arith.constant 9.99999997E-7 : f32
    %415 = vector.broadcast %cst_152 : f32 to vector<12x1xf32>
    %416 = arith.maximumf %414, %415 : vector<12x1xf32>
    %417 = tpu.reciprocal %416 {approx = true} : vector<12x1xf32> -> vector<12x1xf32>
    %418 = vector.broadcast %417 : vector<12x1xf32> to vector<12x12xf32>
    %419 = arith.mulf %412, %418 : vector<12x12xf32>
    %cst_153 = arith.constant dense<0.000000e+00> : vector<12x128xf32>
    %420 = tpu.matmul %419, %401, %cst_153 {dimension_numbers = #tpu.dot_dimension_numbers<[1], [0], [0], [1], [0, 0, 1, 1], [], []>} : vector<12x12xf32>, vector<12x128xf32>, vector<12x128xf32> -> vector<12x128xf32>
    %421 = arith.addf %420, %402 : vector<12x128xf32>
    %422 = vector.shape_cast %287 : vector<12x1xi1> to vector<12x1xi1>
    %423 = vector.broadcast %422 : vector<12x1xi1> to vector<12x128xi1>
    %424 = arith.select %423, %421, %390 : vector<12x128xi1>, vector<12x128xf32>
    %c3_154 = arith.constant 3 : index
    %c0_155 = arith.constant 0 : index
    %c0_156 = arith.constant 0 : index
    %425 = vector.load %arg7[%c3_154, %c0_155, %c0_156] : memref<6x24x512xf32, #tpu.memory_space<vmem>>, vector<1x24x512xf32>
    %426 = vector.shape_cast %425 : vector<1x24x512xf32> to vector<24x512xf32>
    %427 = vector.extract_strided_slice %424 {offsets = [0, 0], sizes = [12, 20], strides = [1, 1]} : vector<12x128xf32> to vector<12x20xf32>
    %428 = vector.extract_strided_slice %426 {offsets = [0, 0], sizes = [20, 512], strides = [1, 1]} : vector<24x512xf32> to vector<20x512xf32>
    %cst_157 = arith.constant dense<0.000000e+00> : vector<12x512xf32>
    %429 = tpu.matmul %427, %428, %cst_157 {dimension_numbers = #tpu.dot_dimension_numbers<[1], [0], [0], [1], [0, 0, 1, 1], [], []>} : vector<12x20xf32>, vector<20x512xf32>, vector<12x512xf32> -> vector<12x512xf32>
    %430 = vector.extract_strided_slice %426 {offsets = [20, 0], sizes = [1, 512], strides = [1, 1]} : vector<24x512xf32> to vector<1x512xf32>
    %431 = vector.broadcast %430 : vector<1x512xf32> to vector<12x512xf32>
    %432 = arith.addf %429, %431 : vector<12x512xf32>
    %433 = vector.extract_strided_slice %432 {offsets = [0, 0], sizes = [12, 128], strides = [1, 1]} : vector<12x512xf32> to vector<12x128xf32>
    %434 = vector.extract_strided_slice %432 {offsets = [0, 128], sizes = [12, 128], strides = [1, 1]} : vector<12x512xf32> to vector<12x128xf32>
    %435 = vector.extract_strided_slice %432 {offsets = [0, 256], sizes = [12, 128], strides = [1, 1]} : vector<12x512xf32> to vector<12x128xf32>
    %436 = vector.extract_strided_slice %432 {offsets = [0, 384], sizes = [12, 128], strides = [1, 1]} : vector<12x512xf32> to vector<12x128xf32>
    %cst_158 = arith.constant dense<0.000000e+00> : vector<12x12xf32>
    %437 = tpu.matmul %433, %434, %cst_158 {dimension_numbers = #tpu.dot_dimension_numbers<[1], [1], [0], [0], [0, 0, 1, 0], [], []>} : vector<12x128xf32>, vector<12x128xf32>, vector<12x12xf32> -> vector<12x12xf32>
    %cst_159 = arith.constant 0.223606795 : f32
    %438 = vector.broadcast %cst_159 : f32 to vector<12x12xf32>
    %439 = arith.mulf %437, %438 : vector<12x12xf32>
    %440 = arith.addf %439, %298 : vector<12x12xf32>
    %cst_160 = arith.constant dense<0xFF800000> : vector<12xf32>
    %441 = vector.multi_reduction <maximumf>, %440, %cst_160 [1] : vector<12x12xf32> to vector<12xf32>
    %442 = vector.shape_cast %441 : vector<12xf32> to vector<12x1xf32>
    %443 = vector.broadcast %442 : vector<12x1xf32> to vector<12x12xf32>
    %444 = arith.subf %440, %443 : vector<12x12xf32>
    %445 = math.exp %444 : vector<12x12xf32>
    %446 = arith.mulf %445, %283 : vector<12x12xf32>
    %cst_161 = arith.constant dense<0.000000e+00> : vector<12xf32>
    %447 = vector.multi_reduction <add>, %446, %cst_161 [1] : vector<12x12xf32> to vector<12xf32>
    %448 = vector.shape_cast %447 : vector<12xf32> to vector<12x1xf32>
    %cst_162 = arith.constant 9.99999997E-7 : f32
    %449 = vector.broadcast %cst_162 : f32 to vector<12x1xf32>
    %450 = arith.maximumf %448, %449 : vector<12x1xf32>
    %451 = tpu.reciprocal %450 {approx = true} : vector<12x1xf32> -> vector<12x1xf32>
    %452 = vector.broadcast %451 : vector<12x1xf32> to vector<12x12xf32>
    %453 = arith.mulf %446, %452 : vector<12x12xf32>
    %cst_163 = arith.constant dense<0.000000e+00> : vector<12x128xf32>
    %454 = tpu.matmul %453, %435, %cst_163 {dimension_numbers = #tpu.dot_dimension_numbers<[1], [0], [0], [1], [0, 0, 1, 1], [], []>} : vector<12x12xf32>, vector<12x128xf32>, vector<12x128xf32> -> vector<12x128xf32>
    %455 = arith.addf %454, %436 : vector<12x128xf32>
    %456 = vector.shape_cast %290 : vector<12x1xi1> to vector<12x1xi1>
    %457 = vector.broadcast %456 : vector<12x1xi1> to vector<12x128xi1>
    %458 = arith.select %457, %455, %424 : vector<12x128xi1>, vector<12x128xf32>
    %c4_164 = arith.constant 4 : index
    %c0_165 = arith.constant 0 : index
    %c0_166 = arith.constant 0 : index
    %459 = vector.load %arg7[%c4_164, %c0_165, %c0_166] : memref<6x24x512xf32, #tpu.memory_space<vmem>>, vector<1x24x512xf32>
    %460 = vector.shape_cast %459 : vector<1x24x512xf32> to vector<24x512xf32>
    %461 = vector.extract_strided_slice %458 {offsets = [0, 0], sizes = [12, 20], strides = [1, 1]} : vector<12x128xf32> to vector<12x20xf32>
    %462 = vector.extract_strided_slice %460 {offsets = [0, 0], sizes = [20, 512], strides = [1, 1]} : vector<24x512xf32> to vector<20x512xf32>
    %cst_167 = arith.constant dense<0.000000e+00> : vector<12x512xf32>
    %463 = tpu.matmul %461, %462, %cst_167 {dimension_numbers = #tpu.dot_dimension_numbers<[1], [0], [0], [1], [0, 0, 1, 1], [], []>} : vector<12x20xf32>, vector<20x512xf32>, vector<12x512xf32> -> vector<12x512xf32>
    %464 = vector.extract_strided_slice %460 {offsets = [20, 0], sizes = [1, 512], strides = [1, 1]} : vector<24x512xf32> to vector<1x512xf32>
    %465 = vector.broadcast %464 : vector<1x512xf32> to vector<12x512xf32>
    %466 = arith.addf %463, %465 : vector<12x512xf32>
    %467 = vector.extract_strided_slice %466 {offsets = [0, 0], sizes = [12, 128], strides = [1, 1]} : vector<12x512xf32> to vector<12x128xf32>
    %468 = vector.extract_strided_slice %466 {offsets = [0, 128], sizes = [12, 128], strides = [1, 1]} : vector<12x512xf32> to vector<12x128xf32>
    %469 = vector.extract_strided_slice %466 {offsets = [0, 256], sizes = [12, 128], strides = [1, 1]} : vector<12x512xf32> to vector<12x128xf32>
    %470 = vector.extract_strided_slice %466 {offsets = [0, 384], sizes = [12, 128], strides = [1, 1]} : vector<12x512xf32> to vector<12x128xf32>
    %cst_168 = arith.constant dense<0.000000e+00> : vector<12x12xf32>
    %471 = tpu.matmul %467, %468, %cst_168 {dimension_numbers = #tpu.dot_dimension_numbers<[1], [1], [0], [0], [0, 0, 1, 0], [], []>} : vector<12x128xf32>, vector<12x128xf32>, vector<12x12xf32> -> vector<12x12xf32>
    %cst_169 = arith.constant 0.223606795 : f32
    %472 = vector.broadcast %cst_169 : f32 to vector<12x12xf32>
    %473 = arith.mulf %471, %472 : vector<12x12xf32>
    %474 = arith.addf %473, %294 : vector<12x12xf32>
    %cst_170 = arith.constant dense<0xFF800000> : vector<12xf32>
    %475 = vector.multi_reduction <maximumf>, %474, %cst_170 [1] : vector<12x12xf32> to vector<12xf32>
    %476 = vector.shape_cast %475 : vector<12xf32> to vector<12x1xf32>
    %477 = vector.broadcast %476 : vector<12x1xf32> to vector<12x12xf32>
    %478 = arith.subf %474, %477 : vector<12x12xf32>
    %479 = math.exp %478 : vector<12x12xf32>
    %480 = arith.mulf %479, %282 : vector<12x12xf32>
    %cst_171 = arith.constant dense<0.000000e+00> : vector<12xf32>
    %481 = vector.multi_reduction <add>, %480, %cst_171 [1] : vector<12x12xf32> to vector<12xf32>
    %482 = vector.shape_cast %481 : vector<12xf32> to vector<12x1xf32>
    %cst_172 = arith.constant 9.99999997E-7 : f32
    %483 = vector.broadcast %cst_172 : f32 to vector<12x1xf32>
    %484 = arith.maximumf %482, %483 : vector<12x1xf32>
    %485 = tpu.reciprocal %484 {approx = true} : vector<12x1xf32> -> vector<12x1xf32>
    %486 = vector.broadcast %485 : vector<12x1xf32> to vector<12x12xf32>
    %487 = arith.mulf %480, %486 : vector<12x12xf32>
    %cst_173 = arith.constant dense<0.000000e+00> : vector<12x128xf32>
    %488 = tpu.matmul %487, %469, %cst_173 {dimension_numbers = #tpu.dot_dimension_numbers<[1], [0], [0], [1], [0, 0, 1, 1], [], []>} : vector<12x12xf32>, vector<12x128xf32>, vector<12x128xf32> -> vector<12x128xf32>
    %489 = arith.addf %488, %470 : vector<12x128xf32>
    %490 = vector.shape_cast %287 : vector<12x1xi1> to vector<12x1xi1>
    %491 = vector.broadcast %490 : vector<12x1xi1> to vector<12x128xi1>
    %492 = arith.select %491, %489, %458 : vector<12x128xi1>, vector<12x128xf32>
    %c5_174 = arith.constant 5 : index
    %c0_175 = arith.constant 0 : index
    %c0_176 = arith.constant 0 : index
    %493 = vector.load %arg7[%c5_174, %c0_175, %c0_176] : memref<6x24x512xf32, #tpu.memory_space<vmem>>, vector<1x24x512xf32>
    %494 = vector.shape_cast %493 : vector<1x24x512xf32> to vector<24x512xf32>
    %495 = vector.extract_strided_slice %492 {offsets = [0, 0], sizes = [12, 20], strides = [1, 1]} : vector<12x128xf32> to vector<12x20xf32>
    %496 = vector.extract_strided_slice %494 {offsets = [0, 0], sizes = [20, 512], strides = [1, 1]} : vector<24x512xf32> to vector<20x512xf32>
    %cst_177 = arith.constant dense<0.000000e+00> : vector<12x512xf32>
    %497 = tpu.matmul %495, %496, %cst_177 {dimension_numbers = #tpu.dot_dimension_numbers<[1], [0], [0], [1], [0, 0, 1, 1], [], []>} : vector<12x20xf32>, vector<20x512xf32>, vector<12x512xf32> -> vector<12x512xf32>
    %498 = vector.extract_strided_slice %494 {offsets = [20, 0], sizes = [1, 512], strides = [1, 1]} : vector<24x512xf32> to vector<1x512xf32>
    %499 = vector.broadcast %498 : vector<1x512xf32> to vector<12x512xf32>
    %500 = arith.addf %497, %499 : vector<12x512xf32>
    %501 = vector.extract_strided_slice %500 {offsets = [0, 0], sizes = [12, 128], strides = [1, 1]} : vector<12x512xf32> to vector<12x128xf32>
    %502 = vector.extract_strided_slice %500 {offsets = [0, 128], sizes = [12, 128], strides = [1, 1]} : vector<12x512xf32> to vector<12x128xf32>
    %503 = vector.extract_strided_slice %500 {offsets = [0, 256], sizes = [12, 128], strides = [1, 1]} : vector<12x512xf32> to vector<12x128xf32>
    %504 = vector.extract_strided_slice %500 {offsets = [0, 384], sizes = [12, 128], strides = [1, 1]} : vector<12x512xf32> to vector<12x128xf32>
    %cst_178 = arith.constant dense<0.000000e+00> : vector<12x12xf32>
    %505 = tpu.matmul %501, %502, %cst_178 {dimension_numbers = #tpu.dot_dimension_numbers<[1], [1], [0], [0], [0, 0, 1, 0], [], []>} : vector<12x128xf32>, vector<12x128xf32>, vector<12x12xf32> -> vector<12x12xf32>
    %cst_179 = arith.constant 0.223606795 : f32
    %506 = vector.broadcast %cst_179 : f32 to vector<12x12xf32>
    %507 = arith.mulf %505, %506 : vector<12x12xf32>
    %508 = arith.addf %507, %298 : vector<12x12xf32>
    %cst_180 = arith.constant dense<0xFF800000> : vector<12xf32>
    %509 = vector.multi_reduction <maximumf>, %508, %cst_180 [1] : vector<12x12xf32> to vector<12xf32>
    %510 = vector.shape_cast %509 : vector<12xf32> to vector<12x1xf32>
    %511 = vector.broadcast %510 : vector<12x1xf32> to vector<12x12xf32>
    %512 = arith.subf %508, %511 : vector<12x12xf32>
    %513 = math.exp %512 : vector<12x12xf32>
    %514 = arith.mulf %513, %283 : vector<12x12xf32>
    %cst_181 = arith.constant dense<0.000000e+00> : vector<12xf32>
    %515 = vector.multi_reduction <add>, %514, %cst_181 [1] : vector<12x12xf32> to vector<12xf32>
    %516 = vector.shape_cast %515 : vector<12xf32> to vector<12x1xf32>
    %cst_182 = arith.constant 9.99999997E-7 : f32
    %517 = vector.broadcast %cst_182 : f32 to vector<12x1xf32>
    %518 = arith.maximumf %516, %517 : vector<12x1xf32>
    %519 = tpu.reciprocal %518 {approx = true} : vector<12x1xf32> -> vector<12x1xf32>
    %520 = vector.broadcast %519 : vector<12x1xf32> to vector<12x12xf32>
    %521 = arith.mulf %514, %520 : vector<12x12xf32>
    %cst_183 = arith.constant dense<0.000000e+00> : vector<12x128xf32>
    %522 = tpu.matmul %521, %503, %cst_183 {dimension_numbers = #tpu.dot_dimension_numbers<[1], [0], [0], [1], [0, 0, 1, 1], [], []>} : vector<12x12xf32>, vector<12x128xf32>, vector<12x128xf32> -> vector<12x128xf32>
    %523 = arith.addf %522, %504 : vector<12x128xf32>
    %524 = vector.shape_cast %290 : vector<12x1xi1> to vector<12x1xi1>
    %525 = vector.broadcast %524 : vector<12x1xi1> to vector<12x128xi1>
    %526 = arith.select %525, %523, %492 : vector<12x128xi1>, vector<12x128xf32>
    %cst_184 = arith.constant dense<0.000000e+00> : vector<4x128xf32>
    %527 = tpu.matmul %284, %526, %cst_184 {dimension_numbers = #tpu.dot_dimension_numbers<[1], [0], [0], [1], [0, 0, 1, 1], [], []>} : vector<4x12xf32>, vector<12x128xf32>, vector<4x128xf32> -> vector<4x128xf32>
    %528 = vector.extract_strided_slice %527 {offsets = [0, 0], sizes = [4, 20], strides = [1, 1]} : vector<4x128xf32> to vector<4x20xf32>
    %c80 = arith.constant 80 : index
    %c0_185 = arith.constant 0 : index
    %529 = vector.load %arg8[%c80, %c0_185] : memref<152x128xf32, #tpu.memory_space<vmem>>, vector<20x128xf32>
    %cst_186 = arith.constant dense<0.000000e+00> : vector<4x128xf32>
    %530 = tpu.matmul %528, %529, %cst_186 {dimension_numbers = #tpu.dot_dimension_numbers<[1], [0], [0], [1], [0, 0, 1, 1], [], []>} : vector<4x20xf32>, vector<20x128xf32>, vector<4x128xf32> -> vector<4x128xf32>
    %c10 = arith.constant 10 : index
    %c0_187 = arith.constant 0 : index
    %531 = vector.load %arg8[%c10, %c0_187] : memref<152x128xf32, #tpu.memory_space<vmem>>, vector<1x128xf32>
    %532 = vector.broadcast %531 : vector<1x128xf32> to vector<4x128xf32>
    %533 = arith.addf %530, %532 : vector<4x128xf32>
    %cst_188 = arith.constant 0.000000e+00 : f32
    %534 = vector.broadcast %cst_188 : f32 to vector<4x128xf32>
    %535 = arith.maximumf %533, %534 : vector<4x128xf32>
    %536 = vector.extract_strided_slice %280 {offsets = [0, 0], sizes = [4, 20], strides = [1, 1]} : vector<4x128xf32> to vector<4x20xf32>
    %c104 = arith.constant 104 : index
    %c0_189 = arith.constant 0 : index
    %537 = vector.load %arg8[%c104, %c0_189] : memref<152x128xf32, #tpu.memory_space<vmem>>, vector<20x2xf32>
    %cst_190 = arith.constant dense<0.000000e+00> : vector<4x2xf32>
    %538 = tpu.matmul %536, %537, %cst_190 {dimension_numbers = #tpu.dot_dimension_numbers<[1], [0], [0], [1], [0, 0, 1, 1], [], []>} : vector<4x20xf32>, vector<20x2xf32>, vector<4x2xf32> -> vector<4x2xf32>
    %539 = vector.extract_strided_slice %535 {offsets = [0, 0], sizes = [4, 20], strides = [1, 1]} : vector<4x128xf32> to vector<4x20xf32>
    %c128 = arith.constant 128 : index
    %c0_191 = arith.constant 0 : index
    %540 = vector.load %arg8[%c128, %c0_191] : memref<152x128xf32, #tpu.memory_space<vmem>>, vector<20x2xf32>
    %cst_192 = arith.constant dense<0.000000e+00> : vector<4x2xf32>
    %541 = tpu.matmul %539, %540, %cst_192 {dimension_numbers = #tpu.dot_dimension_numbers<[1], [0], [0], [1], [0, 0, 1, 1], [], []>} : vector<4x20xf32>, vector<20x2xf32>, vector<4x2xf32> -> vector<4x2xf32>
    %542 = arith.addf %538, %541 : vector<4x2xf32>
    %c13 = arith.constant 13 : index
    %c0_193 = arith.constant 0 : index
    %543 = vector.load %arg8[%c13, %c0_193] : memref<152x128xf32, #tpu.memory_space<vmem>>, vector<1x2xf32>
    %544 = vector.broadcast %543 : vector<1x2xf32> to vector<4x2xf32>
    %545 = arith.addf %542, %544 : vector<4x2xf32>
    %c0_194 = arith.constant 0 : index
    %c0_195 = arith.constant 0 : index
    %546 = vector.load %arg9[%c0_194, %c0_195] : memref<4x2xf32, #tpu.memory_space<vmem>>, vector<4x2xf32>
    tpu.vector_store %arg9[%c0_194, %c0_195], %545 {strides = array<i32>} : memref<4x2xf32, #tpu.memory_space<vmem>>, vector<4x2xf32>,
    return
  }
}

</mosaic_0001>

<bundles_post_ra>
// kernel: comb2_forward.1
= control target key start
LH: loop header
LB: loop body
LE: loop exit
PB: predicated region body
PF: predicated region fallthrough
CT: control target
= control target key end

     0   :  { %14 = vsyncpa [#allocation3], 0  ;;  %s8540_s0 = inlined_call_operand.vmem [shape: f32[12,6], index: 0, kind: input, shape index: {}]   ;;  %s8541_s1 = inlined_call_operand.vmem [shape: f32[24,12], index: 1, kind: input, shape index: {}]   ;;  %s8542_s2 = inlined_call_operand.vmem [shape: f32[12,10], index: 2, kind: input, shape index: {}]   ;;  %s8543_s3 = inlined_call_operand.vmem [shape: f32[64,24], index: 3, kind: input, shape index: {}]   ;;  %s8544_s4 = inlined_call_operand.vmem [shape: f32[52,12], index: 4, kind: input, shape index: {}]   ;;  %s8545_s5 = inlined_call_operand.hbm [shape: f32[3,24,512], index: 5, kind: input, shape index: {}]   ;;  %s8546_s6 = inlined_call_operand.hbm [shape: f32[3,24,512], index: 6, kind: input, shape index: {}]   ;;  %s8547_s7 = inlined_call_operand.hbm [shape: f32[6,24,512], index: 7, kind: input, shape index: {}]   ;;  %s8548_s8 = inlined_call_operand.vmem [shape: f32[152,128], index: 8, kind: input, shape index: {}]   ;;  %s8549_s9 = inlined_call_operand.vmem [shape: f32[4,2], index: 9, kind: output, shape index: {}]  }
   0x1   :  { %15 = vsyncpa [#allocation5], 0  ;;  %s7261_s30 = smov [#allocation4]   ;;  %s7262_s11 = smov [#allocation2]  }
   0x2   :  { %s43_s10 = sshll.u32 %s7261_s30, 4  ;;  %s31_s12 = sshll.u32 %s7262_s11, 4  ;;  %s44_s10 = int_to_ptr.vmem [resolvable:$true] %s43_s10  ;;  %s7321_s12 = int_to_ptr.vmem [resolvable:$true] %s31_s12 }
   0x3   :  { %s7191_s15 = scalar_lea.hbm %s8546_s6, 4608 }
   0x4   :  { %p7192_p0 = scmp.ne.s32.totalorder %s8546_s6, %s7191_s15  ;;  %p7195_p1 = scmp.lt.u32.totalorder %s7191_s15, %s8546_s6 }
   0x6   :  { %p7197_p2 = pnand %p7195_p1, %p7192_p0 }
   0x8   :  { %7200 = shalt.err (!%p7197_p2)
}
   0x9   :  { %s7201_s20 = scalar_lea.vmem %s44_s10, 4608  ;;  %p7206_p4 = scmp.lt.s32.totalorder %s44_s10, %s44_s10 }
   0xa   :  { %p7202_p3 = scmp.ne.s32.totalorder %s44_s10, %s7201_s20  ;;  %p7207_p5 = scmp.lt.s32.totalorder %s7201_s20, %s7201_s20 }
   0xc   :  { %p7208_p6 = por %p7207_p5, %p7206_p4 }
   0xe   :  { %p7209_p7 = pnand %p7208_p6, %p7202_p3 }
  0x10   :  { %7212 = shalt.err (!%p7209_p7)
}
  0x11   :  { %s7263_s21 = smov 512   ;;  %s7264_s22 = smov 32  }
  0x12   :  { %49 = dma.hbm_to_vmem [thread:$0]  %s8546_s6, 4608, %s44_s10, [#allocation5], %s7263_s21, %s7263_s21, %s7264_s22  }
  0x13   :  { %s7213_s27 = scalar_lea.hbm %s8545_s5, 4608 }
  0x14   :  { %p7214_p8 = scmp.ne.s32.totalorder %s8545_s5, %s7213_s27  ;;  %p7217_p9 = scmp.lt.u32.totalorder %s7213_s27, %s8545_s5 }
  0x16   :  { %p7219_p10 = pnand %p7217_p9, %p7214_p8 }
  0x18   :  { %7222 = shalt.err (!%p7219_p10)
}
  0x19   :  { %s7223_s13 = scalar_lea.vmem %s7321_s12, 4608  ;;  %p7228_p12 = scmp.lt.s32.totalorder %s7321_s12, %s7321_s12 }
  0x1a   :  { %p7224_p11 = scmp.ne.s32.totalorder %s7321_s12, %s7223_s13  ;;  %p7229_p13 = scmp.lt.s32.totalorder %s7223_s13, %s7223_s13 }
  0x1c   :  { %p7230_p0 = por %p7229_p13, %p7228_p12 }
  0x1e   :  { %p7231_p1 = pnand %p7230_p0, %p7224_p11 }
  0x20   :  { %7234 = shalt.err (!%p7231_p1)
}
  0x21   :  { %37 = dma.hbm_to_vmem [thread:$0]  %s8545_s5, 4608, %s7321_s12, [#allocation3], %s7263_s21, %s7263_s21, %s7264_s22  }
  0x22   :  { %s7265_s14 = smov [#allocation6]   ;;  %s7235_s18 = scalar_lea.hbm %s8547_s7, 9216 }
  0x23   :  { %s55_s15 = sshll.u32 %s7265_s14, 4  ;;  %p7236_p2 = scmp.ne.s32.totalorder %s8547_s7, %s7235_s18  ;;  %s56_s15 = int_to_ptr.vmem [resolvable:$true] %s55_s15 }
  0x24   :  { %p7239_p3 = scmp.lt.u32.totalorder %s7235_s18, %s8547_s7 }
  0x26   :  { %p7241_p4 = pnand %p7239_p3, %p7236_p2 }
  0x28   :  { %7244 = shalt.err (!%p7241_p4)
}
  0x29   :  { %s7245_s25 = scalar_lea.vmem %s56_s15, 9216  ;;  %p7250_p6 = scmp.lt.s32.totalorder %s56_s15, %s56_s15 }
  0x2a   :  { %p7246_p5 = scmp.ne.s32.totalorder %s56_s15, %s7245_s25  ;;  %p7251_p7 = scmp.lt.s32.totalorder %s7245_s25, %s7245_s25 }
  0x2c   :  { %p7252_p8 = por %p7251_p7, %p7250_p6 }
  0x2e   :  { %p7253_p9 = pnand %p7252_p8, %p7246_p5 }
  0x30   :  { %7256 = shalt.err (!%p7253_p9)
}
  0x31   :  { %61 = dma.hbm_to_vmem [thread:$0]  %s8547_s7, 9216, %s56_s15, [#allocation5], %s7263_s21, %s7263_s21, %s7264_s22  }
  0x32   :  { %7257 = dma.done.wait [#allocation3], 4608  }
  0x33   :  { %7258 = vsyncadd [#allocation3], 4294962688 }
  0x34   :  { %7259 = dma.done.wait [#allocation5], 13824  }
  0x35   :  { %7260 = vsyncadd [#allocation5], 4294953472  ;;  %vm214_vm0 = vcmask 1045504   ;;  %vm92_vm1 = vcmask 48128   ;;  %vm94_vm2 = vcmask 44032   ;;  %v87_v1 = vld [vmem:[%s8540_s0] sm:$0xff]  ;;  %v106_v9 = vlaneseq }
  0x36   :  { %v202_v0 = vld [vmem:[%s8548_s8 + $0x10] sm:$0x3f]  ;;  %v88_v2 = vld [vmem:[%s8540_s0 + $0x8] sm:$0xf]  ;;  %v93_v3 = vsel %vm92_vm1, %v87_v1, 0.0  ;;  %v140_v41 = vld [vmem:[%s8541_s1] sm:$0xff] }
  0x37   :  { %6486 = vmatprep.subr.msk.mxu0 %vm214_vm0, %v202_v0  ;;  %v95_v4 = vsel %vm94_vm2, %v88_v2, 0.0  ;;  %v7384_v12 = vshrl.u32 %v106_v9, 7  ;;  %v91_v14 = vld [vmem:[%s8548_s8 + $0x2] sm:$0x1]  ;;  %v6120_v35 = vld [vmem:[%s8548_s8] ss:$0 sm:$0xff] }
  0x38   :  { %6487 = vmatpush3.msk.msra.mxu0 %vm214_vm0, %v202_v0  ;;  %v96_v5 = vadd.f32 %v95_v4, %v93_v3  ;;  %v6121_v38 = vld [vmem:[%s8548_s8 + $0x1] ss:$0 sm:$0xff]  ;;  %v141_v42 = vld [vmem:[%s8541_s1 + $0x8] sm:$0xff]  ;;  %vm146_vm3 = vcmask 97280   ;;  %v142_v47 = vld [vmem:[%s8541_s1 + $0x10] sm:$0xff]  ;;  %vm311_vm4 = vcmask 1043456  }
  0x39   :  { %v108_v16 = vsub.s32 0, %v7384_v12  ;;  %v147_v45 = vsel %vm146_vm3, %v140_v41, 0.0  ;;  %v148_v46 = vsel %vm146_vm3, %v141_v42, 0.0  ;;  %v150_v49 = vsel %vm146_vm3, %v142_v47, 0.0  ;;  %v145_v58 = vld [vmem:[%s8548_s8 + $0x5] sm:$0x1] }
  0x3a   :  { %v97_v6 = vrot.slane %v96_v5, 4  ;;  %v149_v48 = vadd.f32 %v148_v46, %v147_v45  ;;  %vm7267_vm5 = vmmov 1   ;;  %vm7269_vm7 = vmmov 0   ;;  %v6124_v46 = vld [vmem:[%s8548_s8 + $0x6] ss:$0 sm:$0xff] }
  0x3b   :  { %vm7438_vm6 = vmpackc.low %vm311_vm4, %vm7267_vm5  ;;  %vm438_vm8 = vcmask 162816   ;;  %vm984_vm9 = vcmask 195584   ;;  %vm3223_vm10 = vcmask 80896   ;;  %vm3225_vm11 = vcmask 76800  }
  0x3c   :  { %v98_v7 = vadd.f32 %v97_v6, %v96_v5  ;;  %v151_v50 = vadd.f32 %v150_v49, %v149_v48  ;;  %v400_v48 = vld [vmem:[#allocation2 + $0x10] sm:$0xff]  ;;  %vm3266_vm12 = vcmask 1041408   ;;  %vm3629_vm14 = vcmask 93184  }
  0x3d   :  { %v404_v49 = vld [vmem:[#allocation2 + $0x30] sm:$0xff]  ;;  %vm6955_vm13 = vmpackc.low %vm3266_vm12, %vm7267_vm5 }
  0x3e   :  { %v99_v8 = vrot.slane %v98_v7, 2  ;;  %v152_v51 = vrot.slane %v151_v50, 4 }
  0x40   :  { %v100_v10 = vadd.f32 %v99_v8, %v98_v7  ;;  %v153_v52 = vadd.f32 %v152_v51, %v151_v50 }
  0x42   :  { %v101_v11 = vrot.slane %v100_v10, 1  ;;  %v154_v53 = vrot.slane %v153_v52, 2 }
  0x44   :  { %v102_v13 = vadd.f32 %v101_v11, %v100_v10  ;;  %v155_v54 = vadd.f32 %v154_v53, %v153_v52  ;;  %v6848_v52 = vpack.c.bf16 %v404_v49, %v400_v48 }
  0x46   :  { %v104_v15 = vmul.f32 0.083333336, %v102_v13  ;;  %v156_v55 = vrot.slane %v155_v54, 1 }
  0x48   :  { %v105_v17 = vmul.f32 %v104_v15, %v91_v14  ;;  %v157_v56 = vadd.f32 %v156_v55, %v155_v54  ;;  %v7463_v55 = vld [vmem:[#allocation2 + $0x58] sm:$0xff] }
  0x4a   :  { %v109_v18 = vrot.slane %v105_v17, %v108_v16  ;;  %v159_v57 = vmul.f32 0.041666668, %v157_v56  ;;  %v399_v17 = vld [vmem:[#allocation2 + $0x8] sm:$0xff] }
  0x4c   :  { %v110_v19 = vsub.f32 %v87_v1, %v109_v18  ;;  %v111_v20 = vsub.f32 %v88_v2, %v109_v18  ;;  %v160_v59 = vmul.f32 %v159_v57, %v145_v58  ;;  %v403_v18 = vld [vmem:[#allocation2 + $0x28] sm:$0xff]  ;;  %v408_v57 = vld [vmem:[#allocation2 + $0x50] sm:$0xff]  ;;  %v410_v58 = vld [vmem:[#allocation4] sm:$0xff] }
  0x4e   :  { %v112_v21 = vmul.f32 %v110_v19, %v110_v19  ;;  %v113_v22 = vmul.f32 %v111_v20, %v111_v20  ;;  %v164_v60 = vrot.slane %v160_v59, %v108_v16  ;;  %v414_v59 = vld [vmem:[#allocation4 + $0x20] sm:$0xff] }
  0x50   :  { %v114_v23 = vsel %vm92_vm1, %v112_v21, 0.0  ;;  %v115_v24 = vsel %vm94_vm2, %v113_v22, 0.0  ;;  %v166_v61 = vsub.f32 %v141_v42, %v164_v60  ;;  %v167_v62 = vsub.f32 %v142_v47, %v164_v60  ;;  %v402_v21 = vld [vmem:[#allocation2 + $0x20] sm:$0xff] }
  0x51   :  { %v116_v25 = vadd.f32 %v115_v24, %v114_v23  ;;  %v165_v0 = vsub.f32 %v140_v41, %v164_v60  ;;  %v7418_v24 = vld [vmem:[#allocation2 + $0x48] sm:$0xff]  ;;  %v6851_v60 = vpack.c.bf16 %v414_v59, %v410_v58 }
  0x52   :  { %v169_v63 = vmul.f32 %v166_v61, %v166_v61  ;;  %v170_v1 = vmul.f32 %v167_v62, %v167_v62 }
  0x53   :  { %v117_v26 = vrot.slane %v116_v25, 4  ;;  %v168_v2 = vmul.f32 %v165_v0, %v165_v0 }
  0x54   :  { %v172_v4 = vsel %vm146_vm3, %v169_v63, 0.0  ;;  %v174_v6 = vsel %vm146_vm3, %v170_v1, 0.0 }
  0x55   :  { %v118_v27 = vadd.f32 %v117_v26, %v116_v25  ;;  %v171_v3 = vsel %vm146_vm3, %v168_v2, 0.0  ;;  %v295_v25 = vld [vmem:[%s8548_s8 + $0x18] sm:$0xff]  ;;  %v296_v26 = vld [vmem:[%s8548_s8 + $0x20] sm:$0xf] }
  0x56   :  { %v173_v5 = vadd.f32 %v172_v4, %v171_v3  ;;  %v418_v2 = vld [vmem:[#allocation4 + $0x40] sm:$0xff] }
  0x57   :  { %v119_v28 = vrot.slane %v118_v27, 2 }
  0x58   :  { %v175_v7 = vadd.f32 %v174_v6, %v173_v5 }
  0x59   :  { %v120_v29 = vadd.f32 %v119_v28, %v118_v27  ;;  %v7428_v28 = vld [vmem:[#allocation2 + $0x40] sm:$0xff] }
  0x5a   :  { %v176_v8 = vrot.slane %v175_v7, 4 }
  0x5b   :  { %v121_v30 = vrot.slane %v120_v29, 1 }
  0x5c   :  { %v177_v9 = vadd.f32 %v176_v8, %v175_v7 }
  0x5d   :  { %v122_v31 = vadd.f32 %v121_v30, %v120_v29  ;;  %v6839_v29 = vpack.c.bf16 %v296_v26, %v295_v25  ;;  %v6122_v30 = vld [vmem:[%s8548_s8 + $0x3] ss:$0 sm:$0xff] }
  0x5e   :  { %v178_v10 = vrot.slane %v177_v9, 2 }
  0x5f   :  { %v123_v32 = vmul.f32 0.083333336, %v122_v31  ;;  %v7266_v31 = vmov 0.0|0.0  }
  0x60   :  { %v179_v11 = vadd.f32 %v178_v10, %v177_v9  ;;  %6838 = vmatprep.subr.bf16.mxu1 %v7266_v31 }
  0x61   :  { %v124_v33 = vadd.f32 1e-05, %v123_v32  ;;  %6841 = vmatpush3.bf16.msk.msra.mxu1 %vm7438_vm6, %v6839_v29  ;;  %v5946_v32 = vld [vmem:[%s8548_s8 + $0x70] sm:$0xff] }
  0x62   :  { %v180_v13 = vrot.slane %v179_v11, 1  ;;  %6850 = vmatprep.subr.bf16.mxu1 %v7266_v31 }
  0x63   :  { %7093 = vrsqrt.f32 %v124_v33  ;;  %v401_v33 = vld [vmem:[#allocation2 + $0x18] sm:$0xff] }
  0x64   :  { %v181_v14 = vadd.f32 %v180_v13, %v179_v11  ;;  %v7507_v11 = vsub.s32 4, %v7384_v12 }
  0x66   :  { %v182_v15 = vmul.f32 0.041666668, %v181_v14  ;;  %v425_v13 = vrot.slane %v7428_v28, %v7507_v11  ;;  %v433_v12 = vrot.slane %v408_v57, %v7507_v11 }
  0x68   :  { %v183_v16 = vadd.f32 1e-05, %v182_v15 }
  0x6a   :  { %7095 = vrsqrt.f32 %v183_v16 }
  0x6d   :  { %v7094_v34 = vpop.eup %7093 }
  0x6e   :  { %v126_v36 = vmul.f32 %v7094_v34, %v110_v19  ;;  %v127_v37 = vmul.f32 %v7094_v34, %v111_v20  ;;  %v6842_v19 = vpack.c.bf16 %v403_v18, %v399_v17  ;;  %v398_v20 = vld [vmem:[#allocation2] sm:$0xff]  ;;  %v405_v34 = vld [vmem:[#allocation2 + $0x38] sm:$0xff]  ;;  %v429_v17 = vrot.slane %v7418_v24, %v7507_v11 }
  0x6f   :  { %v6844_v22 = vpack.c.bf16 %v402_v21, %v398_v20 }
  0x70   :  { %v132_v39 = vmul.f32 %v6120_v35, %v126_v36  ;;  %v133_v40 = vmul.f32 %v6120_v35, %v127_v37  ;;  %6843 = vmatprep.subr.bf16.mxu0 %v6842_v19  ;;  %v7268_v36 = vmov 0.0   ;;  %v6846_v37 = vpack.c.bf16 %v405_v34, %v401_v33  ;;  %v7532_v34 = vld [vmem:[%s8543_s3 + $0x20] sm:$0xff] }
  0x71   :  { %6495 = vmatprep.mubr.msk.f32.mxu1 %vm7269_vm7, %v7268_v36 }
  0x72   :  { %v138_v43 = vadd.f32 %v6121_v38, %v132_v39  ;;  %v139_v44 = vadd.f32 %v6121_v38, %v133_v40  ;;  %v6123_v38 = vld [vmem:[%s8548_s8 + $0x4] ss:$0 sm:$0xff] }
  0x74   :  { %6488 = vmatprep.mubr.msk.f32.mxu0 %vm92_vm1, %v138_v43  ;;  %v7096_v23 = vpop.eup %7095 }
  0x75   :  { %6489 = vmatmul.mubr.msk.f32.vlgmr.msra.gmra.mrb[0].mxu0 %vm92_vm1, %v139_v44  ;;  %v185_v27 = vmul.f32 %v7096_v23, %v165_v0  ;;  %v186_v40 = vmul.f32 %v7096_v23, %v166_v61  ;;  %v187_v43 = vmul.f32 %v7096_v23, %v167_v62  ;;  %v6128_v61 = vld [vmem:[%s8548_s8 + $0x7] ss:$0 sm:$0xff] }
  0x76   :  { %6845 = vmatpush1.bf16.msra.mxu0 %v6844_v22  ;;  %521 = vmatprep.mubr.f32.mxu0 %v7268_v36 }
  0x77   :  { %6133 = vmatprep.subr.msk.mxu0 %vm311_vm4, %v7418_v24  ;;  %v192_v35 = vmul.f32 %v6122_v30, %v185_v27  ;;  %v193_v41 = vmul.f32 %v6122_v30, %v186_v40  ;;  %v194_v44 = vmul.f32 %v6122_v30, %v187_v43  ;;  %v7568_v40 = vld [vmem:[%s8543_s3 + $0x10] sm:$0xff] }
  0x79   :  { %v199_v39 = vadd.f32 %v6123_v38, %v192_v35  ;;  %v200_v42 = vadd.f32 %v6123_v38, %v193_v41  ;;  %v201_v45 = vadd.f32 %v6123_v38, %v194_v44  ;;  %v7550_v38 = vld [vmem:[%s8543_s3] sm:$0xff] }
  0x7a   :  { %6134 = vmatpush1.msk.msra.mxu0 %vm311_vm4, %v7428_v28  ;;  %v7521_v28 = vld [vmem:[%s8543_s3 + $0x18] sm:$0xff] }
  0x7b   :  { %6847 = vmatprep.subr.bf16.mxu0 %v6846_v37  ;;  %6496 = vmatmul.mubr.msk.f32.vlgmr.msra.gmra.mrb[0].mxu1 %vm146_vm3, %v199_v39  ;;  %v7543_v37 = vld [vmem:[%s8543_s3 + $0x28] sm:$0xff] }
  0x7c   :  { %6498 = vmatprep.mubr.msk.f32.mxu1 %vm7269_vm7, %v7268_v36  ;;  %6852 = vmatpush3.bf16.msra.mxu1 %v6851_v60  ;;  %v7560_v39 = vld [vmem:[%s8543_s3 + $0x8] sm:$0xff] }
  0x7d   :  { %6508 = vmatprep.subr.mxu1 %v7268_v36 }
  0x7f   :  { %6499 = vmatmul.mubr.msk.f32.gmra.mrb[2].mxu1 %vm146_vm3, %v200_v42 }
  0x80   :  { %6501 = vmatprep.mubr.msk.f32.mxu1 %vm7269_vm7, %v7268_v36  ;;  %6509 = vmatpush3.msk.msra.mxu1 %vm311_vm4, %v418_v2 }
  0x83   :  { %6502 = vmatmul.mubr.msk.f32.gmra.mrb[4].mxu1 %vm146_vm3, %v201_v45 }
  0x84   :  { %6510 = vmatprep.mubr.msk.f32.mxu1 %vm7269_vm7, %v7268_v36 }
 0x148   :  { %v6490_v47 = vpop.f32.mrb[0].mxu0 }
 0x149   :  { %v284_v50 = vpop.f32.mrb[1].mxu0  ;;  %v290_v53 = vadd.f32 %v6490_v47, %v6124_v46 }
 0x14a   :  { %v285_v51 = vadd.f32 %v6124_v46, %v284_v50 }
 0x14b   :  { %v294_v56 = vmax.f32 %v290_v53, 0.0 }
 0x14c   :  { %v293_v54 = vmax.f32 %v285_v51, 0.0 }
 0x14e   :  { %6135 = vmatmul.mubr.msk.f32.vlgmr.msra.gmra.mrb[2].mxu0 %vm438_vm8, %v293_v54  ;;  %v381_v62 = vpop.f32.mrb[0].mxu1 }
 0x14f   :  { %527 = vmatprep.mubr.f32.mxu0 %v7268_v36  ;;  %6849 = vmatpush1.bf16.msra.mxu0 %v6848_v52  ;;  %v7481_v63 = vadd.f32 %v6128_v61, %v381_v62  ;;  %v6497_v0 = vpop.f32.mrb[1].mxu1 }
 0x150   :  { %6137 = vmatprep.subr.msk.mxu0 %vm311_vm4, %v7463_v55 }
 0x151   :  { %v395_v1 = vmax.f32 %v7481_v63, 0.0  ;;  %v1434_v63 = vld [vmem:[#allocation4 + $0x60] sm:$0xff] }
 0x152   :  { %6136 = vmatmul.mubr.msk.f32.gmra.mrb[4].mxu0 %vm438_vm8, %v294_v56  ;;  %v386_v3 = vpop.f32.mrb[2].mxu1 }
 0x153   :  { %6138 = vmatpush1.msk.msra.mxu0 %vm311_vm4, %v408_v57  ;;  %598 = vmatprep.mubr.f32.mxu0 %v7268_v36  ;;  %v7486_v4 = vadd.f32 %v6128_v61, %v386_v3  ;;  %v6500_v5 = vpop.f32.mrb[3].mxu1 }
 0x154   :  { %6853 = vmatprep.subr.bf16.mxu0 %v7266_v31  ;;  %6511 = vmatmul.mubr.msk.f32.vlgmr.msra.gmra.mrb[6].mxu1 %vm438_vm8, %v395_v1 }
 0x155   :  { %6513 = vmatprep.mubr.msk.f32.mxu1 %vm7269_vm7, %v7268_v36  ;;  %v396_v6 = vmax.f32 %v7486_v4, 0.0 }
 0x156   :  { %6139 = vmatmul.mubr.msk.f32.vlgmr.msra.gmra.mrb[6].mxu0 %vm438_vm8, %v293_v54  ;;  %v391_v7 = vpop.f32.mrb[4].mxu1 }
 0x157   :  { %604 = vmatprep.mubr.f32.mxu0 %v7268_v36  ;;  %v7494_v8 = vadd.f32 %v6128_v61, %v391_v7  ;;  %v6503_v9 = vpop.f32.mrb[5].mxu1 }
 0x158   :  { %6514 = vmatmul.mubr.msk.f32.gmra.mrb[8].mxu1 %vm438_vm8, %v396_v6 }
 0x159   :  { %6516 = vmatprep.mubr.msk.f32.mxu1 %vm7269_vm7, %v7268_v36  ;;  %v397_v10 = vmax.f32 %v7494_v8, 0.0 }
 0x15a   :  { %6140 = vmatmul.mubr.msk.f32.gmra.mrb[8].mxu0 %vm438_vm8, %v294_v56 }
 0x15b   :  { %6523 = vmatprep.mubr.msk.f32.mxu0 %vm7269_vm7, %v7268_v36 }
 0x15c   :  { %6517 = vmatmul.mubr.msk.f32.gmra.mrb[10].mxu1 %vm438_vm8, %v397_v10 }
 0x15d   :  { %874 = vmatprep.mubr.f32.mxu1 %v7268_v36 }
 0x221   :  { %v523_v14 = vpop.f32.mrb[2].mxu0 }
 0x222   :  { %v524_v15 = vadd.f32 %v523_v14, %v425_v13  ;;  %v525_v16 = vpop.f32.mrb[3].mxu0  ;;  %v6118_v14 = vadd.f32 -1.0, %v7532_v34 }
 0x223   :  { %v526_v21 = vadd.f32 %v525_v16, %v429_v17 }
 0x225   :  { %v529_v18 = vpop.f32.mrb[4].mxu0 }
 0x226   :  { %v530_v19 = vadd.f32 %v529_v18, %v425_v13  ;;  %v531_v20 = vpop.f32.mrb[5].mxu0  ;;  %v6117_v13 = vadd.f32 -1.0, %v7521_v28  ;;  %v7583_v18 = vmul.f32 1e+30, %v6118_v14 }
 0x227   :  { %v532_v22 = vadd.f32 %v531_v20, %v429_v17  ;;  %v689_v41 = vpop.f32.mrb[6].mxu1 }
 0x228   :  { %v6854_v23 = vpack.c.bf16 %v530_v19, %v524_v15  ;;  %v6512_v42 = vpop.f32.mrb[7].mxu1  ;;  %v7581_v16 = vmul.f32 1e+30, %v6117_v13  ;;  %v6119_v19 = vadd.f32 -1.0, %v7543_v37 }
 0x229   :  { %v6860_v25 = vpack.c.bf16 %v532_v22, %v526_v21  ;;  %v600_v26 = vpop.f32.mrb[6].mxu0 }
 0x22a   :  { %v7514_v27 = vpop.f32.mrb[7].mxu0  ;;  %6856 = vmatpush3.bf16.msk.msra.mxu0 %vm7438_vm6, %v6854_v23  ;;  %v601_v29 = vadd.f32 %v600_v26, %v433_v12 }
 0x22b   :  { %v694_v43 = vpop.f32.mrb[8].mxu1 }
 0x22c   :  { %v6515_v44 = vpop.f32.mrb[9].mxu1 }
 0x22d   :  { %v606_v24 = vpop.f32.mrb[8].mxu0  ;;  %6524 = vmatmul.mubr.msk.f32.vlgmr.msra.gmra.mrb[10].mxu0 %vm146_vm3, %v7521_v28 }
 0x22e   :  { %v607_v30 = vadd.f32 %v606_v24, %v433_v12  ;;  %v7525_v33 = vpop.f32.mrb[9].mxu0  ;;  %6526 = vmatprep.mubr.msk.f32.mxu0 %vm7269_vm7, %v7268_v36 }
 0x22f   :  { %v699_v45 = vpop.f32.mrb[10].mxu1 }
 0x230   :  { %v6857_v35 = vpack.c.bf16 %v607_v30, %v601_v29  ;;  %v6518_v46 = vpop.f32.mrb[11].mxu1 }
 0x231   :  { %6527 = vmatmul.mubr.msk.f32.gmra.mrb[12].mxu0 %vm146_vm3, %v7532_v34 }
 0x232   :  { %6859 = vmatprep.subr.msk.bf16.mxu1 %vm7438_vm6, %v6857_v35  ;;  %6529 = vmatprep.mubr.msk.f32.mxu0 %vm7269_vm7, %v7268_v36 }
 0x233   :  { %6862 = vmatpush1.bf16.msk.msra.mxu1 %vm7438_vm6, %v6860_v25  ;;  %v7588_v25 = vmul.f32 1e+30, %v6119_v19 }
 0x235   :  { %6530 = vmatmul.mubr.msk.f32.gmra.mrb[14].mxu0 %vm146_vm3, %v7543_v37 }
 0x236   :  { %6151 = vmatmul.mubr.msk.f32.vlgmr.msra.gmra.mrb[12].mxu1 %vm146_vm3, %v7550_v38 }
 0x237   :  { %880 = vmatprep.mubr.f32.mxu1 %v7268_v36 }
 0x23a   :  { %6152 = vmatmul.mubr.msk.f32.gmra.mrb[14].mxu1 %vm146_vm3, %v7560_v39 }
 0x23b   :  { %886 = vmatprep.mubr.f32.mxu1 %v7268_v36 }
 0x23e   :  { %6153 = vmatmul.mubr.msk.f32.gmra.mrb[16].mxu1 %vm146_vm3, %v7568_v40 }
 0x23f   :  { %1144 = vmatprep.mubr.f32.mxu1 %v7268_v36 }
 0x300   :  { %v781_v47 = vpop.f32.mrb[10].mxu0 }
 0x301   :  { %v6525_v48 = vpop.f32.mrb[11].mxu0 }
 0x304   :  { %v786_v49 = vpop.f32.mrb[12].mxu0 }
 0x305   :  { %v6528_v50 = vpop.f32.mrb[13].mxu0 }
 0x308   :  { %v791_v51 = vpop.f32.mrb[14].mxu0 }
 0x309   :  { %v876_v52 = vpop.f32.mrb[12].mxu1  ;;  %v6531_v53 = vpop.f32.mrb[15].mxu0 }
 0x30a   :  { %v893_v54 = vadd.f32 %v876_v52, %v689_v41  ;;  %v878_v56 = vpop.f32.mrb[13].mxu1 }
 0x30b   :  { %v7573_v57 = vadd.f32 %v878_v56, %v689_v41 }
 0x30c   :  { %v899_v58 = vmul.f32 %v893_v54, %v781_v47 }
 0x30d   :  { %v882_v59 = vpop.f32.mrb[14].mxu1 }
 0x30e   :  { %v894_v60 = vadd.f32 %v882_v59, %v694_v43  ;;  %902 = vadd.xlane.f32.xlu0 %v899_v58  ;;  %v884_v61 = vpop.f32.mrb[15].mxu1 }
 0x30f   :  { %v7575_v62 = vadd.f32 %v884_v61, %v694_v43 }
 0x310   :  { %v900_v0 = vmul.f32 %v894_v60, %v786_v49 }
 0x311   :  { %v888_v2 = vpop.f32.mrb[16].mxu1 }
 0x312   :  { %v895_v3 = vadd.f32 %v888_v2, %v699_v45  ;;  %904 = vadd.xlane.f32.xlu0 %v900_v0  ;;  %v890_v5 = vpop.f32.mrb[17].mxu1 }
 0x313   :  { %v7577_v7 = vadd.f32 %v890_v5, %v699_v45 }
 0x314   :  { %v901_v9 = vmul.f32 %v895_v3, %v791_v51 }
 0x316   :  { %906 = vadd.xlane.f32.xlu1 %v901_v9 }
 0x39b   :  { %v903_v15 = vpop.xlane.xlu0 %902 }
 0x39c   :  { %v908_v17 = vmul.f32 0.2236068, %v903_v15 }
 0x39e   :  { %v911_v22 = vadd.f32 %v908_v17, %v7581_v16 }
 0x39f   :  { %v905_v20 = vpop.xlane.xlu0 %904 }
 0x3a0   :  { %v909_v21 = vmul.f32 0.2236068, %v905_v20  ;;  %v914_v29 = vsel %vm146_vm3, %v911_v22, -inf }
 0x3a2   :  { %v912_v23 = vadd.f32 %v909_v21, %v7583_v18 }
 0x3a3   :  { %v907_v26 = vpop.xlane.xlu1 %906 }
 0x3a4   :  { %v915_v12 = vsel %vm146_vm3, %v912_v23, -inf  ;;  %v910_v24 = vmul.f32 0.2236068, %v907_v26 }
 0x3a5   :  { %v917_v35 = vmax.f32 %v914_v29, %v915_v12 }
 0x3a6   :  { %v913_v30 = vadd.f32 %v910_v24, %v7588_v25 }
 0x3a8   :  { %v916_v41 = vsel %vm146_vm3, %v913_v30, -inf }
 0x3a9   :  { %v918_v42 = vmax.f32 %v917_v35, %v916_v41 }
 0x3ab   :  { %v919_v43 = vrot.slane %v918_v42, 4 }
 0x3ad   :  { %v920_v44 = vmax.f32 %v918_v42, %v919_v43 }
 0x3af   :  { %v921_v45 = vrot.slane %v920_v44, 2 }
 0x3b1   :  { %v922_v46 = vmax.f32 %v920_v44, %v921_v45 }
 0x3b3   :  { %v923_v47 = vrot.slane %v922_v46, 1 }
 0x3b5   :  { %v924_v48 = vmax.f32 %v922_v46, %v923_v47 }
 0x3b7   :  { %v926_v49 = vmul.f32 %v924_v48, %v7532_v34  ;;  %v925_v50 = vmul.f32 %v924_v48, %v7521_v28  ;;  %v927_v53 = vmul.f32 %v924_v48, %v7543_v37  ;;  %v7615_v48 = vld [vmem:[%s8543_s3 + $0x30] sm:$0xff] }
 0x3b8   :  { %6538 = vmatprep.mubr.msk.f32.mxu0 %vm984_vm9, %v7615_v48 }
 0x3b9   :  { %v931_v51 = vsel %vm146_vm3, %v926_v49, 0.0  ;;  %v928_v52 = vsel %vm146_vm3, %v925_v50, 0.0  ;;  %v934_v54 = vsel %vm146_vm3, %v927_v53, 0.0 }
 0x3ba   :  { %932 = vadd.xlane.f32.xlu0 %v931_v51  ;;  %929 = vadd.xlane.f32.xlu1 %v928_v52 }
 0x3be   :  { %935 = vadd.xlane.f32.xlu1 %v934_v54 }
 0x447   :  { %v933_v56 = vpop.xlane.xlu0 %932  ;;  %v930_v58 = vpop.xlane.xlu1 %929 }
 0x448   :  { %v938_v59 = vsub.f32 %v909_v21, %v933_v56  ;;  %v937_v60 = vsub.f32 %v908_v17, %v930_v58 }
 0x44a   :  { %v942_v61 = vmul.f32 1.442695, %v938_v59  ;;  %v940_v0 = vmul.f32 1.442695, %v937_v60 }
 0x44b   :  { %v936_v2 = vpop.xlane.xlu1 %935 }
 0x44c   :  { %7097 = vpow2.f32 %v942_v61  ;;  %v939_v3 = vsub.f32 %v910_v24, %v936_v2 }
 0x44d   :  { %7099 = vpow2.f32 %v940_v0 }
 0x44e   :  { %v944_v5 = vmul.f32 1.442695, %v939_v3 }
 0x450   :  { %7101 = vpow2.f32 %v944_v5 }
 0x456   :  { %v7098_v9 = vpop.eup %7097 }
 0x457   :  { %v7100_v13 = vpop.eup %7099  ;;  %v947_v14 = vmul.f32 %v7098_v9, %v7532_v34 }
 0x458   :  { %v946_v15 = vmul.f32 %v7100_v13, %v7521_v28 }
 0x459   :  { %v950_v19 = vsel %vm146_vm3, %v947_v14, 0.0 }
 0x45a   :  { %v7102_v20 = vpop.eup %7101  ;;  %v949_v21 = vsel %vm146_vm3, %v946_v15, 0.0  ;;  %v7625_v15 = vld [vmem:[%s8543_s3 + $0x38] sm:$0xff] }
 0x45b   :  { %v948_v17 = vmul.f32 %v7102_v20, %v7543_v37  ;;  %v951_v22 = vadd.f32 %v950_v19, %v949_v21  ;;  %v419_v21 = vld [vmem:[#allocation4 + $0x48] sm:$0xff] }
 0x45d   :  { %v952_v23 = vsel %vm146_vm3, %v948_v17, 0.0  ;;  %v437_v17 = vrot.slane %v7463_v55, %v7507_v11 }
 0x45e   :  { %v953_v26 = vadd.f32 %v952_v23, %v951_v22 }
 0x45f   :  { %v609_v22 = vadd.f32 %v7525_v33, %v437_v17  ;;  %v603_v23 = vadd.f32 %v7514_v27, %v437_v17  ;;  %v1422_v33 = vld [vmem:[#allocation2 + $0x68] sm:$0xff] }
 0x460   :  { %v954_v12 = vrot.slane %v953_v26, 4 }
 0x462   :  { %v955_v24 = vadd.f32 %v954_v12, %v953_v26 }
 0x464   :  { %v956_v29 = vrot.slane %v955_v24, 2 }
 0x466   :  { %v957_v30 = vadd.f32 %v956_v29, %v955_v24 }
 0x468   :  { %v958_v35 = vrot.slane %v957_v30, 1 }
 0x46a   :  { %v959_v41 = vadd.f32 %v958_v35, %v957_v30 }
 0x46c   :  { %v961_v42 = vmul.f32 %v959_v41, %v7532_v34  ;;  %v960_v43 = vmul.f32 %v959_v41, %v7521_v28  ;;  %v962_v46 = vmul.f32 %v959_v41, %v7543_v37  ;;  %v1426_v41 = vld [vmem:[#allocation2 + $0x88] sm:$0xff] }
 0x46e   :  { %v966_v44 = vsel %vm146_vm3, %v961_v42, 0.0  ;;  %v963_v45 = vsel %vm146_vm3, %v960_v43, 0.0  ;;  %v969_v47 = vsel %vm146_vm3, %v962_v46, 0.0  ;;  %v6882_v43 = vpack.c.bf16 %v1426_v41, %v1422_v33  ;;  %v1421_v46 = vld [vmem:[#allocation2 + $0x60] sm:$0xff] }
 0x46f   :  { %967 = vadd.xlane.f32.xlu1 %v966_v44  ;;  %964 = vadd.xlane.f32.xlu0 %v963_v45 }
 0x473   :  { %970 = vadd.xlane.f32.xlu0 %v969_v47  ;;  %v1425_v47 = vld [vmem:[#allocation2 + $0x80] sm:$0xff] }
 0x4fc   :  { %v968_v49 = vpop.xlane.xlu1 %967  ;;  %v965_v50 = vpop.xlane.xlu0 %964 }
 0x4fd   :  { %v973_v51 = vmax.f32 %v968_v49, 1e-06  ;;  %v972_v52 = vmax.f32 %v965_v50, 1e-06  ;;  %v413_v50 = vld [vmem:[#allocation4 + $0x18] sm:$0xff] }
 0x4ff   :  { %7103 = vrcp.f32 %v973_v51  ;;  %v417_v51 = vld [vmem:[#allocation4 + $0x38] sm:$0xff] }
 0x500   :  { %7105 = vrcp.f32 %v972_v52  ;;  %v971_v53 = vpop.xlane.xlu0 %970  ;;  %v6884_v52 = vpack.c.bf16 %v1425_v47, %v1421_v46 }
 0x501   :  { %v974_v54 = vmax.f32 %v971_v53, 1e-06  ;;  %v6880_v53 = vpack.c.bf16 %v417_v51, %v413_v50 }
 0x503   :  { %7107 = vrcp.f32 %v974_v54  ;;  %v7657_v54 = vld [vmem:[#allocation2 + $0xa8] sm:$0xff] }
 0x504   :  { %v1453_v33 = vrot.slane %v7657_v54, %v7507_v11 }
 0x509   :  { %v7104_v56 = vpop.eup %7103 }
 0x50a   :  { %v7106_v58 = vpop.eup %7105  ;;  %v979_v59 = vmul.f32 %v7104_v56, %v7098_v9  ;;  %v411_v9 = vld [vmem:[#allocation4 + $0x8] sm:$0xff]  ;;  %v1424_v56 = vld [vmem:[#allocation2 + $0x78] sm:$0xff] }
 0x50b   :  { %v978_v60 = vmul.f32 %v7106_v58, %v7100_v13  ;;  %v415_v13 = vld [vmem:[#allocation4 + $0x28] sm:$0xff]  ;;  %v1428_v58 = vld [vmem:[#allocation2 + $0x98] sm:$0xff] }
 0x50c   :  { %v982_v61 = vmul.f32 %v979_v59, %v7575_v62  ;;  %v416_v62 = vld [vmem:[#allocation4 + $0x30] sm:$0xff]  ;;  %v6869_v19 = vpack.c.bf16 %v415_v13, %v411_v9  ;;  %v1429_v59 = vld [vmem:[#allocation2 + $0xa0] sm:$0xff] }
 0x50d   :  { %v7108_v0 = vpop.eup %7107  ;;  %v981_v2 = vmul.f32 %v978_v60, %v7573_v57  ;;  %v412_v57 = vld [vmem:[#allocation4 + $0x10] sm:$0xff]  ;;  %v421_v60 = vld [vmem:[#allocation4 + $0x58] sm:$0xff] }
 0x50e   :  { %v980_v3 = vmul.f32 %v7108_v0, %v7102_v20  ;;  %v420_v20 = vld [vmem:[#allocation4 + $0x50] sm:$0xff] }
 0x50f   :  { %v6863_v5 = vpack.c.bf16 %v982_v61, %v981_v2  ;;  %v6886_v61 = vpack.c.bf16 %v1428_v58, %v1424_v56  ;;  %v1423_v0 = vld [vmem:[#allocation2 + $0x70] sm:$0xff] }
 0x510   :  { %v983_v14 = vmul.f32 %v980_v3, %v7577_v7  ;;  %v6867_v7 = vpack.c.bf16 %v416_v62, %v412_v57  ;;  %v1427_v2 = vld [vmem:[#allocation2 + $0x90] sm:$0xff] }
 0x511   :  { %6864 = vmatprep.subr.bf16.mxu0 %v6863_v5  ;;  %v6888_v3 = vpack.c.bf16 %v1427_v2, %v1423_v0 }
 0x512   :  { %6866 = vmatpush3.bf16.msra.mxu0 %v6863_v5  ;;  %6868 = vmatprep.subr.bf16.mxu1 %v6867_v7  ;;  %v7688_v5 = vld [vmem:[#allocation2 + $0xb8] sm:$0xff] }
 0x513   :  { %6536 = vmatprep.subr.mxu0 %v983_v14  ;;  %6870 = vmatpush1.bf16.msra.mxu1 %v6869_v19 }
 0x514   :  { %6156 = vmatprep.subr.msk.mxu1 %vm311_vm4, %v420_v20 }
 0x516   :  { %6537 = vmatpush3.msra.mxu0 %v983_v14  ;;  %v7698_v14 = vld [vmem:[#allocation2 + $0xb0] sm:$0xff] }
 0x517   :  { %6539 = vmatmul.mubr.msk.f32.vlgmr.msra.gmra.mrb[16].mxu0 %vm984_vm9, %v7625_v15  ;;  %6871 = vmatprep.subr.bf16.mxu0 %v7266_v31 }
 0x518   :  { %6545 = vmatprep.mubr.msk.f32.mxu0 %vm7269_vm7, %v7268_v36  ;;  %6157 = vmatpush1.msk.msra.mxu1 %vm311_vm4, %v419_v21 }
 0x519   :  { %6875 = vmatprep.subr.bf16.mxu1 %v7266_v31 }
 0x5ea   :  { %v6540_v26 = vpop.f32.mrb[16].mxu0 }
 0x5eb   :  { %v1063_v12 = vadd.f32 %v6540_v26, %v609_v22  ;;  %v1057_v24 = vpop.f32.mrb[17].mxu0 }
 0x5ec   :  { %v1058_v29 = vadd.f32 %v1057_v24, %v603_v23 }
 0x5ed   :  { %v7644_v35 = vmax.f32 %v1063_v12, 0.0 }
 0x5ee   :  { %v7639_v30 = vmax.f32 %v1058_v29, 0.0  ;;  %v1449_v29 = vrot.slane %v1429_v59, %v7507_v11 }
 0x5f0   :  { %6158 = vmatmul.mubr.msk.f32.vlgmr.msra.gmra.mrb[18].mxu1 %vm438_vm8, %v7639_v30 }
 0x5f1   :  { %1150 = vmatprep.mubr.f32.mxu1 %v7268_v36 }
 0x5f4   :  { %6159 = vmatmul.mubr.msk.f32.gmra.mrb[20].mxu1 %vm438_vm8, %v7644_v35 }
 0x5f5   :  { %6558 = vmatprep.mubr.msk.f32.mxu1 %vm7269_vm7, %v7268_v36 }
 0x6c3   :  { %v1146_v55 = vpop.f32.mrb[18].mxu1 }
 0x6c4   :  { %v1148_v27 = vpop.f32.mrb[19].mxu1 }
 0x6c7   :  { %v1152_v42 = vpop.f32.mrb[20].mxu1 }
 0x6c8   :  { %v6876_v44 = vpack.c.bf16 %v1152_v42, %v1146_v55  ;;  %v1154_v45 = vpop.f32.mrb[21].mxu1 }
 0x6c9   :  { %v6872_v49 = vpack.c.bf16 %v1154_v45, %v1148_v27 }
 0x6ca   :  { %6878 = vmatpush3.bf16.msk.msra.mxu1 %vm7438_vm6, %v6876_v44 }
 0x6cb   :  { %6874 = vmatpush3.bf16.msk.msra.mxu0 %vm7438_vm6, %v6872_v49  ;;  %6883 = vmatprep.subr.bf16.mxu1 %v6882_v43 }
 0x6cc   :  { %6879 = vmatprep.subr.bf16.mxu0 %v7266_v31 }
 0x6cd   :  { %6559 = vmatmul.mubr.msk.f32.vlgmr.msra.gmra.mrb[22].mxu1 %vm146_vm3, %v7550_v38 }
 0x6ce   :  { %6546 = vmatmul.mubr.msk.f32.vlgmr.msra.gmra.mrb[18].mxu0 %vm146_vm3, %v7521_v28  ;;  %6561 = vmatprep.mubr.msk.f32.mxu1 %vm7269_vm7, %v7268_v36 }
 0x6cf   :  { %6548 = vmatprep.mubr.msk.f32.mxu0 %vm7269_vm7, %v7268_v36  ;;  %6885 = vmatpush1.bf16.msra.mxu1 %v6884_v52 }
 0x6d0   :  { %6881 = vmatpush3.bf16.msra.mxu0 %v6880_v53  ;;  %6173 = vmatprep.subr.msk.mxu1 %vm311_vm4, %v7657_v54 }
 0x6d1   :  { %6562 = vmatmul.mubr.msk.f32.gmra.mrb[24].mxu1 %vm146_vm3, %v7560_v39  ;;  %6571 = vmatprep.subr.mxu0 %v7268_v36 }
 0x6d2   :  { %6549 = vmatmul.mubr.msk.f32.gmra.mrb[20].mxu0 %vm146_vm3, %v7532_v34  ;;  %6564 = vmatprep.mubr.msk.f32.mxu1 %vm7269_vm7, %v7268_v36 }
 0x6d3   :  { %6551 = vmatprep.mubr.msk.f32.mxu0 %vm7269_vm7, %v7268_v36  ;;  %6174 = vmatpush1.msk.msra.mxu1 %vm311_vm4, %v1429_v59 }
 0x6d4   :  { %6572 = vmatpush3.msk.msra.mxu0 %vm311_vm4, %v421_v60  ;;  %6890 = vmatprep.subr.bf16.mxu1 %v7266_v31 }
 0x6d5   :  { %6565 = vmatmul.mubr.msk.f32.gmra.mrb[26].mxu1 %vm146_vm3, %v7568_v40  ;;  %6887 = vmatprep.subr.bf16.mxu0 %v6886_v61 }
 0x6d6   :  { %6552 = vmatmul.mubr.msk.f32.gmra.mrb[22].mxu0 %vm146_vm3, %v7543_v37  ;;  %1538 = vmatprep.mubr.f32.mxu1 %v7268_v36 }
 0x6d7   :  { %6573 = vmatprep.mubr.msk.f32.mxu0 %vm7269_vm7, %v7268_v36 }
 0x6d9   :  { %6175 = vmatmul.mubr.msk.f32.vlgmr.msra.gmra.mrb[28].mxu1 %vm438_vm8, %v7639_v30 }
 0x6da   :  { %6574 = vmatmul.mubr.msk.f32.vlgmr.msra.gmra.mrb[24].mxu0 %vm438_vm8, %v395_v1  ;;  %1544 = vmatprep.mubr.f32.mxu1 %v7268_v36  ;;  %v1438_v1 = vld [vmem:[#allocation4 + $0x80] sm:$0xff] }
 0x6db   :  { %6576 = vmatprep.mubr.msk.f32.mxu0 %vm7269_vm7, %v7268_v36  ;;  %6889 = vmatpush1.bf16.msra.mxu0 %v6888_v3  ;;  %v6891_v4 = vpack.c.bf16 %v1438_v1, %v1434_v63  ;;  %v1457_v1 = vrot.slane %v7698_v14, %v7507_v11 }
 0x6dc   :  { %6177 = vmatprep.subr.msk.mxu0 %vm311_vm4, %v7688_v5 }
 0x6dd   :  { %6176 = vmatmul.mubr.msk.f32.gmra.mrb[30].mxu1 %vm438_vm8, %v7644_v35 }
 0x6de   :  { %6577 = vmatmul.mubr.msk.f32.gmra.mrb[26].mxu0 %vm438_vm8, %v396_v6  ;;  %6588 = vmatprep.mubr.msk.f32.mxu1 %vm7269_vm7, %v7268_v36  ;;  %v1442_v6 = vld [vmem:[#allocation4 + $0xa0] sm:$0xff] }
 0x6df   :  { %6579 = vmatprep.mubr.msk.f32.mxu0 %vm7269_vm7, %v7268_v36  ;;  %6178 = vmatpush1.msk.msra.mxu0 %vm311_vm4, %v7698_v14 }
 0x6e0   :  { %6893 = vmatprep.subr.bf16.mxu0 %v7266_v31  ;;  %6892 = vmatpush3.bf16.msra.mxu1 %v6891_v4 }
 0x6e1   :  { %6586 = vmatprep.subr.mxu1 %v7268_v36 }
 0x6e2   :  { %6580 = vmatmul.mubr.msk.f32.gmra.mrb[28].mxu0 %vm438_vm8, %v397_v10 }
 0x6e3   :  { %1615 = vmatprep.mubr.f32.mxu0 %v7268_v36 }
 0x6e4   :  { %6587 = vmatpush3.msk.msra.mxu1 %vm311_vm4, %v1442_v6 }
 0x6e6   :  { %6179 = vmatmul.mubr.msk.f32.vlgmr.msra.gmra.mrb[30].mxu0 %vm438_vm8, %v7639_v30 }
 0x6e7   :  { %1621 = vmatprep.mubr.f32.mxu0 %v7268_v36 }
 0x6ea   :  { %6180 = vmatmul.mubr.msk.f32.gmra.mrb[32].mxu0 %vm438_vm8, %v7644_v35  ;;  %v6172_v35 = vld [vmem:[%s8548_s8 + $0xb] ss:$0 sm:$0xff] }
 0x6eb   :  { %6601 = vmatprep.mubr.msk.f32.mxu0 %vm7269_vm7, %v7268_v36 }
 0x7a0   :  { %v1309_v8 = vpop.f32.mrb[22].mxu1 }
 0x7a1   :  { %v1226_v10 = vpop.f32.mrb[18].mxu0  ;;  %v6560_v57 = vpop.f32.mrb[23].mxu1 }
 0x7a2   :  { %v1310_v62 = vadd.f32 %v1309_v8, %v1226_v10  ;;  %v6547_v7 = vpop.f32.mrb[19].mxu0 }
 0x7a4   :  { %v1314_v9 = vpop.f32.mrb[24].mxu1 }
 0x7a5   :  { %v1231_v13 = vpop.f32.mrb[20].mxu0  ;;  %v6563_v19 = vpop.f32.mrb[25].mxu1 }
 0x7a6   :  { %v1315_v20 = vadd.f32 %v1314_v9, %v1231_v13  ;;  %v6550_v21 = vpop.f32.mrb[21].mxu0 }
 0x7a8   :  { %v1319_v17 = vpop.f32.mrb[26].mxu1 }
 0x7a9   :  { %v1236_v22 = vpop.f32.mrb[22].mxu0  ;;  %v6566_v23 = vpop.f32.mrb[27].mxu1 }
 0x7aa   :  { %v1320_v26 = vadd.f32 %v1319_v17, %v1236_v22  ;;  %v6553_v12 = vpop.f32.mrb[23].mxu0 }
 0x7ac   :  { %v1540_v24 = vpop.f32.mrb[28].mxu1 }
 0x7ad   :  { %v1392_v30 = vpop.f32.mrb[24].mxu0  ;;  %v1542_v55 = vpop.f32.mrb[29].mxu1  ;;  %v1541_v44 = vadd.f32 %v1540_v24, %v1449_v29 }
 0x7ae   :  { %v1406_v27 = vadd.f32 %v1392_v30, %v1310_v62  ;;  %v6575_v41 = vpop.f32.mrb[25].mxu0  ;;  %v1543_v50 = vadd.f32 %v1542_v55, %v1453_v33 }
 0x7b0   :  { %v7731_v42 = vadd.f32 %v6172_v35, %v1406_v27  ;;  %v1546_v43 = vpop.f32.mrb[30].mxu1 }
 0x7b1   :  { %v1547_v45 = vadd.f32 %v1546_v43, %v1449_v29  ;;  %v1397_v46 = vpop.f32.mrb[26].mxu0  ;;  %v1548_v47 = vpop.f32.mrb[31].mxu1 }
 0x7b2   :  { %v1417_v49 = vmax.f32 %v7731_v42, 0.0  ;;  %v1407_v51 = vadd.f32 %v1397_v46, %v1315_v20  ;;  %v1549_v52 = vadd.f32 %v1548_v47, %v1453_v33  ;;  %v6578_v53 = vpop.f32.mrb[27].mxu0  ;;  %v2427_v42 = vld [vmem:[#allocation4 + $0xe0] sm:$0xff] }
 0x7b3   :  { %v6894_v56 = vpack.c.bf16 %v1547_v45, %v1541_v44 }
 0x7b4   :  { %v7734_v58 = vadd.f32 %v6172_v35, %v1407_v51  ;;  %v6900_v59 = vpack.c.bf16 %v1549_v52, %v1543_v50  ;;  %6589 = vmatmul.mubr.msk.f32.vlgmr.msra.gmra.mrb[32].mxu1 %vm438_vm8, %v1417_v49 }
 0x7b5   :  { %v1402_v54 = vpop.f32.mrb[28].mxu0  ;;  %6896 = vmatpush3.bf16.msk.msra.mxu0 %vm7438_vm6, %v6894_v56  ;;  %6591 = vmatprep.mubr.msk.f32.mxu1 %vm7269_vm7, %v7268_v36 }
 0x7b6   :  { %v1418_v60 = vmax.f32 %v7734_v58, 0.0  ;;  %v1408_v61 = vadd.f32 %v1402_v54, %v1320_v26  ;;  %v6581_v0 = vpop.f32.mrb[29].mxu0  ;;  %v2428_v58 = vld [vmem:[#allocation4 + $0x100] sm:$0xff] }
 0x7b8   :  { %v7744_v2 = vadd.f32 %v6172_v35, %v1408_v61  ;;  %6592 = vmatmul.mubr.msk.f32.gmra.mrb[34].mxu1 %vm438_vm8, %v1418_v60  ;;  %6602 = vmatmul.mubr.msk.f32.vlgmr.msra.gmra.mrb[34].mxu0 %vm146_vm3, %v7521_v28 }
 0x7b9   :  { %v1617_v3 = vpop.f32.mrb[30].mxu0  ;;  %6594 = vmatprep.mubr.msk.f32.mxu1 %vm7269_vm7, %v7268_v36  ;;  %6604 = vmatprep.mubr.msk.f32.mxu0 %vm7269_vm7, %v7268_v36 }
 0x7ba   :  { %v1419_v63 = vmax.f32 %v7744_v2, 0.0  ;;  %v7758_v4 = vpop.f32.mrb[31].mxu0  ;;  %v1618_v8 = vadd.f32 %v1617_v3, %v1457_v1 }
 0x7bc   :  { %6595 = vmatmul.mubr.msk.f32.gmra.mrb[36].mxu1 %vm438_vm8, %v1419_v63  ;;  %6605 = vmatmul.mubr.msk.f32.gmra.mrb[36].mxu0 %vm146_vm3, %v7532_v34 }
 0x7bd   :  { %v1623_v6 = vpop.f32.mrb[32].mxu0  ;;  %1873 = vmatprep.mubr.f32.mxu1 %v7268_v36  ;;  %6607 = vmatprep.mubr.msk.f32.mxu0 %vm7269_vm7, %v7268_v36 }
 0x7be   :  { %v1624_v10 = vadd.f32 %v1623_v6, %v1457_v1  ;;  %v7768_v57 = vpop.f32.mrb[33].mxu0 }
 0x7c0   :  { %v6897_v14 = vpack.c.bf16 %v1624_v10, %v1618_v8  ;;  %6608 = vmatmul.mubr.msk.f32.gmra.mrb[38].mxu0 %vm146_vm3, %v7543_v37 }
 0x7c1   :  { %6616 = vmatprep.mubr.msk.f32.mxu0 %vm984_vm9, %v7615_v48 }
 0x7c2   :  { %6899 = vmatprep.subr.msk.bf16.mxu1 %vm7438_vm6, %v6897_v14 }
 0x7c3   :  { %6902 = vmatpush1.bf16.msk.msra.mxu1 %vm7438_vm6, %v6900_v59 }
 0x7c4   :  { %6911 = vmatprep.subr.bf16.mxu1 %v7266_v31 }
 0x7c6   :  { %6191 = vmatmul.mubr.msk.f32.vlgmr.msra.gmra.mrb[38].mxu1 %vm146_vm3, %v7550_v38 }
 0x7c7   :  { %1879 = vmatprep.mubr.f32.mxu1 %v7268_v36 }
 0x7ca   :  { %6192 = vmatmul.mubr.msk.f32.gmra.mrb[40].mxu1 %vm146_vm3, %v7560_v39 }
 0x7cb   :  { %1885 = vmatprep.mubr.f32.mxu1 %v7268_v36 }
 0x7ce   :  { %6193 = vmatmul.mubr.msk.f32.gmra.mrb[42].mxu1 %vm146_vm3, %v7568_v40 }
 0x7cf   :  { %6623 = vmatprep.mubr.msk.f32.mxu1 %vm7269_vm7, %v7268_v36 }
 0x887   :  { %v1706_v62 = vpop.f32.mrb[32].mxu1 }
 0x888   :  { %v6590_v7 = vpop.f32.mrb[33].mxu1 }
 0x88b   :  { %v1711_v9 = vpop.f32.mrb[34].mxu1  ;;  %v1789_v13 = vpop.f32.mrb[34].mxu0 }
 0x88c   :  { %v6593_v19 = vpop.f32.mrb[35].mxu1  ;;  %v6603_v20 = vpop.f32.mrb[35].mxu0 }
 0x88f   :  { %v1716_v21 = vpop.f32.mrb[36].mxu1  ;;  %v1794_v17 = vpop.f32.mrb[36].mxu0 }
 0x890   :  { %v6596_v22 = vpop.f32.mrb[37].mxu1  ;;  %v6606_v23 = vpop.f32.mrb[37].mxu0 }
 0x893   :  { %v1799_v26 = vpop.f32.mrb[38].mxu0 }
 0x894   :  { %v6609_v12 = vpop.f32.mrb[39].mxu0 }
 0x899   :  { %v1875_v24 = vpop.f32.mrb[38].mxu1 }
 0x89a   :  { %v1892_v29 = vadd.f32 %v1875_v24, %v1706_v62  ;;  %v1877_v30 = vpop.f32.mrb[39].mxu1 }
 0x89b   :  { %v7789_v35 = vadd.f32 %v1877_v30, %v1706_v62 }
 0x89c   :  { %v1898_v55 = vmul.f32 %v1892_v29, %v1789_v13 }
 0x89d   :  { %v1881_v27 = vpop.f32.mrb[40].mxu1 }
 0x89e   :  { %v1893_v33 = vadd.f32 %v1881_v27, %v1711_v9  ;;  %1901 = vadd.xlane.f32.xlu1 %v1898_v55  ;;  %v1883_v41 = vpop.f32.mrb[41].mxu1 }
 0x89f   :  { %v7791_v43 = vadd.f32 %v1883_v41, %v1711_v9 }
 0x8a0   :  { %v1899_v44 = vmul.f32 %v1893_v33, %v1794_v17 }
 0x8a1   :  { %v1887_v45 = vpop.f32.mrb[42].mxu1 }
 0x8a2   :  { %v1894_v46 = vadd.f32 %v1887_v45, %v1716_v21  ;;  %1903 = vadd.xlane.f32.xlu0 %v1899_v44  ;;  %v1889_v47 = vpop.f32.mrb[43].mxu1 }
 0x8a3   :  { %v7793_v50 = vadd.f32 %v1889_v47, %v1716_v21 }
 0x8a4   :  { %v1900_v51 = vmul.f32 %v1894_v46, %v1799_v26 }
 0x8a6   :  { %1905 = vadd.xlane.f32.xlu1 %v1900_v51 }
 0x92b   :  { %v1902_v52 = vpop.xlane.xlu1 %1901 }
 0x92c   :  { %v1907_v53 = vmul.f32 0.2236068, %v1902_v52 }
 0x92e   :  { %v1910_v54 = vadd.f32 %v1907_v53, %v7581_v16 }
 0x92f   :  { %v1904_v56 = vpop.xlane.xlu0 %1903 }
 0x930   :  { %v1908_v59 = vmul.f32 0.2236068, %v1904_v56  ;;  %v1913_v6 = vsel %vm146_vm3, %v1910_v54, -inf }
 0x932   :  { %v1911_v61 = vadd.f32 %v1908_v59, %v7583_v18 }
 0x933   :  { %v1906_v0 = vpop.xlane.xlu1 %1905 }
 0x934   :  { %v1914_v3 = vsel %vm146_vm3, %v1911_v61, -inf  ;;  %v1909_v1 = vmul.f32 0.2236068, %v1906_v0 }
 0x935   :  { %v1916_v10 = vmax.f32 %v1913_v6, %v1914_v3 }
 0x936   :  { %v1912_v8 = vadd.f32 %v1909_v1, %v7588_v25 }
 0x938   :  { %v1915_v14 = vsel %vm146_vm3, %v1912_v8, -inf }
 0x939   :  { %v1917_v62 = vmax.f32 %v1916_v10, %v1915_v14 }
 0x93b   :  { %v1918_v7 = vrot.slane %v1917_v62, 4 }
 0x93d   :  { %v1919_v9 = vmax.f32 %v1917_v62, %v1918_v7 }
 0x93f   :  { %v1920_v13 = vrot.slane %v1919_v9, 2 }
 0x941   :  { %v1921_v19 = vmax.f32 %v1919_v9, %v1920_v13 }
 0x943   :  { %v1922_v20 = vrot.slane %v1921_v19, 1 }
 0x945   :  { %v1923_v21 = vmax.f32 %v1921_v19, %v1922_v20 }
 0x947   :  { %v1925_v17 = vmul.f32 %v1923_v21, %v7532_v34  ;;  %v1924_v22 = vmul.f32 %v1923_v21, %v7521_v28  ;;  %v1926_v12 = vmul.f32 %v1923_v21, %v7543_v37 }
 0x949   :  { %v1930_v23 = vsel %vm146_vm3, %v1925_v17, 0.0  ;;  %v1927_v26 = vsel %vm146_vm3, %v1924_v22, 0.0  ;;  %v1933_v24 = vsel %vm146_vm3, %v1926_v12, 0.0 }
 0x94a   :  { %1931 = vadd.xlane.f32.xlu1 %v1930_v23  ;;  %1928 = vadd.xlane.f32.xlu0 %v1927_v26 }
 0x94e   :  { %1934 = vadd.xlane.f32.xlu0 %v1933_v24 }
 0x9d7   :  { %v1932_v29 = vpop.xlane.xlu1 %1931  ;;  %v1929_v30 = vpop.xlane.xlu0 %1928 }
 0x9d8   :  { %v1937_v55 = vsub.f32 %v1908_v59, %v1932_v29  ;;  %v1936_v27 = vsub.f32 %v1907_v53, %v1929_v30 }
 0x9da   :  { %v1941_v33 = vmul.f32 1.442695, %v1937_v55  ;;  %v1939_v41 = vmul.f32 1.442695, %v1936_v27 }
 0x9db   :  { %v1935_v44 = vpop.xlane.xlu0 %1934 }
 0x9dc   :  { %7109 = vpow2.f32 %v1941_v33  ;;  %v1938_v45 = vsub.f32 %v1909_v1, %v1935_v44 }
 0x9dd   :  { %7111 = vpow2.f32 %v1939_v41 }
 0x9de   :  { %v1943_v46 = vmul.f32 1.442695, %v1938_v45 }
 0x9e0   :  { %7113 = vpow2.f32 %v1943_v46 }
 0x9e6   :  { %v7110_v47 = vpop.eup %7109 }
 0x9e7   :  { %v7112_v51 = vpop.eup %7111  ;;  %v1946_v52 = vmul.f32 %v7110_v47, %v7532_v34 }
 0x9e8   :  { %v1945_v56 = vmul.f32 %v7112_v51, %v7521_v28 }
 0x9e9   :  { %v1949_v54 = vsel %vm146_vm3, %v1946_v52, 0.0 }
 0x9ea   :  { %v7114_v61 = vpop.eup %7113  ;;  %v1948_v59 = vsel %vm146_vm3, %v1945_v56, 0.0 }
 0x9eb   :  { %v1947_v53 = vmul.f32 %v7114_v61, %v7543_v37  ;;  %v1950_v0 = vadd.f32 %v1949_v54, %v1948_v59  ;;  %v1439_v59 = vld [vmem:[#allocation4 + $0x88] sm:$0xff] }
 0x9ed   :  { %v1951_v3 = vsel %vm146_vm3, %v1947_v53, 0.0 }
 0x9ee   :  { %v1952_v1 = vadd.f32 %v1951_v3, %v1950_v0 }
 0x9f0   :  { %v1953_v6 = vrot.slane %v1952_v1, 4 }
 0x9f2   :  { %v1954_v8 = vadd.f32 %v1953_v6, %v1952_v1 }
 0x9f4   :  { %v1955_v10 = vrot.slane %v1954_v8, 2 }
 0x9f6   :  { %v1956_v14 = vadd.f32 %v1955_v10, %v1954_v8 }
 0x9f8   :  { %v1957_v62 = vrot.slane %v1956_v14, 1 }
 0x9fa   :  { %v1958_v7 = vadd.f32 %v1957_v62, %v1956_v14  ;;  %v2418_v62 = vld [vmem:[#allocation2 + $0xe8] sm:$0xff] }
 0x9fc   :  { %v1960_v9 = vmul.f32 %v1958_v7, %v7532_v34  ;;  %v1959_v13 = vmul.f32 %v1958_v7, %v7521_v28  ;;  %v1961_v21 = vmul.f32 %v1958_v7, %v7543_v37 }
 0x9fe   :  { %v1965_v19 = vsel %vm146_vm3, %v1960_v9, 0.0  ;;  %v1962_v20 = vsel %vm146_vm3, %v1959_v13, 0.0  ;;  %v1968_v17 = vsel %vm146_vm3, %v1961_v21, 0.0  ;;  %v2417_v21 = vld [vmem:[#allocation2 + $0xe0] sm:$0xff] }
 0x9ff   :  { %1966 = vadd.xlane.f32.xlu0 %v1965_v19  ;;  %1963 = vadd.xlane.f32.xlu1 %v1962_v20  ;;  %v2413_v20 = vld [vmem:[#allocation2 + $0xc0] sm:$0xff] }
 0xa03   :  { %1969 = vadd.xlane.f32.xlu1 %v1968_v17 }
 0xa8c   :  { %v1967_v22 = vpop.xlane.xlu0 %1966  ;;  %v1964_v23 = vpop.xlane.xlu1 %1963 }
 0xa8d   :  { %v1972_v26 = vmax.f32 %v1967_v22, 1e-06  ;;  %v1971_v12 = vmax.f32 %v1964_v23, 1e-06  ;;  %v1437_v22 = vld [vmem:[#allocation4 + $0x78] sm:$0xff] }
 0xa8e   :  { %v1441_v23 = vld [vmem:[#allocation4 + $0x98] sm:$0xff] }
 0xa8f   :  { %7115 = vrcp.f32 %v1972_v26  ;;  %v6924_v26 = vpack.c.bf16 %v2417_v21, %v2413_v20 }
 0xa90   :  { %7117 = vrcp.f32 %v1971_v12  ;;  %v1970_v24 = vpop.xlane.xlu1 %1969  ;;  %v6920_v12 = vpack.c.bf16 %v1441_v23, %v1437_v22 }
 0xa91   :  { %v1973_v29 = vmax.f32 %v1970_v24, 1e-06  ;;  %v7850_v24 = vld [vmem:[#allocation2 + $0x108] sm:$0xff] }
 0xa93   :  { %7119 = vrcp.f32 %v1973_v29  ;;  %v2416_v29 = vld [vmem:[#allocation2 + $0xd8] sm:$0xff] }
 0xa99   :  { %v7116_v30 = vpop.eup %7115 }
 0xa9a   :  { %v7118_v55 = vpop.eup %7117  ;;  %v1978_v27 = vmul.f32 %v7116_v30, %v7110_v47  ;;  %v1436_v47 = vld [vmem:[#allocation4 + $0x70] sm:$0xff]  ;;  %v2420_v30 = vld [vmem:[#allocation2 + $0xf8] sm:$0xff] }
 0xa9b   :  { %v1977_v33 = vmul.f32 %v7118_v55, %v7112_v51  ;;  %v1440_v51 = vld [vmem:[#allocation4 + $0x90] sm:$0xff]  ;;  %v2421_v55 = vld [vmem:[#allocation2 + $0x100] sm:$0xff] }
 0xa9c   :  { %v1981_v41 = vmul.f32 %v1978_v27, %v7791_v43  ;;  %v6907_v54 = vpack.c.bf16 %v1440_v51, %v1436_v47  ;;  %v1435_v43 = vld [vmem:[#allocation4 + $0x68] sm:$0xff]  ;;  %v2415_v27 = vld [vmem:[#allocation2 + $0xd0] sm:$0xff] }
 0xa9d   :  { %v7120_v44 = vpop.eup %7119  ;;  %v1980_v45 = vmul.f32 %v1977_v33, %v7789_v35  ;;  %v6909_v53 = vpack.c.bf16 %v1439_v59, %v1435_v43  ;;  %v1444_v35 = vld [vmem:[#allocation4 + $0xb0] sm:$0xff] }
 0xa9e   :  { %v1979_v46 = vmul.f32 %v7120_v44, %v7114_v61  ;;  %v2419_v33 = vld [vmem:[#allocation2 + $0xf0] sm:$0xff] }
 0xa9f   :  { %v6903_v52 = vpack.c.bf16 %v1981_v41, %v1980_v45 }
 0xaa0   :  { %v1982_v56 = vmul.f32 %v1979_v46, %v7793_v50  ;;  %v1443_v50 = vld [vmem:[#allocation4 + $0xa8] sm:$0xff] }
 0xaa1   :  { %6904 = vmatprep.subr.bf16.mxu0 %v6903_v52 }
 0xaa2   :  { %6906 = vmatpush3.bf16.msra.mxu0 %v6903_v52 }
 0xaa3   :  { %6614 = vmatprep.subr.mxu0 %v1982_v56 }
 0xaa6   :  { %6615 = vmatpush3.msra.mxu0 %v1982_v56 }
 0xaa7   :  { %6617 = vmatmul.mubr.msk.f32.vlgmr.msra.gmra.mrb[40].mxu0 %vm984_vm9, %v7625_v15  ;;  %6908 = vmatprep.subr.bf16.mxu0 %v6907_v54  ;;  %v1461_v15 = vrot.slane %v7688_v5, %v7507_v11 }
 0xaa8   :  { %2136 = vmatprep.mubr.f32.mxu0 %v7268_v36  ;;  %6910 = vmatpush1.bf16.msra.mxu0 %v6909_v53 }
 0xaa9   :  { %6196 = vmatprep.subr.msk.mxu0 %vm311_vm4, %v1444_v35  ;;  %v1626_v61 = vadd.f32 %v7768_v57, %v1461_v15  ;;  %v1620_v0 = vadd.f32 %v7758_v4, %v1461_v15  ;;  %v2414_v57 = vld [vmem:[#allocation2 + $0xc8] sm:$0xff] }
 0xaaa   :  { %v6922_v9 = vpack.c.bf16 %v2418_v62, %v2414_v57 }
 0xaac   :  { %6197 = vmatpush1.msk.msra.mxu0 %vm311_vm4, %v1443_v50  ;;  %v2432_v50 = vrot.slane %v2421_v55, %v7507_v11 }
 0xaad   :  { %6915 = vmatprep.subr.bf16.mxu0 %v7266_v31 }
 0xb7a   :  { %v6618_v3 = vpop.f32.mrb[40].mxu0 }
 0xb7b   :  { %v2055_v1 = vadd.f32 %v6618_v3, %v1626_v61  ;;  %v2049_v6 = vpop.f32.mrb[41].mxu0  ;;  %v6212_v61 = vld [vmem:[%s8548_s8 + $0xc] ss:$0 sm:$0xff] }
 0xb7c   :  { %v2050_v8 = vadd.f32 %v2049_v6, %v1620_v0 }
 0xb7d   :  { %v7837_v14 = vmax.f32 %v2055_v1, 0.0  ;;  %v2436_v1 = vrot.slane %v7850_v24, %v7507_v11 }
 0xb7e   :  { %v7832_v10 = vmax.f32 %v2050_v8, 0.0 }
 0xb80   :  { %6198 = vmatmul.mubr.msk.f32.vlgmr.msra.gmra.mrb[42].mxu0 %vm438_vm8, %v7832_v10 }
 0xb81   :  { %2142 = vmatprep.mubr.f32.mxu0 %v7268_v36 }
 0xb84   :  { %6199 = vmatmul.mubr.msk.f32.gmra.mrb[44].mxu0 %vm438_vm8, %v7837_v14 }
 0xb85   :  { %6636 = vmatprep.mubr.msk.f32.mxu0 %vm7269_vm7, %v7268_v36 }
 0xc53   :  { %v2138_v5 = vpop.f32.mrb[42].mxu0 }
 0xc54   :  { %v2140_v4 = vpop.f32.mrb[43].mxu0 }
 0xc57   :  { %v2144_v7 = vpop.f32.mrb[44].mxu0 }
 0xc58   :  { %v6916_v13 = vpack.c.bf16 %v2144_v7, %v2138_v5  ;;  %v2146_v19 = vpop.f32.mrb[45].mxu0 }
 0xc59   :  { %v6912_v17 = vpack.c.bf16 %v2146_v19, %v2140_v4 }
 0xc5a   :  { %6918 = vmatpush3.bf16.msk.msra.mxu0 %vm7438_vm6, %v6916_v13 }
 0xc5b   :  { %6914 = vmatpush3.bf16.msk.msra.mxu1 %vm7438_vm6, %v6912_v17  ;;  %6923 = vmatprep.subr.bf16.mxu0 %v6922_v9 }
 0xc5c   :  { %6919 = vmatprep.subr.bf16.mxu1 %v7266_v31 }
 0xc5d   :  { %6637 = vmatmul.mubr.msk.f32.vlgmr.msra.gmra.mrb[46].mxu0 %vm146_vm3, %v7550_v38  ;;  %v6926_v38 = vpack.c.bf16 %v2420_v30, %v2416_v29  ;;  %v7933_v29 = vld [vmem:[%s8543_s3 + $0x18] sm:$0xff] }
 0xc5e   :  { %6624 = vmatmul.mubr.msk.f32.vlgmr.msra.gmra.mrb[44].mxu1 %vm146_vm3, %v7521_v28  ;;  %6639 = vmatprep.mubr.msk.f32.mxu0 %vm7269_vm7, %v7268_v36  ;;  %v1445_v28 = vld [vmem:[#allocation4 + $0xb8] sm:$0xff] }
 0xc5f   :  { %6626 = vmatprep.mubr.msk.f32.mxu1 %vm7269_vm7, %v7268_v36  ;;  %6925 = vmatpush1.bf16.msra.mxu0 %v6924_v26 }
 0xc60   :  { %6921 = vmatpush3.bf16.msra.mxu1 %v6920_v12  ;;  %6213 = vmatprep.subr.msk.mxu0 %vm311_vm4, %v7850_v24 }
 0xc61   :  { %6640 = vmatmul.mubr.msk.f32.gmra.mrb[48].mxu0 %vm146_vm3, %v7560_v39  ;;  %6649 = vmatprep.subr.mxu1 %v7268_v36  ;;  %v7881_v39 = vld [vmem:[#allocation2 + $0x118] sm:$0xff] }
 0xc62   :  { %6627 = vmatmul.mubr.msk.f32.gmra.mrb[46].mxu1 %vm146_vm3, %v7532_v34  ;;  %6642 = vmatprep.mubr.msk.f32.mxu0 %vm7269_vm7, %v7268_v36  ;;  %v6928_v34 = vpack.c.bf16 %v2419_v33, %v2415_v27  ;;  %v7949_v27 = vld [vmem:[%s8543_s3 + $0x20] sm:$0xff] }
 0xc63   :  { %6629 = vmatprep.mubr.msk.f32.mxu1 %vm7269_vm7, %v7268_v36  ;;  %6214 = vmatpush1.msk.msra.mxu0 %vm311_vm4, %v2421_v55 }
 0xc64   :  { %6650 = vmatpush3.msk.msra.mxu1 %vm311_vm4, %v1445_v28  ;;  %6930 = vmatprep.subr.bf16.mxu0 %v7266_v31 }
 0xc65   :  { %6643 = vmatmul.mubr.msk.f32.gmra.mrb[50].mxu0 %vm146_vm3, %v7568_v40  ;;  %6927 = vmatprep.subr.bf16.mxu1 %v6926_v38  ;;  %v2426_v40 = vld [vmem:[#allocation4 + $0xc0] sm:$0xff] }
 0xc66   :  { %6630 = vmatmul.mubr.msk.f32.gmra.mrb[48].mxu1 %vm146_vm3, %v7543_v37  ;;  %2521 = vmatprep.mubr.f32.mxu0 %v7268_v36  ;;  %v7891_v37 = vld [vmem:[#allocation2 + $0x110] sm:$0xff] }
 0xc67   :  { %6651 = vmatprep.mubr.msk.f32.mxu1 %vm7269_vm7, %v7268_v36  ;;  %v2440_v28 = vrot.slane %v7891_v37, %v7507_v11 }
 0xc69   :  { %6215 = vmatmul.mubr.msk.f32.vlgmr.msra.gmra.mrb[52].mxu0 %vm438_vm8, %v7832_v10 }
 0xc6a   :  { %6652 = vmatmul.mubr.msk.f32.vlgmr.msra.gmra.mrb[50].mxu1 %vm438_vm8, %v1417_v49  ;;  %2527 = vmatprep.mubr.f32.mxu0 %v7268_v36  ;;  %v6931_v49 = vpack.c.bf16 %v2427_v42, %v2426_v40 }
 0xc6b   :  { %6654 = vmatprep.mubr.msk.f32.mxu1 %vm7269_vm7, %v7268_v36  ;;  %6929 = vmatpush1.bf16.msra.mxu1 %v6928_v34 }
 0xc6c   :  { %6217 = vmatprep.subr.msk.mxu1 %vm311_vm4, %v7881_v39  ;;  %6932 = vmatpush3.bf16.msra.mxu0 %v6931_v49  ;;  %v7961_v49 = vld [vmem:[%s8543_s3 + $0x28] sm:$0xff] }
 0xc6d   :  { %6216 = vmatmul.mubr.msk.f32.gmra.mrb[54].mxu0 %vm438_vm8, %v7837_v14  ;;  %6664 = vmatprep.subr.mxu0 %v7268_v36 }
 0xc6e   :  { %6655 = vmatmul.mubr.msk.f32.gmra.mrb[52].mxu1 %vm438_vm8, %v1418_v60  ;;  %6666 = vmatprep.mubr.msk.f32.mxu0 %vm7269_vm7, %v7268_v36 }
 0xc6f   :  { %6657 = vmatprep.mubr.msk.f32.mxu1 %vm7269_vm7, %v7268_v36  ;;  %6218 = vmatpush1.msk.msra.mxu1 %vm311_vm4, %v7891_v37 }
 0xc70   :  { %6933 = vmatprep.subr.bf16.mxu1 %v7266_v31  ;;  %6665 = vmatpush3.msk.msra.mxu0 %vm311_vm4, %v2428_v58  ;;  %v7186_v58 = vld [vmem:[%s8543_s3] sm:$0xff] }
 0xc72   :  { %6658 = vmatmul.mubr.msk.f32.gmra.mrb[54].mxu1 %vm438_vm8, %v1419_v63 }
 0xc73   :  { %2598 = vmatprep.mubr.f32.mxu1 %v7268_v36 }
 0xc76   :  { %6219 = vmatmul.mubr.msk.f32.vlgmr.msra.gmra.mrb[56].mxu1 %vm438_vm8, %v7832_v10 }
 0xc77   :  { %2604 = vmatprep.mubr.f32.mxu1 %v7268_v36 }
 0xc7a   :  { %6220 = vmatmul.mubr.msk.f32.gmra.mrb[58].mxu1 %vm438_vm8, %v7837_v14 }
 0xc7b   :  { %6679 = vmatprep.mubr.msk.f32.mxu1 %vm7269_vm7, %v7268_v36 }
 0xd30   :  { %v2301_v60 = vpop.f32.mrb[46].mxu0 }
 0xd31   :  { %v2218_v2 = vpop.f32.mrb[44].mxu1  ;;  %v6638_v63 = vpop.f32.mrb[47].mxu0 }
 0xd32   :  { %v2302_v41 = vadd.f32 %v2301_v60, %v2218_v2  ;;  %v6625_v44 = vpop.f32.mrb[45].mxu1  ;;  %v7188_v60 = vld [vmem:[%s8543_s3 + $0x10] sm:$0xff] }
 0xd34   :  { %v2306_v45 = vpop.f32.mrb[48].mxu0 }
 0xd35   :  { %v2223_v46 = vpop.f32.mrb[46].mxu1  ;;  %v6641_v52 = vpop.f32.mrb[49].mxu0 }
 0xd36   :  { %v2307_v56 = vadd.f32 %v2306_v45, %v2223_v46  ;;  %v6628_v47 = vpop.f32.mrb[47].mxu1 }
 0xd38   :  { %v2311_v51 = vpop.f32.mrb[50].mxu0 }
 0xd39   :  { %v2228_v54 = vpop.f32.mrb[48].mxu1  ;;  %v6644_v43 = vpop.f32.mrb[51].mxu0 }
 0xd3a   :  { %v2312_v59 = vadd.f32 %v2311_v51, %v2228_v54  ;;  %v6631_v53 = vpop.f32.mrb[49].mxu1 }
 0xd3c   :  { %v2523_v35 = vpop.f32.mrb[52].mxu0 }
 0xd3d   :  { %v2384_v15 = vpop.f32.mrb[50].mxu1  ;;  %v2525_v0 = vpop.f32.mrb[53].mxu0  ;;  %v2524_v14 = vadd.f32 %v2523_v35, %v2432_v50 }
 0xd3e   :  { %v2398_v3 = vadd.f32 %v2384_v15, %v2302_v41  ;;  %v6653_v6 = vpop.f32.mrb[51].mxu1  ;;  %v2526_v7 = vadd.f32 %v2525_v0, %v2436_v1 }
 0xd40   :  { %v2406_v8 = vadd.f32 %v6212_v61, %v2398_v3  ;;  %v2529_v10 = vpop.f32.mrb[54].mxu0 }
 0xd41   :  { %v2530_v5 = vadd.f32 %v2529_v10, %v2432_v50  ;;  %v2389_v4 = vpop.f32.mrb[52].mxu1  ;;  %v2531_v57 = vpop.f32.mrb[55].mxu0 }
 0xd42   :  { %v2409_v62 = vmax.f32 %v2406_v8, 0.0  ;;  %v2399_v9 = vadd.f32 %v2389_v4, %v2307_v56  ;;  %v2532_v13 = vadd.f32 %v2531_v57, %v2436_v1  ;;  %v6656_v19 = vpop.f32.mrb[53].mxu1 }
 0xd43   :  { %v6934_v20 = vpack.c.bf16 %v2530_v5, %v2524_v14 }
 0xd44   :  { %v2407_v21 = vadd.f32 %v6212_v61, %v2399_v9  ;;  %v6940_v17 = vpack.c.bf16 %v2532_v13, %v2526_v7  ;;  %6667 = vmatmul.mubr.msk.f32.vlgmr.msra.gmra.mrb[56].mxu0 %vm438_vm8, %v2409_v62 }
 0xd45   :  { %v2394_v22 = vpop.f32.mrb[54].mxu1  ;;  %6936 = vmatpush3.bf16.msk.msra.mxu1 %vm7438_vm6, %v6934_v20  ;;  %6669 = vmatprep.mubr.msk.f32.mxu0 %vm7269_vm7, %v7268_v36 }
 0xd46   :  { %v2410_v23 = vmax.f32 %v2407_v21, 0.0  ;;  %v2400_v26 = vadd.f32 %v2394_v22, %v2312_v59  ;;  %v6659_v12 = vpop.f32.mrb[55].mxu1 }
 0xd48   :  { %v2408_v24 = vadd.f32 %v6212_v61, %v2400_v26  ;;  %6670 = vmatmul.mubr.msk.f32.gmra.mrb[58].mxu0 %vm438_vm8, %v2410_v23  ;;  %6680 = vmatmul.mubr.msk.f32.vlgmr.msra.gmra.mrb[60].mxu1 %vm146_vm3, %v7933_v29 }
 0xd49   :  { %v2600_v30 = vpop.f32.mrb[56].mxu1  ;;  %6672 = vmatprep.mubr.msk.f32.mxu0 %vm7269_vm7, %v7268_v36  ;;  %6682 = vmatprep.mubr.msk.f32.mxu1 %vm7269_vm7, %v7268_v36 }
 0xd4a   :  { %v2411_v55 = vmax.f32 %v2408_v24, 0.0  ;;  %v7943_v38 = vpop.f32.mrb[57].mxu1  ;;  %v2601_v34 = vadd.f32 %v2600_v30, %v2440_v28 }
 0xd4c   :  { %6673 = vmatmul.mubr.msk.f32.gmra.mrb[60].mxu0 %vm438_vm8, %v2411_v55  ;;  %6683 = vmatmul.mubr.msk.f32.gmra.mrb[62].mxu1 %vm146_vm3, %v7949_v27 }
 0xd4d   :  { %v2606_v33 = vpop.f32.mrb[58].mxu1  ;;  %2856 = vmatprep.mubr.f32.mxu0 %v7268_v36  ;;  %6685 = vmatprep.mubr.msk.f32.mxu1 %vm7269_vm7, %v7268_v36 }
 0xd4e   :  { %v2607_v37 = vadd.f32 %v2606_v33, %v2440_v28  ;;  %v7956_v40 = vpop.f32.mrb[59].mxu1 }
 0xd50   :  { %v6937_v42 = vpack.c.bf16 %v2607_v37, %v2601_v34  ;;  %6686 = vmatmul.mubr.msk.f32.gmra.mrb[64].mxu1 %vm146_vm3, %v7961_v49 }
 0xd51   :  { %6694 = vmatprep.mubr.msk.f32.mxu1 %vm984_vm9, %v7615_v48  ;;  %v7187_v48 = vld [vmem:[%s8543_s3 + $0x8] sm:$0xff] }
 0xd52   :  { %6939 = vmatprep.subr.msk.bf16.mxu0 %vm7438_vm6, %v6937_v42 }
 0xd53   :  { %6942 = vmatpush1.bf16.msk.msra.mxu0 %vm7438_vm6, %v6940_v17 }
 0xd54   :  { %6951 = vmatprep.subr.bf16.mxu0 %v7266_v31 }
 0xd56   :  { %6231 = vmatmul.mubr.msk.f32.vlgmr.msra.gmra.mrb[62].mxu0 %vm146_vm3, %v7186_v58 }
 0xd57   :  { %2862 = vmatprep.mubr.f32.mxu0 %v7268_v36 }
 0xd5a   :  { %6232 = vmatmul.mubr.msk.f32.gmra.mrb[64].mxu0 %vm146_vm3, %v7187_v48 }
 0xd5b   :  { %2868 = vmatprep.mubr.f32.mxu0 %v7268_v36 }
 0xd5e   :  { %6233 = vmatmul.mubr.msk.f32.gmra.mrb[66].mxu0 %vm146_vm3, %v7188_v60 }
 0xd5f   :  { %6710 = vmatprep.mubr.msk.f32.mxu0 %vm7269_vm7, %v7268_v36 }
 0xe17   :  { %v2689_v2 = vpop.f32.mrb[56].mxu0 }
 0xe18   :  { %v6668_v63 = vpop.f32.mrb[57].mxu0 }
 0xe1b   :  { %v2694_v41 = vpop.f32.mrb[58].mxu0  ;;  %v2772_v44 = vpop.f32.mrb[60].mxu1 }
 0xe1c   :  { %v6671_v45 = vpop.f32.mrb[59].mxu0  ;;  %v6681_v46 = vpop.f32.mrb[61].mxu1 }
 0xe1f   :  { %v2699_v52 = vpop.f32.mrb[60].mxu0  ;;  %v2777_v56 = vpop.f32.mrb[62].mxu1 }
 0xe20   :  { %v6674_v47 = vpop.f32.mrb[61].mxu0  ;;  %v6684_v51 = vpop.f32.mrb[63].mxu1 }
 0xe23   :  { %v2782_v54 = vpop.f32.mrb[64].mxu1 }
 0xe24   :  { %v6687_v43 = vpop.f32.mrb[65].mxu1 }
 0xe29   :  { %v2858_v59 = vpop.f32.mrb[62].mxu0 }
 0xe2a   :  { %v2875_v53 = vadd.f32 %v2858_v59, %v2689_v2  ;;  %v2860_v35 = vpop.f32.mrb[63].mxu0 }
 0xe2b   :  { %v7988_v50 = vadd.f32 %v2860_v35, %v2689_v2 }
 0xe2c   :  { %v2881_v15 = vmul.f32 %v2875_v53, %v2772_v44 }
 0xe2d   :  { %v2864_v61 = vpop.f32.mrb[64].mxu0 }
 0xe2e   :  { %v2876_v0 = vadd.f32 %v2864_v61, %v2694_v41  ;;  %2884 = vadd.xlane.f32.xlu0 %v2881_v15  ;;  %v2866_v3 = vpop.f32.mrb[65].mxu0 }
 0xe2f   :  { %v7990_v1 = vadd.f32 %v2866_v3, %v2694_v41 }
 0xe30   :  { %v2882_v6 = vmul.f32 %v2876_v0, %v2777_v56 }
 0xe31   :  { %v2870_v8 = vpop.f32.mrb[66].mxu0 }
 0xe32   :  { %v2877_v10 = vadd.f32 %v2870_v8, %v2699_v52  ;;  %2886 = vadd.xlane.f32.xlu1 %v2882_v6  ;;  %v2872_v14 = vpop.f32.mrb[67].mxu0 }
 0xe33   :  { %v7992_v5 = vadd.f32 %v2872_v14, %v2699_v52 }
 0xe34   :  { %v2883_v4 = vmul.f32 %v2877_v10, %v2782_v54 }
 0xe36   :  { %2888 = vadd.xlane.f32.xlu0 %v2883_v4 }
 0xebb   :  { %v2885_v57 = vpop.xlane.xlu0 %2884 }
 0xebc   :  { %v2890_v62 = vmul.f32 0.2236068, %v2885_v57 }
 0xebe   :  { %v2893_v13 = vadd.f32 %v2890_v62, %v7581_v16 }
 0xebf   :  { %v2887_v7 = vpop.xlane.xlu1 %2886 }
 0xec0   :  { %v2891_v9 = vmul.f32 0.2236068, %v2887_v7  ;;  %v2896_v22 = vsel %vm146_vm3, %v2893_v13, -inf }
 0xec2   :  { %v2894_v19 = vadd.f32 %v2891_v9, %v7583_v18 }
 0xec3   :  { %v2889_v20 = vpop.xlane.xlu0 %2888 }
 0xec4   :  { %v2897_v21 = vsel %vm146_vm3, %v2894_v19, -inf  ;;  %v2892_v17 = vmul.f32 0.2236068, %v2889_v20 }
 0xec5   :  { %v2899_v26 = vmax.f32 %v2896_v22, %v2897_v21 }
 0xec6   :  { %v2895_v23 = vadd.f32 %v2892_v17, %v7588_v25 }
 0xec8   :  { %v2898_v12 = vsel %vm146_vm3, %v2895_v23, -inf }
 0xec9   :  { %v2900_v24 = vmax.f32 %v2899_v26, %v2898_v12 }
 0xecb   :  { %v2901_v30 = vrot.slane %v2900_v24, 4 }
 0xecd   :  { %v2902_v55 = vmax.f32 %v2900_v24, %v2901_v30 }
 0xecf   :  { %v2903_v28 = vrot.slane %v2902_v55, 2 }
 0xed1   :  { %v2904_v33 = vmax.f32 %v2902_v55, %v2903_v28 }
 0xed3   :  { %v2905_v34 = vrot.slane %v2904_v33, 1 }
 0xed5   :  { %v2906_v16 = vmax.f32 %v2904_v33, %v2905_v34 }
 0xed7   :  { %v2908_v18 = vmul.f32 %v7949_v27, %v2906_v16  ;;  %v2907_v37 = vmul.f32 %v7933_v29, %v2906_v16  ;;  %v2909_v25 = vmul.f32 %v7961_v49, %v2906_v16 }
 0xed9   :  { %v2913_v42 = vsel %vm146_vm3, %v2908_v18, 0.0  ;;  %v2910_v58 = vsel %vm146_vm3, %v2907_v37, 0.0  ;;  %v2916_v48 = vsel %vm146_vm3, %v2909_v25, 0.0  ;;  %v7189_v18 = vld [vmem:[%s8543_s3 + $0x38] sm:$0xff]  ;;  %v3221_v37 = vld [vmem:[%s8542_s2] sm:$0xff] }
 0xeda   :  { %2914 = vadd.xlane.f32.xlu0 %v2913_v42  ;;  %2911 = vadd.xlane.f32.xlu1 %v2910_v58  ;;  %v3222_v42 = vld [vmem:[%s8542_s2 + $0x8] sm:$0xf]  ;;  %v3224_v58 = vsel %vm3223_vm10, %v3221_v37, 0.0 }
 0xedb   :  { %v3226_v25 = vsel %vm3225_vm11, %v3222_v42, 0.0 }
 0xede   :  { %2917 = vadd.xlane.f32.xlu1 %v2916_v48  ;;  %v3227_v48 = vadd.f32 %v3226_v25, %v3224_v58  ;;  %v6244_v58 = vld [vmem:[%s8548_s8 + $0x9] ss:$0 sm:$0xff]  ;;  %v3355_v25 = vld [vmem:[#allocation6 + $0x40] sm:$0xff] }
 0xf67   :  { %v2915_v60 = vpop.xlane.xlu0 %2914  ;;  %v2912_v2 = vpop.xlane.xlu1 %2911 }
 0xf68   :  { %v2920_v63 = vsub.f32 %v2891_v9, %v2915_v60  ;;  %v2919_v41 = vsub.f32 %v2890_v62, %v2912_v2  ;;  %v3228_v60 = vrot.slane %v3227_v48, 4 }
 0xf6a   :  { %v2924_v44 = vmul.f32 1.442695, %v2920_v63  ;;  %v2922_v45 = vmul.f32 1.442695, %v2919_v41  ;;  %v3229_v2 = vadd.f32 %v3228_v60, %v3227_v48 }
 0xf6b   :  { %v2918_v46 = vpop.xlane.xlu1 %2917 }
 0xf6c   :  { %7121 = vpow2.f32 %v2924_v44  ;;  %v2921_v52 = vsub.f32 %v2892_v17, %v2918_v46  ;;  %v3230_v63 = vrot.slane %v3229_v2, 2 }
 0xf6d   :  { %7123 = vpow2.f32 %v2922_v45 }
 0xf6e   :  { %v2926_v56 = vmul.f32 1.442695, %v2921_v52  ;;  %v3231_v41 = vadd.f32 %v3230_v63, %v3229_v2 }
 0xf70   :  { %7125 = vpow2.f32 %v2926_v56  ;;  %v3232_v44 = vrot.slane %v3231_v41, 1 }
 0xf72   :  { %v3233_v45 = vadd.f32 %v3232_v44, %v3231_v41 }
 0xf74   :  { %v3234_v46 = vmul.f32 0.083333336, %v3233_v45 }
 0xf76   :  { %v7122_v47 = vpop.eup %7121  ;;  %v3235_v52 = vsub.f32 %v3221_v37, %v3234_v46  ;;  %v3236_v56 = vsub.f32 %v3222_v42, %v3234_v46  ;;  %v3356_v37 = vld [vmem:[#allocation6 + $0x48] sm:$0xff] }
 0xf77   :  { %v7124_v51 = vpop.eup %7123  ;;  %v2929_v54 = vmul.f32 %v7949_v27, %v7122_v47 }
 0xf78   :  { %v2928_v43 = vmul.f32 %v7933_v29, %v7124_v51 }
 0xf79   :  { %v2932_v59 = vsel %vm146_vm3, %v2929_v54, 0.0 }
 0xf7a   :  { %v7126_v53 = vpop.eup %7125  ;;  %v2931_v35 = vsel %vm146_vm3, %v2928_v43, 0.0 }
 0xf7b   :  { %v2930_v15 = vmul.f32 %v7961_v49, %v7126_v53  ;;  %v2933_v61 = vadd.f32 %v2932_v59, %v2931_v35 }
 0xf7d   :  { %v2934_v0 = vsel %vm146_vm3, %v2930_v15, 0.0 }
 0xf7e   :  { %v2935_v3 = vadd.f32 %v2934_v0, %v2933_v61 }
 0xf80   :  { %v2936_v6 = vrot.slane %v2935_v3, 4 }
 0xf82   :  { %v2937_v8 = vadd.f32 %v2936_v6, %v2935_v3 }
 0xf84   :  { %v2938_v10 = vrot.slane %v2937_v8, 2 }
 0xf86   :  { %v2939_v14 = vadd.f32 %v2938_v10, %v2937_v8  ;;  %v2444_v10 = vrot.slane %v7881_v39, %v7507_v11 }
 0xf88   :  { %v2940_v4 = vrot.slane %v2939_v14, 1 }
 0xf8a   :  { %v2941_v57 = vadd.f32 %v2940_v4, %v2939_v14  ;;  %v2609_v14 = vadd.f32 %v7956_v40, %v2444_v10  ;;  %v2603_v4 = vadd.f32 %v7943_v38, %v2444_v10  ;;  %v3043_v38 = vrot.slane %v7189_v18, 4 }
 0xf8c   :  { %v2943_v62 = vmul.f32 %v7949_v27, %v2941_v57  ;;  %v2942_v7 = vmul.f32 %v7933_v29, %v2941_v57  ;;  %v2944_v19 = vmul.f32 %v7961_v49, %v2941_v57 }
 0xf8e   :  { %v2948_v9 = vsel %vm146_vm3, %v2943_v62, 0.0  ;;  %v2945_v13 = vsel %vm146_vm3, %v2942_v7, 0.0  ;;  %v2951_v20 = vsel %vm146_vm3, %v2944_v19, 0.0  ;;  %v3254_v19 = vld [vmem:[%s8548_s8 + $0x48] sm:$0x3] }
 0xf8f   :  { %2949 = vadd.xlane.f32.xlu1 %v2948_v9  ;;  %2946 = vadd.xlane.f32.xlu0 %v2945_v13  ;;  %v3253_v13 = vld [vmem:[%s8548_s8 + $0x40] sm:$0xff] }
 0xf93   :  { %2952 = vadd.xlane.f32.xlu0 %v2951_v20 }
0x101c   :  { %v2950_v21 = vpop.xlane.xlu1 %2949  ;;  %v2947_v17 = vpop.xlane.xlu0 %2946 }
0x101d   :  { %v2955_v22 = vmax.f32 %v2950_v21, 1e-06  ;;  %v2954_v23 = vmax.f32 %v2947_v17, 1e-06  ;;  %v6954_v17 = vpack.c.bf16 %v3254_v19, %v3253_v13  ;;  %v8111_v13 = vld [vmem:[%s8544_s4 + $0x8] sm:$0xff]  ;;  %v8116_v19 = vld [vmem:[%s8544_s4] sm:$0xff] }
0x101f   :  { %7127 = vrcp.f32 %v2955_v22 }
0x1020   :  { %7129 = vrcp.f32 %v2954_v23  ;;  %v2953_v27 = vpop.xlane.xlu0 %2952 }
0x1021   :  { %v2956_v26 = vmax.f32 %v2953_v27, 1e-06  ;;  %v3121_v27 = vld [vmem:[%s8548_s8 + $0x38] sm:$0xf] }
0x1023   :  { %7131 = vrcp.f32 %v2956_v26  ;;  %v3348_v26 = vld [vmem:[#allocation6 + $0x8] sm:$0xff] }
0x1029   :  { %v7128_v29 = vpop.eup %7127 }
0x102a   :  { %v7130_v12 = vpop.eup %7129  ;;  %v2961_v24 = vmul.f32 %v7128_v29, %v7122_v47  ;;  %v3237_v47 = vmul.f32 %v3235_v52, %v3235_v52  ;;  %v3352_v29 = vld [vmem:[#allocation6 + $0x28] sm:$0xff] }
0x102b   :  { %v2960_v30 = vmul.f32 %v7130_v12, %v7124_v51  ;;  %v3238_v51 = vmul.f32 %v3236_v56, %v3236_v56  ;;  %v3350_v12 = vld [vmem:[#allocation6 + $0x18] sm:$0xff] }
0x102c   :  { %v2964_v49 = vmul.f32 %v2961_v24, %v7990_v1  ;;  %v3120_v1 = vld [vmem:[%s8548_s8 + $0x30] sm:$0xff]  ;;  %v3239_v54 = vsel %vm3223_vm10, %v3237_v47, 0.0  ;;  %v6960_v24 = vpack.c.bf16 %v3352_v29, %v3348_v26 }
0x102d   :  { %v7132_v55 = vpop.eup %7131  ;;  %v2963_v28 = vmul.f32 %v2960_v30, %v7988_v50  ;;  %v3119_v50 = vld [vmem:[%s8548_s8 + $0x28] sm:$0xff]  ;;  %v3240_v43 = vsel %vm3225_vm11, %v3238_v51, 0.0  ;;  %v3354_v30 = vld [vmem:[#allocation6 + $0x38] sm:$0xff]  ;;  %v3362_v51 = vrot.slane %v3355_v25, %v7507_v11 }
0x102e   :  { %v2962_v33 = vmul.f32 %v7132_v55, %v7126_v53  ;;  %v3241_v59 = vadd.f32 %v3240_v43, %v3239_v54  ;;  %v3349_v55 = vld [vmem:[#allocation6 + $0x10] sm:$0xff] }
0x102f   :  { %v6943_v34 = vpack.c.bf16 %v2964_v49, %v2963_v28  ;;  %v6964_v49 = vpack.c.bf16 %v3354_v30, %v3350_v12  ;;  %v3353_v28 = vld [vmem:[#allocation6 + $0x30] sm:$0xff] }
0x1030   :  { %v2965_v16 = vmul.f32 %v2962_v33, %v7992_v5  ;;  %v6952_v5 = vpack.c.bf16 %v3120_v1, %v3119_v50  ;;  %v3242_v53 = vrot.slane %v3241_v59, 4  ;;  %v6966_v33 = vpack.c.bf16 %v3353_v28, %v3349_v55  ;;  %v3351_v50 = vld [vmem:[#allocation6 + $0x20] sm:$0xff] }
0x1031   :  { %6944 = vmatprep.subr.bf16.mxu1 %v6943_v34 }
0x1032   :  { %6946 = vmatpush3.bf16.msra.mxu1 %v6943_v34  ;;  %6953 = vmatpush3.bf16.msra.mxu0 %v6952_v5  ;;  %v3243_v35 = vadd.f32 %v3242_v53, %v3241_v59  ;;  %v8066_v34 = vld [vmem:[#allocation6 + $0x58] sm:$0xff] }
0x1033   :  { %6692 = vmatprep.subr.mxu1 %v2965_v16  ;;  %6708 = vmatprep.subr.mxu0 %v7268_v36 }
0x1034   :  { %v3244_v15 = vrot.slane %v3243_v35, 2 }
0x1036   :  { %6693 = vmatpush3.msra.mxu1 %v2965_v16  ;;  %v3245_v61 = vadd.f32 %v3244_v15, %v3243_v35  ;;  %6709 = vmatpush3.msk.msra.mxu0 %vm311_vm4, %v3121_v27  ;;  %v3357_v16 = vld [vmem:[#allocation6 + $0x50] sm:$0xff] }
0x1037   :  { %6695 = vmatmul.mubr.msk.f32.vlgmr.msra.gmra.mrb[66].mxu1 %vm984_vm9, %v7189_v18  ;;  %6947 = vmatprep.subr.bf16.mxu1 %v7266_v31  ;;  %v3347_v18 = vld [vmem:[#allocation6] sm:$0xff]  ;;  %v3370_v35 = vrot.slane %v3357_v16, %v7507_v11 }
0x1038   :  { %6701 = vmatprep.mubr.msk.f32.mxu1 %vm7269_vm7, %v7268_v36  ;;  %v3246_v0 = vrot.slane %v3245_v61, 1  ;;  %6961 = vmatprep.subr.bf16.mxu0 %v6960_v24  ;;  %v6962_v1 = vpack.c.bf16 %v3351_v50, %v3347_v18 }
0x103a   :  { %v3247_v3 = vadd.f32 %v3246_v0, %v3245_v61  ;;  %v3366_v61 = vrot.slane %v3356_v37, %v7507_v11 }
0x103c   :  { %v3248_v6 = vmul.f32 0.083333336, %v3247_v3 }
0x103e   :  { %v3249_v8 = vadd.f32 1e-05, %v3248_v6 }
0x1040   :  { %7133 = vrsqrt.f32 %v3249_v8 }
0x104a   :  { %v7134_v39 = vpop.eup %7133 }
0x104b   :  { %v3251_v22 = vmul.f32 %v7134_v39, %v3235_v52  ;;  %v3252_v23 = vmul.f32 %v7134_v39, %v3236_v56 }
0x110a   :  { %v6696_v57 = vpop.f32.mrb[66].mxu1 }
0x110b   :  { %v3038_v62 = vadd.f32 %v6696_v57, %v2609_v14  ;;  %v3032_v7 = vpop.f32.mrb[67].mxu1 }
0x110c   :  { %v3033_v9 = vadd.f32 %v3032_v7, %v2603_v4 }
0x110d   :  { %v3042_v20 = vmax.f32 %v3038_v62, 0.0 }
0x110e   :  { %v3041_v21 = vmax.f32 %v3033_v9, 0.0 }
0x1110   :  { %v6948_v40 = vpack.c.bf16 %v3042_v20, %v3041_v21  ;;  %v6242_v20 = vadd.f32 -1.0, %v8111_v13  ;;  %v6241_v21 = vadd.f32 -1.0, %v8116_v19 }
0x1112   :  { %6950 = vmatpush3.bf16.msk.msra.mxu1 %vm7438_vm6, %v6948_v40  ;;  %v8120_v39 = vmul.f32 1e+30, %v6242_v20  ;;  %v8122_v40 = vmul.f32 1e+30, %v6241_v21  ;;  %v3770_v20 = vld [vmem:[#allocation6 + $0xa0] sm:$0xff]  ;;  %v3772_v21 = vld [vmem:[#allocation6 + $0xb0] sm:$0xff] }
0x1113   :  { %6956 = vmatprep.subr.msk.bf16.mxu1 %vm6955_vm13, %v6954_v17 }
0x1115   :  { %6702 = vmatmul.mubr.msk.f32.vlgmr.msra.gmra.mrb[68].mxu1 %vm146_vm3, %v3043_v38 }
0x1116   :  { %6959 = vmatpush3.bf16.msk.msra.mxu1 %vm6955_vm13, %v6954_v17  ;;  %6717 = vmatprep.mubr.msk.f32.mxu1 %vm3223_vm10, %v3251_v22 }
0x1117   :  { %6965 = vmatprep.subr.bf16.mxu1 %v6964_v49 }
0x1119   :  { %6718 = vmatmul.mubr.msk.f32.vlgmr.msra.gmra.mrb[70].mxu1 %vm3223_vm10, %v3252_v23 }
0x111a   :  { %3534 = vmatprep.mubr.f32.mxu1 %v7268_v36  ;;  %6967 = vmatpush1.bf16.msra.mxu1 %v6966_v33 }
0x111b   :  { %6252 = vmatprep.subr.msk.mxu1 %vm311_vm4, %v8066_v34 }
0x111e   :  { %6253 = vmatpush1.msk.msra.mxu1 %vm311_vm4, %v3357_v16 }
0x11e8   :  { %v3115_v5 = vpop.f32.mrb[68].mxu1 }
0x11e9   :  { %v6703_v42 = vpop.f32.mrb[69].mxu1  ;;  %6711 = vmatmul.mubr.msk.f32.vlgmr.msra.gmra.mrb[68].mxu0 %vm438_vm8, %v3115_v5 }
0x11ea   :  { %6963 = vmatpush1.bf16.msra.mxu0 %v6962_v1  ;;  %3457 = vmatprep.mubr.f32.mxu0 %v7268_v36  ;;  %v3207_v42 = vld [vmem:[%s8544_s4 + $0x18] sm:$0xff] }
0x11eb   :  { %6248 = vmatprep.subr.msk.mxu0 %vm311_vm4, %v3356_v37  ;;  %vm3211_vm15 = vcmp.gt.f32.partialorder %v3207_v42, 0.5 }
0x11ec   :  { %v6719_v48 = vpop.f32.mrb[70].mxu1 }
0x11ed   :  { %v3342_v60 = vadd.f32 %v6719_v48, %v6244_v58  ;;  %v3336_v2 = vpop.f32.mrb[71].mxu1 }
0x11ee   :  { %v3337_v63 = vadd.f32 %v6244_v58, %v3336_v2  ;;  %6249 = vmatpush1.msk.msra.mxu0 %vm311_vm4, %v3355_v25  ;;  %v3208_v58 = vld [vmem:[%s8544_s4 + $0x20] sm:$0xff]  ;;  %v7270_v25 = vmov 0  }
0x11ef   :  { %v3346_v41 = vmax.f32 %v3342_v60, 0.0  ;;  %7091 = vset.pattern.permute.xlu1 %v7270_v25  ;;  %7092 = vset.pattern.permute.xlu0 %v7270_v25  ;;  %vm3212_vm0 = vcmp.gt.f32.partialorder %v3208_v58, 0.5  ;;  %v3737_v48 = vsel %vm3211_vm15, 1, %v7270_v25 }
0x11f0   :  { %v8078_v44 = vmax.f32 %v3337_v63, 0.0  ;;  %v3738_v60 = vsel %vm3212_vm0, 1, %v7270_v25 }
0x11f1   :  { %v3755_v45 = vrot.slane %v3346_v41, 4 }
0x11f2   :  { %v3754_v46 = vrot.slane %v8078_v44, 4  ;;  %6250 = vmatmul.mubr.msk.f32.vlgmr.msra.gmra.mrb[70].mxu0 %vm438_vm8, %v8078_v44  ;;  %6254 = vmatmul.mubr.msk.f32.vlgmr.msra.gmra.mrb[72].mxu1 %vm438_vm8, %v8078_v44  ;;  %v3777_v44 = vrot.slane %v3770_v20, %v7507_v11 }
0x11f3   :  { %3463 = vmatprep.mubr.f32.mxu0 %v7268_v36  ;;  %3540 = vmatprep.mubr.f32.mxu1 %v7268_v36 }
0x11f4   :  { %v8090_v52 = vsel %vm311_vm4, %v3754_v46, %v3755_v45 }
0x11f6   :  { %6251 = vmatmul.mubr.msk.f32.gmra.mrb[72].mxu0 %vm438_vm8, %v3346_v41  ;;  %6255 = vmatmul.mubr.msk.f32.gmra.mrb[74].mxu1 %vm438_vm8, %v3346_v41 }
0x12bc   :  { %v8094_v56 = vpop.f32.mrb[68].mxu0 }
0x12bd   :  { %v6712_v47 = vpop.f32.mrb[69].mxu0 }
0x12c5   :  { %v3459_v54 = vpop.f32.mrb[70].mxu0  ;;  %v3536_v43 = vpop.f32.mrb[72].mxu1 }
0x12c6   :  { %v3460_v59 = vadd.f32 %v3459_v54, %v3362_v51  ;;  %v3461_v53 = vpop.f32.mrb[71].mxu0  ;;  %v8098_v15 = vpop.f32.mrb[73].mxu1  ;;  %v3537_v6 = vadd.f32 %v3536_v43, %v3370_v35 }
0x12c7   :  { %v3462_v4 = vadd.f32 %v3461_v53, %v3366_v61  ;;  %v3767_v53 = vld [vmem:[#allocation6 + $0x88] sm:$0xff] }
0x12c8   :  { %6724 = vmatprep.mubr.f32.mxu0 %v3460_v59  ;;  %v3763_v59 = vld [vmem:[#allocation6 + $0x68] sm:$0xff] }
0x12c9   :  { %v3465_v0 = vpop.f32.mrb[72].mxu0  ;;  %v3542_v3 = vpop.f32.mrb[74].mxu1 }
0x12ca   :  { %v3467_v8 = vpop.f32.mrb[73].mxu0  ;;  %v3543_v10 = vadd.f32 %v3542_v3, %v3370_v35  ;;  %v8101_v14 = vpop.f32.mrb[75].mxu1  ;;  %v3466_v9 = vadd.f32 %v3465_v0, %v3362_v51  ;;  %v3765_v35 = vld [vmem:[#allocation6 + $0x78] sm:$0xff]  ;;  %v3762_v3 = vld [vmem:[#allocation6 + $0x60] sm:$0xff] }
0x12cb   :  { %v3468_v57 = vadd.f32 %v3467_v8, %v3366_v61  ;;  %v6978_v61 = vpack.c.bf16 %v3767_v53, %v3763_v59  ;;  %v3769_v0 = vld [vmem:[#allocation6 + $0x98] sm:$0xff] }
0x12cc   :  { %v6972_v62 = vpack.c.bf16 %v3543_v10, %v3537_v6  ;;  %v3766_v6 = vld [vmem:[#allocation6 + $0x80] sm:$0xff]  ;;  %v6982_v8 = vpack.c.bf16 %v3769_v0, %v3765_v35  ;;  %v4044_v35 = vrot.slane %v8120_v39, 4 }
0x12cd   :  { %v6968_v7 = vpack.c.bf16 %v3468_v57, %v3462_v4  ;;  %v6980_v10 = vpack.c.bf16 %v3766_v6, %v3762_v3  ;;  %v3764_v4 = vld [vmem:[#allocation6 + $0x70] sm:$0xff] }
0x12ce   :  { %6974 = vmatprep.subr.msk.bf16.mxu1 %vm7438_vm6, %v6972_v62  ;;  %v3768_v57 = vld [vmem:[#allocation6 + $0x90] sm:$0xff] }
0x12cf   :  { %6969 = vmatprep.subr.bf16.mxu0 %v6968_v7  ;;  %6977 = vmatpush3.bf16.msk.msra.mxu1 %vm7438_vm6, %v6972_v62  ;;  %v6984_v62 = vpack.c.bf16 %v3768_v57, %v3764_v4 }
0x12d0   :  { %6971 = vmatpush3.bf16.xpose.msra.mxu0 %v6968_v7  ;;  %6983 = vmatprep.subr.bf16.mxu1 %v6982_v8  ;;  %v3771_v7 = vld [vmem:[#allocation6 + $0xa8] sm:$0xff] }
0x12d1   :  { %6979 = vmatprep.subr.bf16.mxu0 %v6978_v61 }
0x12d7   :  { %6725 = vmatmul.mubr.f32.vlgmr.msra.gmra.mrb[74].mxu0 %v3466_v9  ;;  %v8145_v9 = vld [vmem:[#allocation6 + $0xb8] sm:$0xff] }
0x12d8   :  { %3875 = vmatprep.mubr.f32.mxu0 %v7268_v36  ;;  %6981 = vmatpush1.bf16.msra.mxu0 %v6980_v10 }
0x12d9   :  { %6259 = vmatprep.subr.msk.mxu0 %vm311_vm4, %v3771_v7 }
0x12dc   :  { %6260 = vmatpush1.msk.msra.mxu0 %vm311_vm4, %v3770_v20 }
0x13aa   :  { %v6726_v17 = vpop.f32.mrb[74].mxu0 }
0x13ab   :  { %v3623_v38 = vmul.f32 0.2236068, %v6726_v17  ;;  %v3613_v22 = vpop.f32.mrb[75].mxu0  ;;  %v3374_v17 = vrot.slane %v8066_v34, %v7507_v11 }
0x13ac   :  { %v3622_v23 = vmul.f32 0.2236068, %v3613_v22 }
0x13ad   :  { %v3625_v27 = vadd.f32 %v3623_v38, %v8120_v39  ;;  %v3545_v38 = vadd.f32 %v8101_v14, %v3374_v17  ;;  %v3539_v22 = vadd.f32 %v8098_v15, %v3374_v17 }
0x13ae   :  { %v3624_v26 = vadd.f32 %v3622_v23, %v8122_v40 }
0x13af   :  { %v3630_v29 = vsel %vm3629_vm14, %v3625_v27, -inf }
0x13b0   :  { %3631 = vmax.xlane.f32.xlu0 %v3630_v29  ;;  %v3626_v12 = vsel %vm146_vm3, %v3624_v26, -inf }
0x13b1   :  { %3627 = vmax.xlane.f32.xlu1 %v3626_v12 }
0x143d   :  { %v3632_v24 = vpop.xlane.xlu0 %3631 }
0x143e   :  { %v3634_v30 = vsub.f32 %v3625_v27, %v3632_v24  ;;  %v3628_v49 = vpop.xlane.xlu1 %3627 }
0x143f   :  { %v3633_v55 = vsub.f32 %v3624_v26, %v3628_v49 }
0x1440   :  { %v3637_v28 = vmul.f32 1.442695, %v3634_v30 }
0x1441   :  { %v3635_v33 = vmul.f32 1.442695, %v3633_v55 }
0x1442   :  { %7135 = vpow2.f32 %v3637_v28 }
0x1443   :  { %7137 = vpow2.f32 %v3635_v33 }
0x144c   :  { %v7136_v16 = vpop.eup %7135 }
0x144d   :  { %v7138_v18 = vpop.eup %7137  ;;  %v3640_v50 = vmul.f32 %v7136_v16, %v8111_v13 }
0x144e   :  { %v3639_v1 = vmul.f32 %v7138_v18, %v8116_v19  ;;  %v3785_v18 = vrot.slane %v3772_v21, %v7507_v11 }
0x144f   :  { %v3644_v5 = vsel %vm3629_vm14, %v3640_v50, 0.0 }
0x1450   :  { %3645 = vadd.xlane.f32.xlu0 %v3644_v5  ;;  %v3641_v37 = vsel %vm146_vm3, %v3639_v1, 0.0  ;;  %v3781_v5 = vrot.slane %v3771_v7, %v7507_v11 }
0x1451   :  { %3642 = vadd.xlane.f32.xlu1 %v3641_v37 }
0x1462   :  { %3740 = vperm.xlu1 %7091, %v3737_v48  }
0x1466   :  { %3743 = vperm.xlu0 %7092, %v3738_v60  }
0x14dd   :  { %v3646_v2 = vpop.xlane.xlu0 %3645 }
0x14de   :  { %v3648_v63 = vmax.f32 %v3646_v2, 1e-06  ;;  %v3643_v41 = vpop.xlane.xlu1 %3642 }
0x14df   :  { %v3647_v45 = vmax.f32 %v3643_v41, 1e-06 }
0x14e0   :  { %7139 = vrcp.f32 %v3648_v63 }
0x14e1   :  { %7141 = vrcp.f32 %v3647_v45 }
0x14e2   :  { %v8156_v27 = vpop.permute.xlu1 %3740 }
0x14e3   :  { %vm3745_vm1 = vcmp.eq.s32.totalorder %v8156_v27, 1 }
0x14e5   :  { %v8158_v12 = vpop.permute.xlu0 %3743 }
0x14e6   :  { %vm3746_vm2 = vcmp.eq.s32.totalorder %v8158_v12, 1 }
0x14ea   :  { %v7140_v47 = vpop.eup %7139 }
0x14eb   :  { %v7142_v51 = vpop.eup %7141  ;;  %v3652_v43 = vmul.f32 %v7140_v47, %v3640_v50 }
0x14ec   :  { %v3651_v54 = vmul.f32 %v7142_v51, %v3639_v1 }
0x14ee   :  { %6731 = vmatprep.mubr.msk.f32.mxu1 %vm146_vm3, %v3651_v54  ;;  %v3206_v54 = vld [vmem:[%s8544_s4 + $0x10] sm:$0xff] }
0x14ef   :  { %6732 = vmatmul.mubr.msk.f32.vlgmr.msra.gmra.mrb[76].mxu1 %vm146_vm3, %v3652_v43  ;;  %v6243_v43 = vadd.f32 -1.0, %v3206_v54 }
0x14f0   :  { %3952 = vmatprep.mubr.f32.mxu1 %v7268_v36  ;;  %6985 = vmatpush1.bf16.msra.mxu1 %v6984_v62 }
0x14f1   :  { %6263 = vmatprep.subr.msk.mxu1 %vm311_vm4, %v8145_v9  ;;  %v3220_v59 = vmul.f32 1e+30, %v6243_v43  ;;  %v4185_v43 = vld [vmem:[#allocation6 + $0xd0] sm:$0xff] }
0x14f3   :  { %v8201_v53 = vrot.slane %v3220_v59, 4 }
0x14f4   :  { %6264 = vmatpush1.msk.msra.mxu1 %vm311_vm4, %v3772_v21 }
0x14f5   :  { %v8206_v6 = vsel %vm311_vm4, %v4044_v35, %v8201_v53  ;;  %v4189_v35 = vld [vmem:[#allocation6 + $0xf0] sm:$0xff] }
0x15c2   :  { %v6733_v23 = vpop.f32.mrb[76].mxu1 }
0x15c3   :  { %v3734_v26 = vadd.f32 %v6733_v23, %v3545_v38  ;;  %v3728_v29 = vpop.f32.mrb[77].mxu1  ;;  %v4065_v23 = vrot.slane %v8111_v13, 4 }
0x15c4   :  { %v3729_v24 = vadd.f32 %v3728_v29, %v3539_v22 }
0x15c5   :  { %v3750_v30 = vrot.slane %v3734_v26, 4  ;;  %v8213_v26 = vrot.slane %v3206_v54, 4  ;;  %v4187_v54 = vld [vmem:[#allocation6 + $0xe0] sm:$0xff] }
0x15c6   :  { %v3749_v49 = vrot.slane %v3729_v24, 4 }
0x15c7   :  { %v8217_v29 = vsel %vm311_vm4, %v4065_v23, %v8213_v26 }
0x15c8   :  { %v3759_v34 = vsel %vm3745_vm1, %v3749_v49, %v3754_v46  ;;  %v3751_v15 = vsel %vm311_vm4, %v3749_v49, %v3750_v30 }
0x15c9   :  { %v3792_v14 = vrot.slane %v3759_v34, 4  ;;  %v3760_v55 = vsel %vm3746_vm2, %v3751_v15, %v8090_v52 }
0x15ca   :  { %v8170_v28 = vrot.slane %v3760_v55, 4  ;;  %v3209_v55 = vld [vmem:[%s8544_s4 + $0x28] sm:$0xff] }
0x15cb   :  { %vm3213_vm5 = vcmp.gt.f32.partialorder %v3209_v55, 0.5 }
0x15cc   :  { %v8174_v33 = vsel %vm311_vm4, %v3792_v14, %v8170_v28 }
0x15cd   :  { %6261 = vmatmul.mubr.msk.f32.vlgmr.msra.gmra.mrb[76].mxu0 %vm438_vm8, %v8174_v33  ;;  %6265 = vmatmul.mubr.msk.f32.vlgmr.msra.gmra.mrb[78].mxu1 %vm438_vm8, %v8174_v33 }
0x15ce   :  { %3881 = vmatprep.mubr.f32.mxu0 %v7268_v36  ;;  %3958 = vmatprep.mubr.f32.mxu1 %v7268_v36 }
0x15d1   :  { %6262 = vmatmul.mubr.msk.f32.gmra.mrb[78].mxu0 %vm438_vm8, %v8170_v28  ;;  %6266 = vmatmul.mubr.msk.f32.gmra.mrb[80].mxu1 %vm438_vm8, %v8170_v28 }
0x16a0   :  { %v3877_v46 = vpop.f32.mrb[76].mxu0  ;;  %v3954_v52 = vpop.f32.mrb[78].mxu1 }
0x16a1   :  { %v3878_v16 = vadd.f32 %v3877_v46, %v3777_v44  ;;  %v3879_v50 = vpop.f32.mrb[77].mxu0  ;;  %v8188_v1 = vpop.f32.mrb[79].mxu1  ;;  %v3955_v58 = vadd.f32 %v3954_v52, %v3785_v18  ;;  %v4168_v46 = vsel %vm3213_vm5, 1, %v7270_v25 }
0x16a2   :  { %v3880_v41 = vadd.f32 %v3879_v50, %v3781_v5  ;;  %v4186_v50 = vld [vmem:[#allocation6 + $0xd8] sm:$0xff] }
0x16a3   :  { %6738 = vmatprep.mubr.f32.mxu0 %v3878_v16  ;;  %v4184_v16 = vld [vmem:[#allocation6 + $0xc8] sm:$0xff] }
0x16a4   :  { %v3883_v37 = vpop.f32.mrb[78].mxu0  ;;  %v3960_v42 = vpop.f32.mrb[80].mxu1 }
0x16a5   :  { %v3884_v48 = vadd.f32 %v3883_v37, %v3777_v44  ;;  %v3961_v60 = vadd.f32 %v3960_v42, %v3785_v18  ;;  %v3885_v2 = vpop.f32.mrb[79].mxu0  ;;  %v8191_v63 = vpop.f32.mrb[81].mxu1  ;;  %v3210_v44 = vld [vmem:[%s8544_s4 + $0x30] sm:$0xf]  ;;  %v4188_v18 = vld [vmem:[#allocation6 + $0xe8] sm:$0xff]  ;;  %v4190_v37 = vld [vmem:[#allocation6 + $0xf8] sm:$0xff] }
0x16a6   :  { %v3886_v45 = vadd.f32 %v3885_v2, %v3781_v5  ;;  %vm3214_vm9 = vcmp.gt.f32.partialorder %v3210_v44, 0.5  ;;  %v6996_v5 = vpack.c.bf16 %v4188_v18, %v4184_v16  ;;  %v7000_v42 = vpack.c.bf16 %v4190_v37, %v4186_v50 }
0x16a7   :  { %v6990_v47 = vpack.c.bf16 %v3961_v60, %v3955_v58  ;;  %v4169_v52 = vsel %vm3214_vm9, 1, %v7270_v25 }
0x16a8   :  { %v6986_v51 = vpack.c.bf16 %v3886_v45, %v3880_v41 }
0x16a9   :  { %6992 = vmatprep.subr.msk.bf16.mxu1 %vm7438_vm6, %v6990_v47 }
0x16aa   :  { %6987 = vmatprep.subr.bf16.mxu0 %v6986_v51  ;;  %6995 = vmatpush3.bf16.msk.msra.mxu1 %vm7438_vm6, %v6990_v47 }
0x16ab   :  { %6989 = vmatpush3.bf16.xpose.msra.mxu0 %v6986_v51  ;;  %7001 = vmatprep.subr.bf16.mxu1 %v7000_v42  ;;  %v4183_v51 = vld [vmem:[#allocation6 + $0xc0] sm:$0xff] }
0x16ac   :  { %6997 = vmatprep.subr.bf16.mxu0 %v6996_v5  ;;  %v6998_v59 = vpack.c.bf16 %v4187_v54, %v4183_v51 }
0x16b2   :  { %6739 = vmatmul.mubr.f32.vlgmr.msra.gmra.mrb[80].mxu0 %v3884_v48 }
0x16b3   :  { %4293 = vmatprep.mubr.f32.mxu0 %v7268_v36  ;;  %6999 = vmatpush1.bf16.msra.mxu0 %v6998_v59 }
0x1785   :  { %v6740_v61 = vpop.f32.mrb[80].mxu0 }
0x1786   :  { %v4041_v0 = vmul.f32 0.2236068, %v6740_v61  ;;  %v4031_v3 = vpop.f32.mrb[81].mxu0  ;;  %v7002_v61 = vpack.c.bf16 %v4189_v35, %v4185_v43 }
0x1787   :  { %v4040_v8 = vmul.f32 0.2236068, %v4031_v3  ;;  %v8234_v3 = vld [vmem:[#allocation6 + $0x118] sm:$0xff] }
0x1788   :  { %v4050_v10 = vadd.f32 %v8201_v53, %v4041_v0  ;;  %v4192_v0 = vld [vmem:[#allocation6 + $0x108] sm:$0xff] }
0x1789   :  { %v4049_v4 = vadd.f32 %v8206_v6, %v4040_v8  ;;  %6270 = vmatprep.subr.msk.mxu0 %vm311_vm4, %v4192_v0  ;;  %v4191_v8 = vld [vmem:[#allocation6 + $0x100] sm:$0xff]  ;;  %v4202_v55 = vrot.slane %v4192_v0, %v7507_v11 }
0x178a   :  { %v4054_v57 = vsel %vm3629_vm14, %v4050_v10, -inf  ;;  %6271 = vmatpush1.msk.msra.mxu0 %vm311_vm4, %v4191_v8 }
0x178b   :  { %4055 = vmax.xlane.f32.xlu0 %v4054_v57  ;;  %v4051_v62 = vsel %vm146_vm3, %v4049_v4, -inf  ;;  %v3789_v57 = vrot.slane %v8145_v9, %v7507_v11 }
0x178c   :  { %4052 = vmax.xlane.f32.xlu1 %v4051_v62 }
0x178d   :  { %v3963_v62 = vadd.f32 %v8191_v63, %v3789_v57 }
0x1818   :  { %v4056_v7 = vpop.xlane.xlu0 %4055 }
0x1819   :  { %v4058_v20 = vsub.f32 %v4050_v10, %v4056_v7  ;;  %v4053_v21 = vpop.xlane.xlu1 %4052  ;;  %v4193_v10 = vld [vmem:[#allocation6 + $0x110] sm:$0xff] }
0x181a   :  { %v4057_v17 = vsub.f32 %v4049_v4, %v4053_v21 }
0x181b   :  { %v4061_v38 = vmul.f32 1.442695, %v4058_v20  ;;  %v3957_v20 = vadd.f32 %v8188_v1, %v3789_v57 }
0x181c   :  { %v4059_v22 = vmul.f32 1.442695, %v4057_v17 }
0x181d   :  { %7143 = vpow2.f32 %v4061_v38 }
0x181e   :  { %7145 = vpow2.f32 %v4059_v22 }
0x1827   :  { %v7144_v24 = vpop.eup %7143 }
0x1828   :  { %v7146_v30 = vpop.eup %7145  ;;  %v4071_v15 = vmul.f32 %v7144_v24, %v8213_v26 }
0x1829   :  { %v4070_v49 = vmul.f32 %v7146_v30, %v8217_v29 }
0x182a   :  { %v4075_v14 = vsel %vm3629_vm14, %v4071_v15, 0.0 }
0x182b   :  { %v4072_v34 = vsel %vm146_vm3, %v4070_v49, 0.0 }
0x182c   :  { %4073 = vadd.xlane.f32.xlu1 %v4072_v34  ;;  %v4206_v34 = vrot.slane %v4193_v10, %v7507_v11 }
0x1830   :  { %4076 = vadd.xlane.f32.xlu1 %v4075_v14 }
0x1841   :  { %4171 = vperm.xlu1 %7091, %v4168_v46  }
0x1845   :  { %4174 = vperm.xlu1 %7091, %v4169_v52  }
0x18b9   :  { %v4074_v58 = vpop.xlane.xlu1 %4073 }
0x18ba   :  { %v4078_v48 = vmax.f32 %v4074_v58, 1e-06 }
0x18bc   :  { %7147 = vrcp.f32 %v4078_v48 }
0x18bd   :  { %v4077_v60 = vpop.xlane.xlu1 %4076 }
0x18be   :  { %v4079_v2 = vmax.f32 %v4077_v60, 1e-06 }
0x18c0   :  { %7149 = vrcp.f32 %v4079_v2 }
0x18c1   :  { %v8241_v4 = vpop.permute.xlu1 %4171 }
0x18c2   :  { %vm4176_vm11 = vcmp.eq.s32.totalorder %v8241_v4, 1  ;;  %v5945_v4 = vld [vmem:[%s8548_s8 + $0x68] sm:$0xff] }
0x18c5   :  { %v8246_v7 = vpop.permute.xlu1 %4174 }
0x18c6   :  { %v7148_v41 = vpop.eup %7147  ;;  %vm4177_vm10 = vcmp.eq.s32.totalorder %v8246_v7, 1  ;;  %v7079_v7 = vpack.c.bf16 %v5946_v32, %v5945_v4 }
0x18c7   :  { %v4082_v45 = vmul.f32 %v7148_v41, %v4070_v49 }
0x18c9   :  { %6745 = vmatprep.mubr.msk.f32.mxu1 %vm146_vm3, %v4082_v45 }
0x18ca   :  { %v7150_v25 = vpop.eup %7149 }
0x18cb   :  { %v4083_v47 = vmul.f32 %v7150_v25, %v4071_v15 }
0x18cd   :  { %6746 = vmatmul.mubr.msk.f32.vlgmr.msra.gmra.mrb[82].mxu1 %vm146_vm3, %v4083_v47 }
0x18ce   :  { %4370 = vmatprep.mubr.f32.mxu1 %v7268_v36  ;;  %7003 = vmatpush1.bf16.msra.mxu1 %v7002_v61 }
0x18cf   :  { %6274 = vmatprep.subr.msk.mxu1 %vm311_vm4, %v8234_v3 }
0x18d2   :  { %6275 = vmatpush1.msk.msra.mxu1 %vm311_vm4, %v4193_v10 }
0x19a0   :  { %v6747_v21 = vpop.f32.mrb[82].mxu1 }
0x19a1   :  { %v4165_v17 = vadd.f32 %v6747_v21, %v3963_v62  ;;  %v4159_v38 = vpop.f32.mrb[83].mxu1 }
0x19a2   :  { %v4160_v22 = vadd.f32 %v4159_v38, %v3957_v20 }
0x19a3   :  { %v4181_v23 = vsel %vm4177_vm10, %v4165_v17, %v8170_v28 }
0x19a4   :  { %v8257_v9 = vsel %vm4176_vm11, %v4160_v22, %v8174_v33  ;;  %v4580_v63 = vrot.slane %v4181_v23, 4  ;;  %v4198_v33 = vrot.slane %v4191_v8, %v7507_v11 }
0x19a5   :  { %v4579_v1 = vrot.slane %v8257_v9, 4  ;;  %6272 = vmatmul.mubr.msk.f32.vlgmr.msra.gmra.mrb[82].mxu0 %vm438_vm8, %v8257_v9  ;;  %6276 = vmatmul.mubr.msk.f32.vlgmr.msra.gmra.mrb[84].mxu1 %vm438_vm8, %v8257_v9 }
0x19a6   :  { %4299 = vmatprep.mubr.f32.mxu0 %v7268_v36  ;;  %4376 = vmatprep.mubr.f32.mxu1 %v7268_v36 }
0x19a7   :  { %v8269_v28 = vsel %vm311_vm4, %v4579_v1, %v4580_v63 }
0x19a9   :  { %6273 = vmatmul.mubr.msk.f32.gmra.mrb[84].mxu0 %vm438_vm8, %v4181_v23  ;;  %6277 = vmatmul.mubr.msk.f32.gmra.mrb[86].mxu1 %vm438_vm8, %v4181_v23 }
0x1a78   :  { %v4295_v24 = vpop.f32.mrb[82].mxu0  ;;  %v4372_v30 = vpop.f32.mrb[84].mxu1 }
0x1a79   :  { %v4296_v49 = vadd.f32 %v4295_v24, %v4198_v33  ;;  %v4297_v15 = vpop.f32.mrb[83].mxu0  ;;  %v8275_v14 = vpop.f32.mrb[85].mxu1  ;;  %v4373_v52 = vadd.f32 %v4372_v30, %v4206_v34 }
0x1a7a   :  { %v4298_v37 = vadd.f32 %v4297_v15, %v4202_v55  ;;  %v4592_v15 = vld [vmem:[#allocation6 + $0x148] sm:$0xff] }
0x1a7b   :  { %6752 = vmatprep.mubr.f32.mxu0 %v4296_v49 }
0x1a7c   :  { %v4301_v44 = vpop.f32.mrb[84].mxu0  ;;  %v4378_v46 = vpop.f32.mrb[86].mxu1 }
0x1a7d   :  { %v4302_v16 = vadd.f32 %v4301_v44, %v4198_v33  ;;  %v4379_v18 = vadd.f32 %v4378_v46, %v4206_v34  ;;  %v4303_v50 = vpop.f32.mrb[85].mxu0  ;;  %v8278_v5 = vpop.f32.mrb[87].mxu1  ;;  %v4588_v34 = vld [vmem:[#allocation6 + $0x128] sm:$0xff]  ;;  %v4594_v46 = vld [vmem:[#allocation6 + $0x158] sm:$0xff] }
0x1a7e   :  { %v4304_v42 = vadd.f32 %v4303_v50, %v4202_v55  ;;  %v4590_v55 = vld [vmem:[#allocation6 + $0x138] sm:$0xff]  ;;  %v7014_v44 = vpack.c.bf16 %v4592_v15, %v4588_v34 }
0x1a7f   :  { %v7008_v58 = vpack.c.bf16 %v4379_v18, %v4373_v52  ;;  %v4587_v52 = vld [vmem:[#allocation6 + $0x120] sm:$0xff]  ;;  %v7018_v18 = vpack.c.bf16 %v4594_v46, %v4590_v55 }
0x1a80   :  { %v7004_v48 = vpack.c.bf16 %v4304_v42, %v4298_v37  ;;  %v4589_v37 = vld [vmem:[#allocation6 + $0x130] sm:$0xff] }
0x1a81   :  { %7010 = vmatprep.subr.msk.bf16.mxu1 %vm7438_vm6, %v7008_v58  ;;  %v4593_v42 = vld [vmem:[#allocation6 + $0x150] sm:$0xff] }
0x1a82   :  { %7005 = vmatprep.subr.bf16.mxu0 %v7004_v48  ;;  %7013 = vmatpush3.bf16.msk.msra.mxu1 %vm7438_vm6, %v7008_v58  ;;  %v7020_v58 = vpack.c.bf16 %v4593_v42, %v4589_v37 }
0x1a83   :  { %7007 = vmatpush3.bf16.xpose.msra.mxu0 %v7004_v48  ;;  %7019 = vmatprep.subr.bf16.mxu1 %v7018_v18  ;;  %v4596_v48 = vld [vmem:[#allocation6 + $0x168] sm:$0xff] }
0x1a84   :  { %7015 = vmatprep.subr.bf16.mxu0 %v7014_v44 }
0x1a8a   :  { %6753 = vmatmul.mubr.f32.vlgmr.msra.gmra.mrb[86].mxu0 %v4302_v16  ;;  %v4591_v16 = vld [vmem:[#allocation6 + $0x140] sm:$0xff] }
0x1a8b   :  { %4700 = vmatprep.mubr.f32.mxu0 %v7268_v36  ;;  %v7016_v50 = vpack.c.bf16 %v4591_v16, %v4587_v52 }
0x1a8d   :  { %7017 = vmatpush1.bf16.msra.mxu0 %v7016_v50 }
0x1a8e   :  { %6281 = vmatprep.subr.msk.mxu0 %vm311_vm4, %v4596_v48 }
0x1b5d   :  { %v6754_v60 = vpop.f32.mrb[86].mxu0 }
0x1b5e   :  { %v4459_v2 = vmul.f32 0.2236068, %v6754_v60  ;;  %v4449_v41 = vpop.f32.mrb[87].mxu0  ;;  %v8296_v60 = vld [vmem:[#allocation6 + $0x178] sm:$0xff] }
0x1b5f   :  { %v4458_v45 = vmul.f32 0.2236068, %v4449_v41  ;;  %v4597_v41 = vld [vmem:[#allocation6 + $0x170] sm:$0xff] }
0x1b60   :  { %v4461_v25 = vadd.f32 %v4459_v2, %v8120_v39  ;;  %v4595_v2 = vld [vmem:[#allocation6 + $0x160] sm:$0xff] }
0x1b61   :  { %v4460_v47 = vadd.f32 %v4458_v45, %v8122_v40  ;;  %6282 = vmatpush1.msk.msra.mxu0 %vm311_vm4, %v4595_v2  ;;  %v4210_v45 = vrot.slane %v8234_v3, %v7507_v11  ;;  %v4602_v9 = vrot.slane %v4595_v2, %v7507_v11 }
0x1b62   :  { %v4465_v51 = vsel %vm3629_vm14, %v4461_v25, -inf }
0x1b63   :  { %4466 = vmax.xlane.f32.xlu1 %v4465_v51  ;;  %v4462_v54 = vsel %vm146_vm3, %v4460_v47, -inf }
0x1b64   :  { %4463 = vmax.xlane.f32.xlu0 %v4462_v54 }
0x1bf0   :  { %v4467_v43 = vpop.xlane.xlu1 %4466 }
0x1bf1   :  { %v4469_v59 = vsub.f32 %v4461_v25, %v4467_v43  ;;  %v4464_v35 = vpop.xlane.xlu0 %4463  ;;  %v4381_v25 = vadd.f32 %v8278_v5, %v4210_v45 }
0x1bf2   :  { %v4468_v61 = vsub.f32 %v4460_v47, %v4464_v35  ;;  %v4375_v47 = vadd.f32 %v8275_v14, %v4210_v45 }
0x1bf3   :  { %v4472_v0 = vmul.f32 1.442695, %v4469_v59 }
0x1bf4   :  { %v4470_v8 = vmul.f32 1.442695, %v4468_v61 }
0x1bf5   :  { %7151 = vpow2.f32 %v4472_v0 }
0x1bf6   :  { %7153 = vpow2.f32 %v4470_v8 }
0x1bff   :  { %v7152_v10 = vpop.eup %7151 }
0x1c00   :  { %v7154_v57 = vpop.eup %7153  ;;  %v4475_v21 = vmul.f32 %v7152_v10, %v8111_v13 }
0x1c01   :  { %v4474_v62 = vmul.f32 %v7154_v57, %v8116_v19 }
0x1c02   :  { %v4479_v17 = vsel %vm3629_vm14, %v4475_v21, 0.0 }
0x1c03   :  { %v4476_v20 = vsel %vm146_vm3, %v4474_v62, 0.0 }
0x1c04   :  { %4477 = vadd.xlane.f32.xlu0 %v4476_v20 }
0x1c08   :  { %4480 = vadd.xlane.f32.xlu0 %v4479_v17  ;;  %v4606_v17 = vrot.slane %v4596_v48, %v7507_v11 }
0x1c91   :  { %v4478_v38 = vpop.xlane.xlu0 %4477 }
0x1c92   :  { %v4482_v22 = vmax.f32 %v4478_v38, 1e-06 }
0x1c94   :  { %7155 = vrcp.f32 %v4482_v22 }
0x1c95   :  { %v4481_v23 = vpop.xlane.xlu0 %4480 }
0x1c96   :  { %v4483_v63 = vmax.f32 %v4481_v23, 1e-06 }
0x1c98   :  { %7157 = vrcp.f32 %v4483_v63 }
0x1c9e   :  { %v7156_v33 = vpop.eup %7155 }
0x1c9f   :  { %v4486_v24 = vmul.f32 %v7156_v33, %v4474_v62  ;;  %v4610_v62 = vrot.slane %v4597_v41, %v7507_v11 }
0x1ca1   :  { %6759 = vmatprep.mubr.msk.f32.mxu1 %vm146_vm3, %v4486_v24 }
0x1ca2   :  { %v7158_v30 = vpop.eup %7157 }
0x1ca3   :  { %v4487_v49 = vmul.f32 %v7158_v30, %v4475_v21 }
0x1ca5   :  { %6760 = vmatmul.mubr.msk.f32.vlgmr.msra.gmra.mrb[88].mxu1 %vm146_vm3, %v4487_v49 }
0x1ca6   :  { %4777 = vmatprep.mubr.f32.mxu1 %v7268_v36  ;;  %7021 = vmatpush1.bf16.msra.mxu1 %v7020_v58 }
0x1ca7   :  { %6285 = vmatprep.subr.msk.mxu1 %vm311_vm4, %v8296_v60 }
0x1caa   :  { %6286 = vmatpush1.msk.msra.mxu1 %vm311_vm4, %v4597_v41 }
0x1d78   :  { %v6761_v51 = vpop.f32.mrb[88].mxu1 }
0x1d79   :  { %v4569_v54 = vadd.f32 %v6761_v51, %v4381_v25  ;;  %v4563_v43 = vpop.f32.mrb[89].mxu1 }
0x1d7a   :  { %v4564_v59 = vadd.f32 %v4563_v43, %v4375_v47 }
0x1d7b   :  { %v4575_v35 = vrot.slane %v4569_v54, 4 }
0x1d7c   :  { %v4574_v61 = vrot.slane %v4564_v59, 4 }
0x1d7e   :  { %v4576_v0 = vsel %vm311_vm4, %v4574_v61, %v4575_v35  ;;  %v4584_v8 = vsel %vm3745_vm1, %v4574_v61, %v4579_v1  ;;  %v4985_v61 = vld [vmem:[#allocation6 + $0x188] sm:$0xff] }
0x1d7f   :  { %v4585_v3 = vsel %vm3746_vm2, %v4576_v0, %v8269_v28  ;;  %v4617_v5 = vrot.slane %v4584_v8, 4  ;;  %v4989_v0 = vld [vmem:[#allocation6 + $0x1a8] sm:$0xff]  ;;  %v4987_v8 = vld [vmem:[#allocation6 + $0x198] sm:$0xff] }
0x1d80   :  { %v8315_v10 = vrot.slane %v4585_v3, 4  ;;  %v7032_v3 = vpack.c.bf16 %v4989_v0, %v4985_v61 }
0x1d82   :  { %v8319_v14 = vsel %vm311_vm4, %v4617_v5, %v8315_v10  ;;  %v4991_v5 = vld [vmem:[#allocation6 + $0x1b8] sm:$0xff] }
0x1d83   :  { %6283 = vmatmul.mubr.msk.f32.vlgmr.msra.gmra.mrb[88].mxu0 %vm438_vm8, %v8319_v14  ;;  %6287 = vmatmul.mubr.msk.f32.vlgmr.msra.gmra.mrb[90].mxu1 %vm438_vm8, %v8319_v14 }
0x1d84   :  { %4706 = vmatprep.mubr.f32.mxu0 %v7268_v36  ;;  %4783 = vmatprep.mubr.f32.mxu1 %v7268_v36 }
0x1d87   :  { %6284 = vmatmul.mubr.msk.f32.gmra.mrb[90].mxu0 %vm438_vm8, %v8315_v10  ;;  %6288 = vmatmul.mubr.msk.f32.gmra.mrb[92].mxu1 %vm438_vm8, %v8315_v10 }
0x1e56   :  { %v4702_v1 = vpop.f32.mrb[88].mxu0  ;;  %v4779_v28 = vpop.f32.mrb[90].mxu1 }
0x1e57   :  { %v4703_v57 = vadd.f32 %v4702_v1, %v4602_v9  ;;  %v4704_v20 = vpop.f32.mrb[89].mxu0  ;;  %v8333_v21 = vpop.f32.mrb[91].mxu1  ;;  %v4780_v23 = vadd.f32 %v4779_v28, %v4610_v62 }
0x1e58   :  { %v4705_v49 = vadd.f32 %v4704_v20, %v4606_v17 }
0x1e59   :  { %6766 = vmatprep.mubr.f32.mxu0 %v4703_v57 }
0x1e5a   :  { %v4708_v38 = vpop.f32.mrb[90].mxu0  ;;  %v4785_v22 = vpop.f32.mrb[92].mxu1 }
0x1e5b   :  { %v4709_v63 = vadd.f32 %v4708_v38, %v4602_v9  ;;  %v4786_v33 = vadd.f32 %v4785_v22, %v4610_v62  ;;  %v4710_v24 = vpop.f32.mrb[91].mxu0  ;;  %v8336_v30 = vpop.f32.mrb[93].mxu1  ;;  %v7036_v9 = vpack.c.bf16 %v4991_v5, %v4987_v8 }
0x1e5c   :  { %v4711_v34 = vadd.f32 %v4710_v24, %v4606_v17 }
0x1e5d   :  { %v7026_v15 = vpack.c.bf16 %v4786_v33, %v4780_v23  ;;  %v4984_v23 = vld [vmem:[#allocation6 + $0x180] sm:$0xff]  ;;  %v4986_v33 = vld [vmem:[#allocation6 + $0x190] sm:$0xff] }
0x1e5e   :  { %v7022_v55 = vpack.c.bf16 %v4711_v34, %v4705_v49  ;;  %v4990_v49 = vld [vmem:[#allocation6 + $0x1b0] sm:$0xff] }
0x1e5f   :  { %7028 = vmatprep.subr.msk.bf16.mxu1 %vm7438_vm6, %v7026_v15  ;;  %v7038_v34 = vpack.c.bf16 %v4990_v49, %v4986_v33 }
0x1e60   :  { %7023 = vmatprep.subr.bf16.mxu0 %v7022_v55  ;;  %7031 = vmatpush3.bf16.msk.msra.mxu1 %vm7438_vm6, %v7026_v15  ;;  %v4993_v15 = vld [vmem:[#allocation6 + $0x1c8] sm:$0xff] }
0x1e61   :  { %7025 = vmatpush3.bf16.xpose.msra.mxu0 %v7022_v55  ;;  %7037 = vmatprep.subr.bf16.mxu1 %v7036_v9  ;;  %v8354_v55 = vld [vmem:[#allocation6 + $0x1d8] sm:$0xff] }
0x1e62   :  { %7033 = vmatprep.subr.bf16.mxu0 %v7032_v3 }
0x1e68   :  { %6767 = vmatmul.mubr.f32.vlgmr.msra.gmra.mrb[92].mxu0 %v4709_v63  ;;  %v4988_v63 = vld [vmem:[#allocation6 + $0x1a0] sm:$0xff] }
0x1e69   :  { %5094 = vmatprep.mubr.f32.mxu0 %v7268_v36  ;;  %v7034_v24 = vpack.c.bf16 %v4988_v63, %v4984_v23 }
0x1e6b   :  { %7035 = vmatpush1.bf16.msra.mxu0 %v7034_v24 }
0x1e6c   :  { %6292 = vmatprep.subr.msk.mxu0 %vm311_vm4, %v4993_v15 }
0x1f3b   :  { %v6768_v44 = vpop.f32.mrb[92].mxu0 }
0x1f3c   :  { %v4856_v46 = vpop.f32.mrb[93].mxu0  ;;  %v4866_v52 = vmul.f32 0.2236068, %v6768_v44  ;;  %v4992_v44 = vld [vmem:[#allocation6 + $0x1c0] sm:$0xff] }
0x1f3d   :  { %v4865_v16 = vmul.f32 0.2236068, %v4856_v46  ;;  %v4994_v46 = vld [vmem:[#allocation6 + $0x1d0] sm:$0xff]  ;;  %6293 = vmatpush1.msk.msra.mxu0 %vm311_vm4, %v4992_v44 }
0x1f3e   :  { %v4868_v37 = vadd.f32 %v4866_v52, %v8201_v53  ;;  %v4614_v52 = vrot.slane %v8296_v60, %v7507_v11 }
0x1f3f   :  { %v4867_v18 = vadd.f32 %v4865_v16, %v8206_v6 }
0x1f40   :  { %v4872_v42 = vsel %vm3629_vm14, %v4868_v37, -inf  ;;  %v4788_v16 = vadd.f32 %v8336_v30, %v4614_v52 }
0x1f41   :  { %v4869_v50 = vsel %vm146_vm3, %v4867_v18, -inf }
0x1f42   :  { %4870 = vmax.xlane.f32.xlu0 %v4869_v50 }
0x1f46   :  { %4873 = vmax.xlane.f32.xlu0 %v4872_v42 }
0x1fcf   :  { %v4871_v58 = vpop.xlane.xlu0 %4870 }
0x1fd0   :  { %v4875_v48 = vsub.f32 %v4867_v18, %v4871_v58  ;;  %v4782_v18 = vadd.f32 %v8333_v21, %v4614_v52 }
0x1fd2   :  { %v4877_v2 = vmul.f32 1.442695, %v4875_v48 }
0x1fd3   :  { %v4874_v41 = vpop.xlane.xlu0 %4873 }
0x1fd4   :  { %7159 = vpow2.f32 %v4877_v2  ;;  %v4876_v45 = vsub.f32 %v4868_v37, %v4874_v41 }
0x1fd6   :  { %v4879_v25 = vmul.f32 1.442695, %v4876_v45 }
0x1fd8   :  { %7161 = vpow2.f32 %v4879_v25  ;;  %v5007_v25 = vrot.slane %v4994_v46, %v7507_v11 }
0x1fde   :  { %v7160_v47 = vpop.eup %7159 }
0x1fdf   :  { %v4881_v51 = vmul.f32 %v7160_v47, %v8217_v29 }
0x1fe1   :  { %v4883_v54 = vsel %vm146_vm3, %v4881_v51, 0.0 }
0x1fe2   :  { %v7162_v43 = vpop.eup %7161  ;;  %4884 = vadd.xlane.f32.xlu0 %v4883_v54  ;;  %v5003_v54 = vrot.slane %v4993_v15, %v7507_v11 }
0x1fe3   :  { %v4882_v59 = vmul.f32 %v7162_v43, %v8213_v26 }
0x1fe5   :  { %v4886_v35 = vsel %vm3629_vm14, %v4882_v59, 0.0 }
0x1fe6   :  { %4887 = vadd.xlane.f32.xlu0 %v4886_v35 }
0x206f   :  { %v4885_v1 = vpop.xlane.xlu0 %4884 }
0x2070   :  { %v4889_v28 = vmax.f32 %v4885_v1, 1e-06 }
0x2072   :  { %7163 = vrcp.f32 %v4889_v28 }
0x2073   :  { %v4888_v57 = vpop.xlane.xlu0 %4887 }
0x2074   :  { %v4890_v62 = vmax.f32 %v4888_v57, 1e-06 }
0x2076   :  { %7165 = vrcp.f32 %v4890_v62 }
0x207c   :  { %v7164_v20 = vpop.eup %7163 }
0x207d   :  { %v4893_v17 = vmul.f32 %v7164_v20, %v4881_v51 }
0x207f   :  { %6773 = vmatprep.mubr.msk.f32.mxu1 %vm146_vm3, %v4893_v17 }
0x2080   :  { %v7166_v38 = vpop.eup %7165 }
0x2081   :  { %v4894_v22 = vmul.f32 %v7166_v38, %v4882_v59 }
0x2083   :  { %6774 = vmatmul.mubr.msk.f32.vlgmr.msra.gmra.mrb[94].mxu1 %vm146_vm3, %v4894_v22 }
0x2084   :  { %5171 = vmatprep.mubr.f32.mxu1 %v7268_v36  ;;  %7039 = vmatpush1.bf16.msra.mxu1 %v7038_v34 }
0x2085   :  { %6296 = vmatprep.subr.msk.mxu1 %vm311_vm4, %v8354_v55 }
0x2088   :  { %6297 = vmatpush1.msk.msra.mxu1 %vm311_vm4, %v4994_v46 }
0x2156   :  { %v6775_v50 = vpop.f32.mrb[94].mxu1 }
0x2157   :  { %v4976_v37 = vadd.f32 %v6775_v50, %v4788_v16  ;;  %v4970_v42 = vpop.f32.mrb[95].mxu1 }
0x2158   :  { %v4971_v58 = vadd.f32 %v4970_v42, %v4782_v18 }
0x2159   :  { %v4982_v48 = vsel %vm4177_vm10, %v4976_v37, %v8315_v10 }
0x215a   :  { %v8371_v2 = vsel %vm4176_vm11, %v4971_v58, %v8319_v14  ;;  %v5381_v41 = vrot.slane %v4982_v48, 4  ;;  %v4999_v14 = vrot.slane %v4992_v44, %v7507_v11 }
0x215b   :  { %v5380_v60 = vrot.slane %v8371_v2, 4  ;;  %6294 = vmatmul.mubr.msk.f32.vlgmr.msra.gmra.mrb[94].mxu0 %vm438_vm8, %v8371_v2  ;;  %6298 = vmatmul.mubr.msk.f32.vlgmr.msra.gmra.mrb[96].mxu1 %vm438_vm8, %v8371_v2 }
0x215c   :  { %5100 = vmatprep.mubr.f32.mxu0 %v7268_v36  ;;  %5177 = vmatprep.mubr.f32.mxu1 %v7268_v36 }
0x215d   :  { %v8383_v10 = vsel %vm311_vm4, %v5380_v60, %v5381_v41 }
0x215f   :  { %6295 = vmatmul.mubr.msk.f32.gmra.mrb[96].mxu0 %vm438_vm8, %v4982_v48  ;;  %6299 = vmatmul.mubr.msk.f32.gmra.mrb[98].mxu1 %vm438_vm8, %v4982_v48 }
0x222e   :  { %v5096_v21 = vpop.f32.mrb[94].mxu0  ;;  %v5173_v30 = vpop.f32.mrb[96].mxu1 }
0x222f   :  { %v5097_v45 = vadd.f32 %v5096_v21, %v4999_v14  ;;  %v5098_v47 = vpop.f32.mrb[95].mxu0  ;;  %v8389_v51 = vpop.f32.mrb[97].mxu1  ;;  %v5174_v35 = vadd.f32 %v5173_v30, %v5007_v25  ;;  %v5393_v21 = vld [vmem:[#allocation6 + $0x208] sm:$0xff]  ;;  %v5391_v30 = vld [vmem:[#allocation6 + $0x1f8] sm:$0xff] }
0x2230   :  { %v5099_v5 = vadd.f32 %v5098_v47, %v5003_v54  ;;  %v5388_v47 = vld [vmem:[#allocation6 + $0x1e0] sm:$0xff] }
0x2231   :  { %6780 = vmatprep.mubr.f32.mxu0 %v5097_v45 }
0x2232   :  { %v5102_v43 = vpop.f32.mrb[96].mxu0  ;;  %v5179_v59 = vpop.f32.mrb[98].mxu1 }
0x2233   :  { %v5103_v61 = vadd.f32 %v5102_v43, %v4999_v14  ;;  %v5180_v0 = vadd.f32 %v5179_v59, %v5007_v25  ;;  %v5104_v8 = vpop.f32.mrb[97].mxu0  ;;  %v8392_v3 = vpop.f32.mrb[99].mxu1  ;;  %v5395_v25 = vld [vmem:[#allocation6 + $0x218] sm:$0xff] }
0x2234   :  { %v5105_v9 = vadd.f32 %v5104_v8, %v5003_v54  ;;  %v5392_v54 = vld [vmem:[#allocation6 + $0x200] sm:$0xff]  ;;  %v7054_v43 = vpack.c.bf16 %v5395_v25, %v5391_v30  ;;  %v5397_v8 = vld [vmem:[#allocation6 + $0x228] sm:$0xff] }
0x2235   :  { %v7044_v1 = vpack.c.bf16 %v5180_v0, %v5174_v35  ;;  %v7052_v59 = vpack.c.bf16 %v5392_v54, %v5388_v47  ;;  %v5390_v35 = vld [vmem:[#allocation6 + $0x1f0] sm:$0xff] }
0x2236   :  { %v7040_v28 = vpack.c.bf16 %v5105_v9, %v5099_v5  ;;  %v8410_v5 = vld [vmem:[#allocation6 + $0x238] sm:$0xff]  ;;  %v5396_v9 = vld [vmem:[#allocation6 + $0x220] sm:$0xff] }
0x2237   :  { %7046 = vmatprep.subr.msk.bf16.mxu1 %vm7438_vm6, %v7044_v1  ;;  %v5403_v27 = vrot.slane %v5396_v9, %v7507_v11 }
0x2238   :  { %7041 = vmatprep.subr.bf16.mxu0 %v7040_v28  ;;  %7049 = vmatpush3.bf16.msk.msra.mxu1 %vm7438_vm6, %v7044_v1  ;;  %v5398_v1 = vld [vmem:[#allocation6 + $0x230] sm:$0xff] }
0x2239   :  { %7043 = vmatpush3.bf16.xpose.msra.mxu0 %v7040_v28  ;;  %7055 = vmatprep.subr.bf16.mxu1 %v7054_v43  ;;  %v5011_v28 = vrot.slane %v8354_v55, %v7507_v11 }
0x2240   :  { %6781 = vmatmul.mubr.f32.vlgmr.msra.gmra.mrb[98].mxu0 %v5103_v61  ;;  %v5394_v61 = vld [vmem:[#allocation6 + $0x210] sm:$0xff] }
0x2241   :  { %5501 = vmatprep.mubr.f32.mxu0 %v7268_v36  ;;  %v7056_v0 = vpack.c.bf16 %v5394_v61, %v5390_v35 }
0x2313   :  { %v6782_v57 = vpop.f32.mrb[98].mxu0 }
0x2314   :  { %v5250_v62 = vpop.f32.mrb[99].mxu0  ;;  %v5260_v20 = vmul.f32 0.2236068, %v6782_v57  ;;  %v5182_v57 = vadd.f32 %v8392_v3, %v5011_v28 }
0x2315   :  { %v5259_v17 = vmul.f32 0.2236068, %v5250_v62  ;;  %v5176_v62 = vadd.f32 %v8389_v51, %v5011_v28 }
0x2316   :  { %v5262_v23 = vadd.f32 %v5260_v20, %v8120_v39 }
0x2317   :  { %v5261_v38 = vadd.f32 %v5259_v17, %v8122_v40 }
0x2318   :  { %v5266_v63 = vsel %vm3629_vm14, %v5262_v23, -inf }
0x2319   :  { %v5263_v22 = vsel %vm146_vm3, %v5261_v38, -inf }
0x231a   :  { %5264 = vmax.xlane.f32.xlu0 %v5263_v22 }
0x231e   :  { %5267 = vmax.xlane.f32.xlu0 %v5266_v63 }
0x23a7   :  { %v5265_v33 = vpop.xlane.xlu0 %5264 }
0x23a8   :  { %v5269_v24 = vsub.f32 %v5261_v38, %v5265_v33 }
0x23aa   :  { %v5271_v49 = vmul.f32 1.442695, %v5269_v24 }
0x23ab   :  { %v5268_v34 = vpop.xlane.xlu0 %5267 }
0x23ac   :  { %7167 = vpow2.f32 %v5271_v49  ;;  %v5270_v15 = vsub.f32 %v5262_v23, %v5268_v34 }
0x23ae   :  { %v5273_v44 = vmul.f32 1.442695, %v5270_v15 }
0x23b0   :  { %7169 = vpow2.f32 %v5273_v44  ;;  %v5407_v44 = vrot.slane %v5397_v8, %v7507_v11 }
0x23b6   :  { %v7168_v46 = vpop.eup %7167 }
0x23b7   :  { %v5275_v52 = vmul.f32 %v7168_v46, %v8116_v19 }
0x23b9   :  { %v5277_v40 = vsel %vm146_vm3, %v5275_v52, 0.0 }
0x23ba   :  { %v7170_v16 = vpop.eup %7169  ;;  %5278 = vadd.xlane.f32.xlu0 %v5277_v40 }
0x23bb   :  { %v5276_v39 = vmul.f32 %v7170_v16, %v8111_v13  ;;  %v5389_v13 = vld [vmem:[#allocation6 + $0x1e8] sm:$0xff] }
0x23bc   :  { %v7050_v45 = vpack.c.bf16 %v5393_v21, %v5389_v13 }
0x23bd   :  { %v5280_v18 = vsel %vm3629_vm14, %v5276_v39, 0.0 }
0x23be   :  { %5281 = vadd.xlane.f32.xlu1 %v5280_v18  ;;  %7051 = vmatprep.subr.bf16.mxu0 %v7050_v45 }
0x23bf   :  { %7053 = vmatpush1.bf16.msra.mxu0 %v7052_v59 }
0x23c0   :  { %6303 = vmatprep.subr.msk.mxu0 %vm311_vm4, %v5397_v8 }
0x23c3   :  { %6304 = vmatpush1.msk.msra.mxu0 %vm311_vm4, %v5396_v9 }
0x2447   :  { %v5279_v50 = vpop.xlane.xlu0 %5278 }
0x2448   :  { %v5283_v37 = vmax.f32 %v5279_v50, 1e-06 }
0x244a   :  { %7171 = vrcp.f32 %v5283_v37 }
0x244b   :  { %v5282_v42 = vpop.xlane.xlu1 %5281 }
0x244c   :  { %v5284_v58 = vmax.f32 %v5282_v42, 1e-06 }
0x244e   :  { %7173 = vrcp.f32 %v5284_v58 }
0x2454   :  { %v7172_v48 = vpop.eup %7171 }
0x2455   :  { %v5287_v41 = vmul.f32 %v7172_v48, %v5275_v52 }
0x2457   :  { %6787 = vmatprep.mubr.msk.f32.mxu1 %vm146_vm3, %v5287_v41 }
0x2458   :  { %v7174_v19 = vpop.eup %7173 }
0x2459   :  { %v5288_v14 = vmul.f32 %v7174_v19, %v5276_v39 }
0x245b   :  { %6788 = vmatmul.mubr.msk.f32.vlgmr.msra.gmra.mrb[100].mxu1 %vm146_vm3, %v5288_v14 }
0x245c   :  { %5578 = vmatprep.mubr.f32.mxu1 %v7268_v36  ;;  %7057 = vmatpush1.bf16.msra.mxu1 %v7056_v0 }
0x245d   :  { %6307 = vmatprep.subr.msk.mxu1 %vm311_vm4, %v8410_v5 }
0x2460   :  { %6308 = vmatpush1.msk.msra.mxu1 %vm311_vm4, %v5398_v1 }
0x252e   :  { %v6789_v20 = vpop.f32.mrb[100].mxu1 }
0x252f   :  { %v5370_v17 = vadd.f32 %v6789_v20, %v5182_v57  ;;  %v5364_v38 = vpop.f32.mrb[101].mxu1 }
0x2530   :  { %v5365_v22 = vadd.f32 %v5364_v38, %v5176_v62 }
0x2531   :  { %v5376_v23 = vrot.slane %v5370_v17, 4 }
0x2532   :  { %v5375_v63 = vrot.slane %v5365_v22, 4 }
0x2534   :  { %v5377_v33 = vsel %vm311_vm4, %v5375_v63, %v5376_v23  ;;  %v5385_v24 = vsel %vm3745_vm1, %v5375_v63, %v5380_v60 }
0x2535   :  { %v5386_v55 = vsel %vm3746_vm2, %v5377_v33, %v8383_v10  ;;  %v5418_v3 = vrot.slane %v5385_v24, 4  ;;  %v5411_v10 = vrot.slane %v5398_v1, %v7507_v11  ;;  %v5862_v33 = vld [vmem:[%s8548_s8 + $0x60] sm:$0xf]  ;;  %v5415_v24 = vrot.slane %v8410_v5, %v7507_v11  ;;  %v7190_v11 = vld [vmem:[%s8544_s4 + $0x18] sm:$0xff] }
0x2536   :  { %v8429_v49 = vrot.slane %v5386_v55, 4 }
0x2538   :  { %v8433_v51 = vsel %vm311_vm4, %v5418_v3, %v8429_v49 }
0x2539   :  { %6305 = vmatmul.mubr.msk.f32.vlgmr.msra.gmra.mrb[100].mxu0 %vm438_vm8, %v8433_v51  ;;  %6309 = vmatmul.mubr.msk.f32.vlgmr.msra.gmra.mrb[102].mxu1 %vm438_vm8, %v8433_v51 }
0x253a   :  { %5507 = vmatprep.mubr.f32.mxu0 %v7268_v36  ;;  %5584 = vmatprep.mubr.f32.mxu1 %v7268_v36 }
0x253d   :  { %6306 = vmatmul.mubr.msk.f32.gmra.mrb[102].mxu0 %vm438_vm8, %v8429_v49  ;;  %6310 = vmatmul.mubr.msk.f32.gmra.mrb[104].mxu1 %vm438_vm8, %v8429_v49 }
0x260c   :  { %v5503_v12 = vpop.f32.mrb[100].mxu0  ;;  %v5580_v2 = vpop.f32.mrb[102].mxu1 }
0x260d   :  { %v5504_v60 = vadd.f32 %v5503_v12, %v5403_v27  ;;  %v5505_v34 = vpop.f32.mrb[101].mxu0  ;;  %v8447_v15 = vpop.f32.mrb[103].mxu1  ;;  %v5581_v40 = vadd.f32 %v5580_v2, %v5411_v10 }
0x260e   :  { %v5506_v37 = vadd.f32 %v5505_v34, %v5407_v44  ;;  %v5583_v3 = vadd.f32 %v8447_v15, %v5415_v24  ;;  %v5947_v15 = vld [vmem:[%s8548_s8 + $0x78] sm:$0xf] }
0x260f   :  { %6794 = vmatprep.mubr.f32.mxu0 %v5504_v60 }
0x2610   :  { %v5509_v46 = vpop.f32.mrb[102].mxu0  ;;  %v5586_v52 = vpop.f32.mrb[104].mxu1 }
0x2611   :  { %v5510_v16 = vadd.f32 %v5509_v46, %v5403_v27  ;;  %v5587_v39 = vadd.f32 %v5586_v52, %v5411_v10  ;;  %v5511_v18 = vpop.f32.mrb[103].mxu0  ;;  %v5588_v50 = vpop.f32.mrb[105].mxu1  ;;  %v5949_v52 = vld [vmem:[%s8548_s8 + $0x88] sm:$0xff] }
0x2612   :  { %v5512_v42 = vadd.f32 %v5511_v18, %v5407_v44  ;;  %v5589_v55 = vadd.f32 %v5588_v50, %v5415_v24 }
0x2613   :  { %v7062_v58 = vpack.c.bf16 %v5587_v39, %v5581_v40  ;;  %v6316_v39 = vld [vmem:[%s8548_s8 + $0xa] ss:$0 sm:$0xff] }
0x2614   :  { %v7058_v48 = vpack.c.bf16 %v5512_v42, %v5506_v37 }
0x2615   :  { %7064 = vmatprep.subr.msk.bf16.mxu1 %vm7438_vm6, %v7062_v58 }
0x2616   :  { %7059 = vmatprep.subr.bf16.mxu0 %v7058_v48  ;;  %7067 = vmatpush3.bf16.msk.msra.mxu1 %vm7438_vm6, %v7062_v58 }
0x2617   :  { %7061 = vmatpush3.bf16.xpose.msra.mxu0 %v7058_v48  ;;  %7072 = vmatprep.subr.bf16.mxu1 %v7266_v31 }
0x2618   :  { %7068 = vmatprep.subr.bf16.mxu0 %v7266_v31 }
0x261e   :  { %6795 = vmatmul.mubr.f32.vlgmr.msra.gmra.mrb[104].mxu0 %v5510_v16  ;;  %v5950_v16 = vld [vmem:[%s8548_s8 + $0x90] sm:$0xf] }
0x261f   :  { %6808 = vmatprep.mubr.msk.f32.mxu0 %vm7269_vm7, %v7268_v36 }
0x26f1   :  { %v6796_v41 = vpop.f32.mrb[104].mxu0 }
0x26f2   :  { %v5667_v19 = vmul.f32 0.2236068, %v6796_v41  ;;  %v5657_v14 = vpop.f32.mrb[105].mxu0 }
0x26f3   :  { %v5666_v13 = vmul.f32 0.2236068, %v5657_v14 }
0x26f4   :  { %v5669_v21 = vadd.f32 %v5667_v19, %v8201_v53 }
0x26f5   :  { %v5668_v30 = vadd.f32 %v5666_v13, %v8206_v6 }
0x26f6   :  { %v5673_v45 = vsel %vm3629_vm14, %v5669_v21, -inf }
0x26f7   :  { %5674 = vmax.xlane.f32.xlu1 %v5673_v45  ;;  %v5670_v25 = vsel %vm146_vm3, %v5668_v30, -inf }
0x26f8   :  { %5671 = vmax.xlane.f32.xlu0 %v5670_v25 }
0x2784   :  { %v5675_v47 = vpop.xlane.xlu1 %5674 }
0x2785   :  { %v5677_v54 = vsub.f32 %v5669_v21, %v5675_v47  ;;  %v5672_v43 = vpop.xlane.xlu0 %5671 }
0x2786   :  { %v5676_v59 = vsub.f32 %v5668_v30, %v5672_v43 }
0x2787   :  { %v5680_v35 = vmul.f32 1.442695, %v5677_v54 }
0x2788   :  { %v5678_v61 = vmul.f32 1.442695, %v5676_v59 }
0x2789   :  { %7175 = vpow2.f32 %v5680_v35 }
0x278a   :  { %7177 = vpow2.f32 %v5678_v61 }
0x2793   :  { %v7176_v0 = vpop.eup %7175 }
0x2794   :  { %v7178_v8 = vpop.eup %7177  ;;  %v5683_v53 = vmul.f32 %v7176_v0, %v8213_v26  ;;  %v5860_v26 = vld [vmem:[%s8548_s8 + $0x50] sm:$0xff] }
0x2795   :  { %v5682_v6 = vmul.f32 %v7178_v8, %v8217_v29  ;;  %v5861_v29 = vld [vmem:[%s8548_s8 + $0x58] sm:$0xff] }
0x2796   :  { %v5687_v9 = vsel %vm3629_vm14, %v5683_v53, 0.0  ;;  %v7073_v63 = vpack.c.bf16 %v5861_v29, %v5860_v26 }
0x2797   :  { %5688 = vadd.xlane.f32.xlu1 %v5687_v9  ;;  %v5684_v1 = vsel %vm146_vm3, %v5682_v6, 0.0 }
0x2798   :  { %5685 = vadd.xlane.f32.xlu0 %v5684_v1 }
0x2824   :  { %v5689_v28 = vpop.xlane.xlu1 %5688 }
0x2825   :  { %v5691_v57 = vmax.f32 %v5689_v28, 1e-06  ;;  %v5686_v62 = vpop.xlane.xlu0 %5685 }
0x2826   :  { %v5690_v20 = vmax.f32 %v5686_v62, 1e-06 }
0x2827   :  { %7179 = vrcp.f32 %v5691_v57 }
0x2828   :  { %7181 = vrcp.f32 %v5690_v20 }
0x2831   :  { %v7180_v17 = vpop.eup %7179 }
0x2832   :  { %v7182_v38 = vpop.eup %7181  ;;  %v5695_v23 = vmul.f32 %v7180_v17, %v5683_v53 }
0x2833   :  { %v5694_v22 = vmul.f32 %v7182_v38, %v5682_v6 }
0x2835   :  { %6801 = vmatprep.mubr.msk.f32.mxu1 %vm146_vm3, %v5694_v22 }
0x2836   :  { %6802 = vmatmul.mubr.msk.f32.vlgmr.msra.gmra.mrb[106].mxu1 %vm146_vm3, %v5695_v23 }
0x2837   :  { %6817 = vmatprep.mubr.msk.f32.mxu1 %vm7269_vm7, %v7268_v36  ;;  %7074 = vmatpush3.bf16.msra.mxu1 %v7073_v63 }
0x2838   :  { %6815 = vmatprep.subr.mxu1 %v7268_v36 }
0x283b   :  { %6816 = vmatpush3.msk.msra.mxu1 %vm311_vm4, %v5862_v33 }
0x283c   :  { %7078 = vmatprep.subr.bf16.mxu1 %v7266_v31 }
0x2909   :  { %v6803_v27 = vpop.f32.mrb[106].mxu1 }
0x290a   :  { %v5777_v12 = vadd.f32 %v6803_v27, %v5589_v55  ;;  %v5771_v2 = vpop.f32.mrb[107].mxu1 }
0x290b   :  { %v5772_v60 = vadd.f32 %v5771_v2, %v5583_v3 }
0x290c   :  { %v5783_v10 = vsel %vm4177_vm10, %v5777_v12, %v8429_v49 }
0x290d   :  { %v5782_v34 = vsel %vm4176_vm11, %v5772_v60, %v8433_v51 }
0x290e   :  { %v7069_v44 = vpack.c.bf16 %v5783_v10, %v5782_v34 }
0x2910   :  { %7071 = vmatpush3.bf16.msk.msra.mxu0 %vm7438_vm6, %v7069_v44 }
0x2911   :  { %7075 = vmatprep.subr.bf16.mxu0 %v7266_v31  ;;  %v6238_v31 = vld [vmem:[%s8548_s8 + $0x8] ss:$0 sm:$0xff] }
0x2912   :  { %v3200_v49 = vadd.f32 %v6238_v31, %v8094_v56  ;;  %v5948_v56 = vld [vmem:[%s8548_s8 + $0x80] sm:$0xff] }
0x2913   :  { %6809 = vmatmul.mubr.msk.f32.vlgmr.msra.gmra.mrb[106].mxu0 %vm146_vm3, %v7190_v11  ;;  %v7076_v40 = vpack.c.bf16 %v5949_v52, %v5948_v56  ;;  %vm6109_vm3 = vcmask 11264  }
0x2914   :  { %6826 = vmatprep.mubr.msk.f32.mxu0 %vm7269_vm7, %v7268_v36  ;;  %v3203_v46 = vmax.f32 %v3200_v49, 0.0 }
0x2915   :  { %7077 = vmatpush3.bf16.msra.mxu0 %v7076_v40 }
0x2916   :  { %6824 = vmatprep.subr.mxu0 %v7268_v36 }
0x2919   :  { %6825 = vmatpush3.msk.msra.mxu0 %vm311_vm4, %v5950_v16 }
0x29e6   :  { %v5856_v5 = vpop.f32.mrb[106].mxu0 }
0x29e7   :  { %6818 = vmatmul.mubr.msk.f32.vlgmr.msra.gmra.mrb[108].mxu1 %vm438_vm8, %v5856_v5  ;;  %v6810_v51 = vpop.f32.mrb[107].mxu0 }
0x29e8   :  { %7080 = vmatpush3.bf16.msra.mxu1 %v7079_v7  ;;  %6835 = vmatprep.mubr.msk.f32.mxu1 %vm7269_vm7, %v7268_v36 }
0x29e9   :  { %6833 = vmatprep.subr.mxu1 %v7268_v36  ;;  %v6323_v36 = vld [vmem:[%s8548_s8 + $0xd] ss:$0 sm:$0xff] }
0x29ec   :  { %6834 = vmatpush3.msk.msra.mxu1 %vm311_vm4, %v5947_v15 }
0x29ed   :  { %6836 = vmatmul.mubr.msk.f32.vlgmr.msra.gmra.mrb[110].mxu1 %vm438_vm8, %v3203_v46 }
0x2aba   :  { %v5940_v18 = vpop.f32.mrb[108].mxu1 }
0x2abb   :  { %v5941_v50 = vadd.f32 %v6316_v39, %v5940_v18  ;;  %v6819_v37 = vpop.f32.mrb[109].mxu1 }
0x2abd   :  { %v5944_v42 = vmax.f32 %v5941_v50, 0.0 }
0x2abf   :  { %6827 = vmatmul.mubr.msk.f32.vlgmr.msra.gmra.mrb[108].mxu0 %vm438_vm8, %v5944_v42 }
0x2ac0   :  { %v6099_v58 = vpop.f32.mrb[110].mxu1 }
0x2ac1   :  { %v6837_v48 = vpop.f32.mrb[111].mxu1 }
0x2b92   :  { %v6023_v41 = vpop.f32.mrb[108].mxu0 }
0x2b93   :  { %v6100_v19 = vadd.f32 %v6099_v58, %v6023_v41  ;;  %v6828_v14 = vpop.f32.mrb[109].mxu0 }
0x2b95   :  { %v6108_v13 = vadd.f32 %v6323_v36, %v6100_v19 }
0x2b97   :  { %6110 = vst.msk [vmem:[%s8549_s9] sm:$0xf] %vm6109_vm3, %v6108_v13 }
0x2b98   :  { %6115 = vsyncpa [#allocation3], 1 }
0x2b99   :  { %6116 = vsyncpa [#allocation5], 1 }

</bundles_post_ra>
